<compile_context>
chip_gen: v7x
topology: tpu7x:2x2x1
jax: 0.10.0
libtpu: 0.0.40
codegen_flags: <defaults>
</compile_context>

<pallas_src>
import functools

import jax
import jax.numpy as jnp
from jax import lax
from jax.experimental import pallas as pl
from jax.experimental.pallas import tpu as pltpu


def _contact_head_kernel(cvec_ref, const_ref, mrow_ref, mcol_ref, att_ref,
                         wfull_ref, hp_ref, out_ref, z_acc, s_acc, *, valid_len):
    # cvec_ref : SMEM (C,)   f32  fusion_w @ linear_w (per-channel coefficient)
    # const_ref: SMEM (1,)   f32  2*dot(linear_w, fusion_b) + linear_b
    # mrow_ref : VMEM (1, 1, S)   sequence mask as a row (f32)
    # mcol_ref : VMEM (1, S, 1)   sequence mask as a column (f32)
    # att_ref  : VMEM (1, Ct, S, S)  attention slab, native dtype (e.g. bf16)
    # wfull_ref: VMEM (Hd, C) f32    fusion weight, transposed
    # hp_ref   : VMEM (Hd, 2) f32    col0 = 2*S*fusion_b, col1 = final linear weight
    # out_ref  : VMEM (1, S, S) f32
    # z_acc    : VMEM (S, S) f32 scratch  (cvec-contracted UNMASKED attention)
    # s_acc    : VMEM (C, S) f32 scratch  (raw per-channel mask-weighted row+col sums)
    ct = att_ref.shape[1]
    s = att_ref.shape[2]
    k = pl.program_id(1)
    base = k * ct

    @pl.when(k == 0)
    def _init():
        z_acc[...] = jnp.zeros_like(z_acc)

    slab_ref = att_ref.at[0]                                   # (Ct, S, S) view

    # ---- Z: cvec-weighted sum of UNMASKED channels (VPU MAC, f32 accumulate). ----
    def _chan_mac(c, z):
        return z + cvec_ref[base + c] * slab_ref[c].astype(jnp.float32)

    z_acc[...] = lax.fori_loop(0, ct, _chan_mac, z_acc[...], unroll=min(ct, 8))

    # ---- Per-channel mask-weighted row/col sums on the MXU (native dtype). ----
    x = slab_ref[...]                                          # (Ct, S, S)
    m_b = jnp.broadcast_to(mrow_ref[0].astype(x.dtype)[None, :, :], (ct, 1, s))
    colw = jnp.einsum('cki,cij->ckj', m_b, x,
                      preferred_element_type=jnp.float32)      # (Ct, 1, S)
    roww = jnp.einsum('cij,ckj->cik', x, m_b,
                      preferred_element_type=jnp.float32)      # (Ct, S, 1)
    s_tile = jnp.squeeze(colw, axis=1) + jnp.squeeze(roww, axis=2)   # (Ct, S) f32

    row0 = base
    if ct % 8 == 0:
        row0 = pl.multiple_of(row0, 8)
    s_acc[pl.ds(row0, ct), :] = s_tile

    @pl.when(k == pl.num_programs(1) - 1)
    def _finalize():
        mrow = mrow_ref[0]                                     # (1, S) f32
        mcol = mcol_ref[0]                                     # (S, 1) f32
        # Fusion projection of the raw sums: once per batch => HIGHEST is ~free and keeps
        # the rank-Hd APC term numerically close to the f32 reference.
        p = jnp.dot(wfull_ref[...], s_acc[...],
                    preferred_element_type=jnp.float32,
                    precision=lax.Precision.HIGHEST)           # (Hd, S)
        sbias = hp_ref[:, 0:1]                                 # (Hd, 1)  2*S*fusion_b
        lw = hp_ref[:, 1:2]                                    # (Hd, 1)  final linear w
        if valid_len < s:     # static: keep padded positions out of a1 / a12
            valid = (lax.broadcasted_iota(jnp.int32, (1, s), 1)
                     < valid_len).astype(jnp.float32)
            bias_term = sbias * valid                          # (Hd, S)
        else:
            bias_term = sbias                                  # (Hd, 1) broadcasts
        a1 = mrow * p + bias_term                              # (Hd, S)
        a12 = jnp.sum(a1, axis=1, keepdims=True)               # (Hd, 1)
        # A fully-empty sequence gives a12 == 0 -> NaN/Inf, same as the PyTorch module.
        a1s = (lw / a12) * a1                                  # (Hd, S)
        apc = lax.dot_general(a1s, a1, (((0,), (0,)), ((), ())),
                              preferred_element_type=jnp.float32,
                              precision=lax.Precision.HIGHEST)  # (S, S) rank-Hd product
        z = z_acc[...]
        pairm = mcol * mrow                                    # pair mask, applied ONCE
        res = pairm * (z + z.T) + const_ref[0] - apc           # single SxS transpose
        out_ref[...] = res[None].astype(out_ref.dtype)


def _physical_vmem_bytes():
    """Per-core VMEM capacity; conservative (v7x-sized) fallback if unknown."""
    try:
        info = pltpu.get_tpu_info()
        cap = getattr(info, "vmem_capacity_bytes", None)
        if cap:
            return int(cap)
    except Exception:
        pass
    return 64 * 1024 * 1024


def _pick_tile_c(C, s_pad, itemsize, requested, vmem_cap):
    if requested is not None:
        if C % int(requested) != 0:
            raise ValueError("tile_c must divide layers*num_heads")
        return int(requested)
    # Generation-aware: ~45% of physical VMEM for the double-buffered attention slab
    # (bigger slabs on 128 MiB v5e/v6e, smaller on 64 MiB v7x). 64-channel ceiling keeps
    # the unrolled MAC loop's code size bounded.
    slab_budget = int(vmem_cap * 0.45)
    cap = max(1, slab_budget // (2 * s_pad * s_pad * itemsize))
    cap = int(min(cap, 64, C))
    for t in range(cap, 0, -1):
        if C % t == 0:
            return t
    return 1


def contact_prediction_head(attentions, seq_mask, fusion_w, fusion_b,
                            linear_w, linear_b, *, tile_c=None):
    """attentions: [B, L, H, S, S] (any float dtype; streamed as-is),
       seq_mask: [B, S] or None  ->  contact map [B, S, S] float32."""
    B, L, H, S, _ = attentions.shape
    C = L * H
    att = attentions.reshape(B, C, S, S)            # no upcast: stream native dtype

    if seq_mask is None:
        seq_mask = jnp.ones((B, S), dtype=jnp.float32)
    if fusion_w is None:                            # hidden_dim=None -> identity fusion
        fusion_w = jnp.eye(C, dtype=jnp.float32)
        fusion_b = jnp.zeros((C,), dtype=jnp.float32)

    fusion_w = fusion_w.astype(jnp.float32)                         # [C, Hd]
    fusion_b = jnp.reshape(fusion_b, (-1,)).astype(jnp.float32)     # [Hd]
    linear_w = jnp.reshape(linear_w, (-1,)).astype(jnp.float32)     # [Hd]
    linear_b = jnp.reshape(linear_b, (-1,)).astype(jnp.float32)     # [1]
    Hd = fusion_w.shape[1]

    # Pad the sequence axis to a multiple of 128: lane-dense unmasked output stores and
    # aligned slab DMAs.  Padded positions carry mask==0 and are sliced off below.
    s_pad = ((S + 127) // 128) * 128
    mask_f = seq_mask.astype(jnp.float32)
    if s_pad != S:
        att = jnp.pad(att, ((0, 0), (0, 0), (0, s_pad - S), (0, s_pad - S)))
        mask_f = jnp.pad(mask_f, ((0, 0), (0, s_pad - S)))

    itemsize = att.dtype.itemsize
    vmem_cap = _physical_vmem_bytes()
    Ct = _pick_tile_c(C, s_pad, itemsize, tile_c, vmem_cap)
    nC = C // Ct

    # Host-side folded parameters (all tiny).
    cvec = jnp.dot(fusion_w, linear_w, precision=lax.Precision.HIGHEST)            # [C]
    const = (2.0 * jnp.dot(linear_w, fusion_b, precision=lax.Precision.HIGHEST)
             + linear_b[0]).reshape(1)                                             # [1]
    wfull = fusion_w.T                                                             # [Hd, C]
    hparams = jnp.stack([2.0 * S * fusion_b, linear_w], axis=1)                    # [Hd, 2]
    mrow = mask_f.reshape(B, 1, s_pad)
    mcol = mask_f.reshape(B, s_pad, 1)

    # VMEM budget: double-buffered slab + output block + accumulators + temporaries.
    vmem_need = (2 * Ct * s_pad * s_pad * itemsize
                 + 2 * s_pad * s_pad * 4
                 + 3 * s_pad * s_pad * 4                 # z_acc + finalize temporaries
                 + C * s_pad * 4 + Hd * max(C, s_pad) * 4
                 + 4 * 1024 * 1024)
    vmem_limit = int(min(max(vmem_need, 32 * 1024 * 1024), int(vmem_cap * 0.78)))
    # TODO(synk): very long sequences (SxS f32 maps of many MiB) additionally want an
    # S-row tile grid axis (also keeps both v7x TensorCores busy at B==1); with it the
    # attention BlockSpec becomes a candidate for pipeline_mode=pl.Buffered(3).

    kernel = functools.partial(_contact_head_kernel, valid_len=S)

    grid_spec = pltpu.PrefetchScalarGridSpec(
        num_scalar_prefetch=0,
        grid=(B, nC),
        in_specs=[
            pl.BlockSpec(memory_space=pltpu.MemorySpace.SMEM),                 # cvec
            pl.BlockSpec(memory_space=pltpu.MemorySpace.SMEM),                 # const
            pl.BlockSpec((1, 1, s_pad), lambda b, k: (b, 0, 0)),               # mask row
            pl.BlockSpec((1, s_pad, 1), lambda b, k: (b, 0, 0)),               # mask col
            pl.BlockSpec((1, Ct, s_pad, s_pad), lambda b, k: (b, k, 0, 0)),    # att slab
            pl.BlockSpec((Hd, C), lambda b, k: (0, 0)),                        # fusion W^T
            pl.BlockSpec((Hd, 2), lambda b, k: (0, 0)),                        # [2S*fb, lw]
        ],
        out_specs=pl.BlockSpec((1, s_pad, s_pad), lambda b, k: (b, 0, 0)),
        scratch_shapes=[
            pltpu.VMEM((s_pad, s_pad), jnp.float32),   # Z accumulator
            pltpu.VMEM((C, s_pad), jnp.float32),       # per-channel row+col sums
        ],
    )

    out = pl.pallas_call(
        kernel,
        out_shape=jax.ShapeDtypeStruct((B, s_pad, s_pad), jnp.float32),
        grid_spec=grid_spec,
        compiler_params=pltpu.CompilerParams(
            dimension_semantics=("parallel", "arbitrary"),
            vmem_limit_bytes=vmem_limit),
    )(cvec, const, mrow, mcol, att, wfull, hparams)

    if s_pad != S:
        out = out[:, :S, :S]
    return out


def reference_forward(attentions, seq_mask, fusion_w, fusion_b, linear_w, linear_b):
    """Pure-JAX mirror of the PyTorch module (for validation)."""
    B, L, H, S, _ = attentions.shape
    x = attentions.reshape(B, L * H, S, S).astype(jnp.float32)
    pair = seq_mask[:, None, :] * seq_mask[:, :, None]               # [B, S, S]
    x = x * pair[:, None, :, :]
    x = jnp.einsum('bcij,ch->bhij', x, fusion_w,
                   precision=lax.Precision.HIGHEST) + fusion_b[None, :, None, None]
    x = x + jnp.swapaxes(x, -1, -2)
    a1 = x.sum(-1, keepdims=True)
    a2 = x.sum(-2, keepdims=True)
    a12 = a1.sum(-2, keepdims=True)
    x = x - (a1 * a2) / a12
    out = jnp.einsum('bhij,h->bij', x, linear_w,
                     precision=lax.Precision.HIGHEST) + linear_b[0]
    return out


if __name__ == "__main__":
    key = jax.random.PRNGKey(0)
    k1, k2, k3, k4, k5 = jax.random.split(key, 5)

    B, L, H, S = 2, 2, 4, 120          # S=120 exercises the host-side pad-to-128 path
    dim = L * H                        # 8 channels
    hidden_dim = 16

    # Stream attentions in bf16 (native activation dtype) -- no fp32 upcast in HBM.
    attentions = jax.random.uniform(
        k1, (B, L, H, S, S), dtype=jnp.float32).astype(jnp.bfloat16)
    seq_mask = jnp.ones((B, S), dtype=jnp.float32)
    seq_mask = seq_mask.at[1, -17:].set(0.0)     # mask trailing positions of batch 1

    fusion_w = 0.2 * jax.random.normal(k2, (dim, hidden_dim), dtype=jnp.float32)
    fusion_b = 0.5 + 0.1 * jax.random.normal(k3, (hidden_dim,), dtype=jnp.float32)
    linear_w = 0.2 * jax.random.normal(k4, (hidden_dim,), dtype=jnp.float32)
    linear_b = 0.1 * jax.random.normal(k5, (1,), dtype=jnp.float32)

    ref = reference_forward(attentions, seq_mask, fusion_w, fusion_b,
                            linear_w, linear_b)

    # (1) auto (generation-aware) tile; (2) forced tile_c=4 -> grid (B, 2), exercising the
    #     multi-step channel-reduction / accumulation path.
    for tc in (None, 4):
        out = contact_prediction_head(attentions, seq_mask, fusion_w, fusion_b,
                                      linear_w, linear_b, tile_c=tc)
        out = jax.block_until_ready(out)
        assert out.shape == (B, S, S)
        err = jnp.max(jnp.abs(out - ref))
        assert jnp.allclose(out, ref, rtol=1e-2, atol=1e-2), \
            f"tile_c={tc}: max err {err}"

    print("KERNEL_OK")
</pallas_src>

<mosaic_0001>
module attributes {stable_mosaic.version = 11 : i64} {
  func.func @_contact_head_kernel(%arg0: i32, %arg1: i32, %arg2: memref<8xf32, #tpu.memory_space<smem>>, %arg3: memref<1xf32, #tpu.memory_space<smem>>, %arg4: memref<1x1x128xf32, #tpu.memory_space<vmem>>, %arg5: memref<1x128x1xf32, #tpu.memory_space<vmem>>, %arg6: memref<1x8x128x128xbf16, #tpu.memory_space<vmem>>, %arg7: memref<16x8xf32, #tpu.memory_space<vmem>>, %arg8: memref<16x2xf32, #tpu.memory_space<vmem>>, %arg9: memref<1x128x128xf32, #tpu.memory_space<vmem>>, %arg10: memref<128x128xf32, #tpu.memory_space<vmem>>, %arg11: memref<8x128xf32, #tpu.memory_space<vmem>>) attributes {dimension_semantics = [#tpu.dimension_semantics<parallel>, #tpu.dimension_semantics<arbitrary>], iteration_bounds = array<i64: 2, 1>, scalar_prefetch = 0 : i64, scratch_operands = 2 : i64, tpu.core_type = #tpu.core_type<tc>, window_params = [{transform_indices = @transform_0, window_bounds = array<i64: 8>}, {transform_indices = @transform_1, window_bounds = array<i64: 1>}, {transform_indices = @transform_2, window_bounds = array<i64: 1, 1, 128>}, {transform_indices = @transform_3, window_bounds = array<i64: 1, 128, 1>}, {transform_indices = @transform_4, window_bounds = array<i64: 1, 8, 128, 128>}, {pipeline_mode = #tpu.pipeline_mode<synchronous>, transform_indices = @transform_5, window_bounds = array<i64: 16, 8>}, {pipeline_mode = #tpu.pipeline_mode<synchronous>, transform_indices = @transform_6, window_bounds = array<i64: 16, 2>}, {transform_indices = @transform_7, window_bounds = array<i64: 1, 128, 128>}]} {
    %c8_i32 = arith.constant 8 : i32
    %0 = arith.muli %arg1, %c8_i32 : i32
    %c0_i32 = arith.constant 0 : i32
    %1 = arith.cmpi eq, %arg1, %c0_i32 : i32
    %2 = arith.extui %1 : i1 to i32
    %c0_i32_0 = arith.constant 0 : i32
    %3 = arith.cmpi ne, %2, %c0_i32_0 : i32
    scf.if %3 {
      %cst_58 = arith.constant 0.000000e+00 : f32
      %121 = vector.broadcast %cst_58 : f32 to vector<128x128xf32>
      %c0_59 = arith.constant 0 : index
      %c0_60 = arith.constant 0 : index
      %122 = vector.load %arg10[%c0_59, %c0_60] : memref<128x128xf32, #tpu.memory_space<vmem>>, vector<128x128xf32>
      tpu.vector_store %arg10[%c0_59, %c0_60], %121 {strides = array<i32>} : memref<128x128xf32, #tpu.memory_space<vmem>>, vector<128x128xf32>,
    } else {
    }
    %c0 = arith.constant 0 : index
    %c0_1 = arith.constant 0 : index
    %4 = vector.load %arg10[%c0, %c0_1] : memref<128x128xf32, #tpu.memory_space<vmem>>, vector<128x128xf32>
    %c0_i32_2 = arith.constant 0 : i32
    %c0_i32_3 = arith.constant 0 : i32
    %5 = arith.addi %0, %c0_i32_3 : i32
    %6 = arith.index_cast %5 : i32 to index
    %7 = memref.load %arg2[%6] : memref<8xf32, #tpu.memory_space<smem>>
    %c0_i32_4 = arith.constant 0 : i32
    %c0_i32_5 = arith.constant 0 : i32
    %c0_i32_6 = arith.constant 0 : i32
    %8 = tpu.memref_slice %arg6[%c0_i32_2, %c0_i32_4, %c0_i32_5, %c0_i32_6] : memref<1x8x128x128xbf16, #tpu.memory_space<vmem>> -> memref<1x8x128x128xbf16, #tpu.memory_space<vmem>>
    %9 = tpu.memref_squeeze %8 : memref<1x8x128x128xbf16, #tpu.memory_space<vmem>> -> memref<8x128x128xbf16, #tpu.memory_space<vmem>>
    %10 = arith.index_cast %c0_i32_3 : i32 to index
    %c0_7 = arith.constant 0 : index
    %c0_8 = arith.constant 0 : index
    %11 = vector.load %9[%10, %c0_7, %c0_8] : memref<8x128x128xbf16, #tpu.memory_space<vmem>>, vector<1x128x128xbf16>
    %12 = vector.shape_cast %11 : vector<1x128x128xbf16> to vector<128x128xbf16>
    %13 = arith.extf %12 : vector<128x128xbf16> to vector<128x128xf32>
    %14 = vector.broadcast %7 : f32 to vector<128x128xf32>
    %15 = arith.mulf %14, %13 : vector<128x128xf32>
    %16 = arith.addf %4, %15 : vector<128x128xf32>
    %c1_i32 = arith.constant 1 : i32
    %17 = arith.addi %0, %c1_i32 : i32
    %18 = arith.index_cast %17 : i32 to index
    %19 = memref.load %arg2[%18] : memref<8xf32, #tpu.memory_space<smem>>
    %c0_i32_9 = arith.constant 0 : i32
    %c0_i32_10 = arith.constant 0 : i32
    %c0_i32_11 = arith.constant 0 : i32
    %20 = tpu.memref_slice %arg6[%c0_i32_2, %c0_i32_9, %c0_i32_10, %c0_i32_11] : memref<1x8x128x128xbf16, #tpu.memory_space<vmem>> -> memref<1x8x128x128xbf16, #tpu.memory_space<vmem>>
    %21 = tpu.memref_squeeze %20 : memref<1x8x128x128xbf16, #tpu.memory_space<vmem>> -> memref<8x128x128xbf16, #tpu.memory_space<vmem>>
    %22 = arith.index_cast %c1_i32 : i32 to index
    %c0_12 = arith.constant 0 : index
    %c0_13 = arith.constant 0 : index
    %23 = vector.load %21[%22, %c0_12, %c0_13] : memref<8x128x128xbf16, #tpu.memory_space<vmem>>, vector<1x128x128xbf16>
    %24 = vector.shape_cast %23 : vector<1x128x128xbf16> to vector<128x128xbf16>
    %25 = arith.extf %24 : vector<128x128xbf16> to vector<128x128xf32>
    %26 = vector.broadcast %19 : f32 to vector<128x128xf32>
    %27 = arith.mulf %26, %25 : vector<128x128xf32>
    %28 = arith.addf %16, %27 : vector<128x128xf32>
    %c2_i32 = arith.constant 2 : i32
    %29 = arith.addi %0, %c2_i32 : i32
    %30 = arith.index_cast %29 : i32 to index
    %31 = memref.load %arg2[%30] : memref<8xf32, #tpu.memory_space<smem>>
    %c0_i32_14 = arith.constant 0 : i32
    %c0_i32_15 = arith.constant 0 : i32
    %c0_i32_16 = arith.constant 0 : i32
    %32 = tpu.memref_slice %arg6[%c0_i32_2, %c0_i32_14, %c0_i32_15, %c0_i32_16] : memref<1x8x128x128xbf16, #tpu.memory_space<vmem>> -> memref<1x8x128x128xbf16, #tpu.memory_space<vmem>>
    %33 = tpu.memref_squeeze %32 : memref<1x8x128x128xbf16, #tpu.memory_space<vmem>> -> memref<8x128x128xbf16, #tpu.memory_space<vmem>>
    %34 = arith.index_cast %c2_i32 : i32 to index
    %c0_17 = arith.constant 0 : index
    %c0_18 = arith.constant 0 : index
    %35 = vector.load %33[%34, %c0_17, %c0_18] : memref<8x128x128xbf16, #tpu.memory_space<vmem>>, vector<1x128x128xbf16>
    %36 = vector.shape_cast %35 : vector<1x128x128xbf16> to vector<128x128xbf16>
    %37 = arith.extf %36 : vector<128x128xbf16> to vector<128x128xf32>
    %38 = vector.broadcast %31 : f32 to vector<128x128xf32>
    %39 = arith.mulf %38, %37 : vector<128x128xf32>
    %40 = arith.addf %28, %39 : vector<128x128xf32>
    %c3_i32 = arith.constant 3 : i32
    %41 = arith.addi %0, %c3_i32 : i32
    %42 = arith.index_cast %41 : i32 to index
    %43 = memref.load %arg2[%42] : memref<8xf32, #tpu.memory_space<smem>>
    %c0_i32_19 = arith.constant 0 : i32
    %c0_i32_20 = arith.constant 0 : i32
    %c0_i32_21 = arith.constant 0 : i32
    %44 = tpu.memref_slice %arg6[%c0_i32_2, %c0_i32_19, %c0_i32_20, %c0_i32_21] : memref<1x8x128x128xbf16, #tpu.memory_space<vmem>> -> memref<1x8x128x128xbf16, #tpu.memory_space<vmem>>
    %45 = tpu.memref_squeeze %44 : memref<1x8x128x128xbf16, #tpu.memory_space<vmem>> -> memref<8x128x128xbf16, #tpu.memory_space<vmem>>
    %46 = arith.index_cast %c3_i32 : i32 to index
    %c0_22 = arith.constant 0 : index
    %c0_23 = arith.constant 0 : index
    %47 = vector.load %45[%46, %c0_22, %c0_23] : memref<8x128x128xbf16, #tpu.memory_space<vmem>>, vector<1x128x128xbf16>
    %48 = vector.shape_cast %47 : vector<1x128x128xbf16> to vector<128x128xbf16>
    %49 = arith.extf %48 : vector<128x128xbf16> to vector<128x128xf32>
    %50 = vector.broadcast %43 : f32 to vector<128x128xf32>
    %51 = arith.mulf %50, %49 : vector<128x128xf32>
    %52 = arith.addf %40, %51 : vector<128x128xf32>
    %c4_i32 = arith.constant 4 : i32
    %53 = arith.addi %0, %c4_i32 : i32
    %54 = arith.index_cast %53 : i32 to index
    %55 = memref.load %arg2[%54] : memref<8xf32, #tpu.memory_space<smem>>
    %c0_i32_24 = arith.constant 0 : i32
    %c0_i32_25 = arith.constant 0 : i32
    %c0_i32_26 = arith.constant 0 : i32
    %56 = tpu.memref_slice %arg6[%c0_i32_2, %c0_i32_24, %c0_i32_25, %c0_i32_26] : memref<1x8x128x128xbf16, #tpu.memory_space<vmem>> -> memref<1x8x128x128xbf16, #tpu.memory_space<vmem>>
    %57 = tpu.memref_squeeze %56 : memref<1x8x128x128xbf16, #tpu.memory_space<vmem>> -> memref<8x128x128xbf16, #tpu.memory_space<vmem>>
    %58 = arith.index_cast %c4_i32 : i32 to index
    %c0_27 = arith.constant 0 : index
    %c0_28 = arith.constant 0 : index
    %59 = vector.load %57[%58, %c0_27, %c0_28] : memref<8x128x128xbf16, #tpu.memory_space<vmem>>, vector<1x128x128xbf16>
    %60 = vector.shape_cast %59 : vector<1x128x128xbf16> to vector<128x128xbf16>
    %61 = arith.extf %60 : vector<128x128xbf16> to vector<128x128xf32>
    %62 = vector.broadcast %55 : f32 to vector<128x128xf32>
    %63 = arith.mulf %62, %61 : vector<128x128xf32>
    %64 = arith.addf %52, %63 : vector<128x128xf32>
    %c5_i32 = arith.constant 5 : i32
    %65 = arith.addi %0, %c5_i32 : i32
    %66 = arith.index_cast %65 : i32 to index
    %67 = memref.load %arg2[%66] : memref<8xf32, #tpu.memory_space<smem>>
    %c0_i32_29 = arith.constant 0 : i32
    %c0_i32_30 = arith.constant 0 : i32
    %c0_i32_31 = arith.constant 0 : i32
    %68 = tpu.memref_slice %arg6[%c0_i32_2, %c0_i32_29, %c0_i32_30, %c0_i32_31] : memref<1x8x128x128xbf16, #tpu.memory_space<vmem>> -> memref<1x8x128x128xbf16, #tpu.memory_space<vmem>>
    %69 = tpu.memref_squeeze %68 : memref<1x8x128x128xbf16, #tpu.memory_space<vmem>> -> memref<8x128x128xbf16, #tpu.memory_space<vmem>>
    %70 = arith.index_cast %c5_i32 : i32 to index
    %c0_32 = arith.constant 0 : index
    %c0_33 = arith.constant 0 : index
    %71 = vector.load %69[%70, %c0_32, %c0_33] : memref<8x128x128xbf16, #tpu.memory_space<vmem>>, vector<1x128x128xbf16>
    %72 = vector.shape_cast %71 : vector<1x128x128xbf16> to vector<128x128xbf16>
    %73 = arith.extf %72 : vector<128x128xbf16> to vector<128x128xf32>
    %74 = vector.broadcast %67 : f32 to vector<128x128xf32>
    %75 = arith.mulf %74, %73 : vector<128x128xf32>
    %76 = arith.addf %64, %75 : vector<128x128xf32>
    %c6_i32 = arith.constant 6 : i32
    %77 = arith.addi %0, %c6_i32 : i32
    %78 = arith.index_cast %77 : i32 to index
    %79 = memref.load %arg2[%78] : memref<8xf32, #tpu.memory_space<smem>>
    %c0_i32_34 = arith.constant 0 : i32
    %c0_i32_35 = arith.constant 0 : i32
    %c0_i32_36 = arith.constant 0 : i32
    %80 = tpu.memref_slice %arg6[%c0_i32_2, %c0_i32_34, %c0_i32_35, %c0_i32_36] : memref<1x8x128x128xbf16, #tpu.memory_space<vmem>> -> memref<1x8x128x128xbf16, #tpu.memory_space<vmem>>
    %81 = tpu.memref_squeeze %80 : memref<1x8x128x128xbf16, #tpu.memory_space<vmem>> -> memref<8x128x128xbf16, #tpu.memory_space<vmem>>
    %82 = arith.index_cast %c6_i32 : i32 to index
    %c0_37 = arith.constant 0 : index
    %c0_38 = arith.constant 0 : index
    %83 = vector.load %81[%82, %c0_37, %c0_38] : memref<8x128x128xbf16, #tpu.memory_space<vmem>>, vector<1x128x128xbf16>
    %84 = vector.shape_cast %83 : vector<1x128x128xbf16> to vector<128x128xbf16>
    %85 = arith.extf %84 : vector<128x128xbf16> to vector<128x128xf32>
    %86 = vector.broadcast %79 : f32 to vector<128x128xf32>
    %87 = arith.mulf %86, %85 : vector<128x128xf32>
    %88 = arith.addf %76, %87 : vector<128x128xf32>
    %c7_i32 = arith.constant 7 : i32
    %89 = arith.addi %0, %c7_i32 : i32
    %90 = arith.index_cast %89 : i32 to index
    %91 = memref.load %arg2[%90] : memref<8xf32, #tpu.memory_space<smem>>
    %c0_i32_39 = arith.constant 0 : i32
    %c0_i32_40 = arith.constant 0 : i32
    %c0_i32_41 = arith.constant 0 : i32
    %92 = tpu.memref_slice %arg6[%c0_i32_2, %c0_i32_39, %c0_i32_40, %c0_i32_41] : memref<1x8x128x128xbf16, #tpu.memory_space<vmem>> -> memref<1x8x128x128xbf16, #tpu.memory_space<vmem>>
    %93 = tpu.memref_squeeze %92 : memref<1x8x128x128xbf16, #tpu.memory_space<vmem>> -> memref<8x128x128xbf16, #tpu.memory_space<vmem>>
    %94 = arith.index_cast %c7_i32 : i32 to index
    %c0_42 = arith.constant 0 : index
    %c0_43 = arith.constant 0 : index
    %95 = vector.load %93[%94, %c0_42, %c0_43] : memref<8x128x128xbf16, #tpu.memory_space<vmem>>, vector<1x128x128xbf16>
    %96 = vector.shape_cast %95 : vector<1x128x128xbf16> to vector<128x128xbf16>
    %97 = arith.extf %96 : vector<128x128xbf16> to vector<128x128xf32>
    %98 = vector.broadcast %91 : f32 to vector<128x128xf32>
    %99 = arith.mulf %98, %97 : vector<128x128xf32>
    %100 = arith.addf %88, %99 : vector<128x128xf32>
    %c8_i32_44 = arith.constant 8 : i32
    %c0_45 = arith.constant 0 : index
    %c0_46 = arith.constant 0 : index
    %101 = vector.load %arg10[%c0_45, %c0_46] : memref<128x128xf32, #tpu.memory_space<vmem>>, vector<128x128xf32>
    tpu.vector_store %arg10[%c0_45, %c0_46], %100 {strides = array<i32>} : memref<128x128xf32, #tpu.memory_space<vmem>>, vector<128x128xf32>,
    %c0_47 = arith.constant 0 : index
    %c0_48 = arith.constant 0 : index
    %c0_49 = arith.constant 0 : index
    %c0_50 = arith.constant 0 : index
    %102 = vector.load %arg6[%c0_47, %c0_48, %c0_49, %c0_50] : memref<1x8x128x128xbf16, #tpu.memory_space<vmem>>, vector<1x8x128x128xbf16>
    %103 = vector.shape_cast %102 : vector<1x8x128x128xbf16> to vector<8x128x128xbf16>
    %c0_51 = arith.constant 0 : index
    %c0_52 = arith.constant 0 : index
    %c0_53 = arith.constant 0 : index
    %104 = vector.load %arg4[%c0_51, %c0_52, %c0_53] : memref<1x1x128xf32, #tpu.memory_space<vmem>>, vector<1x1x128xf32>
    %105 = vector.shape_cast %104 : vector<1x1x128xf32> to vector<1x128xf32>
    %106 = arith.truncf %105 : vector<1x128xf32> to vector<1x128xbf16>
    %107 = vector.shape_cast %106 : vector<1x128xbf16> to vector<1x1x128xbf16>
    %108 = vector.shape_cast %107 : vector<1x1x128xbf16> to vector<1x1x128xbf16>
    %109 = vector.broadcast %108 : vector<1x1x128xbf16> to vector<8x1x128xbf16>
    "tpu.trace_start"() <{level = 10 : i32, message = "cki,cij->ckj"}> : () -> ()
    %cst = arith.constant dense<0.000000e+00> : vector<8x1x128xf32>
    %110 = tpu.matmul %109, %103, %cst {dimension_numbers = #tpu.dot_dimension_numbers<[2], [1], [1], [2], [0, 0, 0, 1, 1, 2], [0], [0]>} : vector<8x1x128xbf16>, vector<8x128x128xbf16>, vector<8x1x128xf32> -> vector<8x1x128xf32>
    "tpu.trace_stop"() : () -> ()
    "tpu.trace_start"() <{level = 10 : i32, message = "cij,ckj->cik"}> : () -> ()
    %cst_54 = arith.constant dense<0.000000e+00> : vector<8x128x1xf32>
    %111 = tpu.matmul %103, %109, %cst_54 {dimension_numbers = #tpu.dot_dimension_numbers<[2], [2], [1], [1], [0, 0, 0, 1, 1, 1], [0], [0]>} : vector<8x128x128xbf16>, vector<8x1x128xbf16>, vector<8x128x1xf32> -> vector<8x128x1xf32>
    "tpu.trace_stop"() : () -> ()
    %112 = vector.shape_cast %110 : vector<8x1x128xf32> to vector<8x128xf32>
    %113 = vector.shape_cast %111 : vector<8x128x1xf32> to vector<8x128xf32>
    %114 = arith.addf %112, %113 : vector<8x128xf32>
    %115 = tpu.assume_multiple %0, 8 : i32
    %116 = arith.index_cast %115 : i32 to index
    %c0_55 = arith.constant 0 : index
    %117 = vector.load %arg11[%116, %c0_55] : memref<8x128xf32, #tpu.memory_space<vmem>>, vector<8x128xf32>
    tpu.vector_store %arg11[%116, %c0_55], %114 {strides = array<i32>} : memref<8x128xf32, #tpu.memory_space<vmem>>, vector<8x128xf32>,
    %c0_i32_56 = arith.constant 0 : i32
    %118 = arith.cmpi eq, %arg1, %c0_i32_56 : i32
    %119 = arith.extui %118 : i1 to i32
    %c0_i32_57 = arith.constant 0 : i32
    %120 = arith.cmpi ne, %119, %c0_i32_57 : i32
    scf.if %120 {
      %c0_58 = arith.constant 0 : index
      %c0_59 = arith.constant 0 : index
      %c0_60 = arith.constant 0 : index
      %121 = vector.load %arg4[%c0_58, %c0_59, %c0_60] : memref<1x1x128xf32, #tpu.memory_space<vmem>>, vector<1x1x128xf32>
      %122 = vector.shape_cast %121 : vector<1x1x128xf32> to vector<1x128xf32>
      %c0_61 = arith.constant 0 : index
      %c0_62 = arith.constant 0 : index
      %c0_63 = arith.constant 0 : index
      %123 = vector.load %arg5[%c0_61, %c0_62, %c0_63] : memref<1x128x1xf32, #tpu.memory_space<vmem>>, vector<1x128x1xf32>
      %124 = vector.shape_cast %123 : vector<1x128x1xf32> to vector<128x1xf32>
      %c0_64 = arith.constant 0 : index
      %c0_65 = arith.constant 0 : index
      %125 = vector.load %arg7[%c0_64, %c0_65] : memref<16x8xf32, #tpu.memory_space<vmem>>, vector<16x8xf32>
      %c0_66 = arith.constant 0 : index
      %c0_67 = arith.constant 0 : index
      %126 = vector.load %arg11[%c0_66, %c0_67] : memref<8x128xf32, #tpu.memory_space<vmem>>, vector<8x128xf32>
      %cst_68 = arith.constant dense<0.000000e+00> : vector<16x128xf32>
      %127 = tpu.matmul %125, %126, %cst_68 {dimension_numbers = #tpu.dot_dimension_numbers<[1], [0], [0], [1], [0, 0, 1, 1], [], []>, precision = #tpu.contract_precision<fp32>} : vector<16x8xf32>, vector<8x128xf32>, vector<16x128xf32> -> vector<16x128xf32>
      %c0_69 = arith.constant 0 : index
      %c0_70 = arith.constant 0 : index
      %128 = vector.load %arg8[%c0_69, %c0_70] : memref<16x2xf32, #tpu.memory_space<vmem>>, vector<16x1xf32>
      %c0_71 = arith.constant 0 : index
      %c1 = arith.constant 1 : index
      %129 = vector.load %arg8[%c0_71, %c1] : memref<16x2xf32, #tpu.memory_space<vmem>>, vector<16x1xf32>
      %130 = tpu.iota {dimensions = array<i32: 1>} : vector<1x128xi32>
      %c120_i32 = arith.constant 120 : i32
      %131 = vector.broadcast %c120_i32 : i32 to vector<1x128xi32>
      %132 = arith.cmpi slt, %130, %131 : vector<1x128xi32>
      %133 = arith.extui %132 : vector<1x128xi1> to vector<1x128xi32>
      %134 = arith.sitofp %133 : vector<1x128xi32> to vector<1x128xf32>
      %135 = vector.broadcast %128 : vector<16x1xf32> to vector<16x128xf32>
      %136 = vector.broadcast %134 : vector<1x128xf32> to vector<16x128xf32>
      %137 = arith.mulf %135, %136 : vector<16x128xf32>
      %138 = vector.broadcast %122 : vector<1x128xf32> to vector<16x128xf32>
      %139 = arith.mulf %138, %127 : vector<16x128xf32>
      %140 = arith.addf %139, %137 : vector<16x128xf32>
      %cst_72 = arith.constant dense<0.000000e+00> : vector<16xf32>
      %141 = vector.multi_reduction <add>, %140, %cst_72 [1] : vector<16x128xf32> to vector<16xf32>
      %142 = vector.shape_cast %141 : vector<16xf32> to vector<16x1xf32>
      %143 = arith.divf %129, %142 : vector<16x1xf32>
      %144 = vector.broadcast %143 : vector<16x1xf32> to vector<16x128xf32>
      %145 = arith.mulf %144, %140 : vector<16x128xf32>
      %cst_73 = arith.constant dense<0.000000e+00> : vector<128x128xf32>
      %146 = tpu.matmul %145, %140, %cst_73 {dimension_numbers = #tpu.dot_dimension_numbers<[0], [0], [1], [1], [0, 1, 1, 1], [], []>, precision = #tpu.contract_precision<fp32>} : vector<16x128xf32>, vector<16x128xf32>, vector<128x128xf32> -> vector<128x128xf32>
      %c0_74 = arith.constant 0 : index
      %c0_75 = arith.constant 0 : index
      %147 = vector.load %arg10[%c0_74, %c0_75] : memref<128x128xf32, #tpu.memory_space<vmem>>, vector<128x128xf32>
      %148 = vector.broadcast %124 : vector<128x1xf32> to vector<128x128xf32>
      %149 = vector.broadcast %122 : vector<1x128xf32> to vector<128x128xf32>
      %150 = arith.mulf %148, %149 : vector<128x128xf32>
      %151 = tpu.transpose %147, [1, 0] : vector<128x128xf32> -> vector<128x128xf32>
      %152 = arith.addf %147, %151 : vector<128x128xf32>
      %153 = arith.mulf %150, %152 : vector<128x128xf32>
      %c0_76 = arith.constant 0 : index
      %154 = memref.load %arg3[%c0_76] : memref<1xf32, #tpu.memory_space<smem>>
      %155 = vector.broadcast %154 : f32 to vector<128x128xf32>
      %156 = arith.addf %153, %155 : vector<128x128xf32>
      %157 = arith.subf %156, %146 : vector<128x128xf32>
      %158 = vector.shape_cast %157 : vector<128x128xf32> to vector<1x128x128xf32>
      %c0_77 = arith.constant 0 : index
      %c0_78 = arith.constant 0 : index
      %c0_79 = arith.constant 0 : index
      %159 = vector.load %arg9[%c0_77, %c0_78, %c0_79] : memref<1x128x128xf32, #tpu.memory_space<vmem>>, vector<1x128x128xf32>
      tpu.vector_store %arg9[%c0_77, %c0_78, %c0_79], %158 {strides = array<i32>} : memref<1x128x128xf32, #tpu.memory_space<vmem>>, vector<1x128x128xf32>,
    } else {
    }
    return
  }
  func.func @transform_0(%arg0: i32, %arg1: i32) -> i32 {
    %c0_i32 = arith.constant 0 : i32
    %c0_i32_0 = arith.constant 0 : i32
    return %c0_i32 : i32
  }
  func.func @transform_1(%arg0: i32, %arg1: i32) -> i32 {
    %c0_i32 = arith.constant 0 : i32
    %c0_i32_0 = arith.constant 0 : i32
    return %c0_i32 : i32
  }
  func.func @transform_2(%arg0: i32, %arg1: i32) -> (i32, i32, i32) {
    %c0_i32 = arith.constant 0 : i32
    %c0_i32_0 = arith.constant 0 : i32
    %c0_i32_1 = arith.constant 0 : i32
    return %arg0, %c0_i32, %c0_i32_0 : i32, i32, i32
  }
  func.func @transform_3(%arg0: i32, %arg1: i32) -> (i32, i32, i32) {
    %c0_i32 = arith.constant 0 : i32
    %c0_i32_0 = arith.constant 0 : i32
    %c0_i32_1 = arith.constant 0 : i32
    return %arg0, %c0_i32, %c0_i32_0 : i32, i32, i32
  }
  func.func @transform_4(%arg0: i32, %arg1: i32) -> (i32, i32, i32, i32) {
    %c0_i32 = arith.constant 0 : i32
    %c0_i32_0 = arith.constant 0 : i32
    %c0_i32_1 = arith.constant 0 : i32
    return %arg0, %arg1, %c0_i32, %c0_i32_0 : i32, i32, i32, i32
  }
  func.func @transform_5(%arg0: i32, %arg1: i32) -> (i32, i32) {
    %c0_i32 = arith.constant 0 : i32
    %c0_i32_0 = arith.constant 0 : i32
    %c0_i32_1 = arith.constant 0 : i32
    return %c0_i32, %c0_i32_0 : i32, i32
  }
  func.func @transform_6(%arg0: i32, %arg1: i32) -> (i32, i32) {
    %c0_i32 = arith.constant 0 : i32
    %c0_i32_0 = arith.constant 0 : i32
    %c0_i32_1 = arith.constant 0 : i32
    return %c0_i32, %c0_i32_0 : i32, i32
  }
  func.func @transform_7(%arg0: i32, %arg1: i32) -> (i32, i32, i32) {
    %c0_i32 = arith.constant 0 : i32
    %c0_i32_0 = arith.constant 0 : i32
    %c0_i32_1 = arith.constant 0 : i32
    return %arg0, %c0_i32, %c0_i32_0 : i32, i32, i32
  }
}

</mosaic_0001>

<bundles_post_ra>
// kernel: tpu_custom_call.1
= control target key start
LH: loop header
LB: loop body
LE: loop exit
PB: predicated region body
PF: predicated region fallthrough
CT: control target
= control target key end

     0   :  { %s9666_s0 = inlined_call_operand.vmem [shape: f32[8], index: 0, kind: input, shape index: {}]   ;;  %s9667_s1 = inlined_call_operand.<no memory space> [shape: f32[1], index: 1, kind: input, shape index: {}]   ;;  %s9668_s2 = inlined_call_operand.vmem [shape: f32[2,1,128], index: 2, kind: input, shape index: {}]   ;;  %s9669_s3 = inlined_call_operand.vmem [shape: f32[2,128,1], index: 3, kind: input, shape index: {}]   ;;  %s9670_s4 = inlined_call_operand.hbm [shape: bf16[2,8,128,128], index: 4, kind: input, shape index: {}]   ;;  %s9671_s5 = inlined_call_operand.vmem [shape: f32[16,8], index: 5, kind: input, shape index: {}]   ;;  %s9672_s6 = inlined_call_operand.vmem [shape: f32[16,2], index: 6, kind: input, shape index: {}]   ;;  %s9673_s7 = inlined_call_operand.hbm [shape: f32[2,128,128], index: 7, kind: output, shape index: {}]  }
   0x1   :  { %9737 = sst [smem:[#allocation46_spill]] %s9666_s0 }
   0x2   :  { %12 = sst [smem:[#allocation4]] %s9667_s1 }
   0x3   :  { %13 = vsyncpa [#allocation8], 0 }
   0x4   :  { %14 = vsyncpa [#allocation6], 0 }
   0x5   :  { %16 = vsyncpa [#allocation6 + $0x1], 0 }
   0x6   :  { %17 = vsyncpa [#allocation7], 0 }
   0x7   :  { %19 = vsyncpa [#allocation7 + $0x1], 0  ;;  %s7661_s26 = smov 0   ;;  %s7663_s27 = smov 0  }
   0x8   :  { %s7665_s28 = smov 0   ;;  %s7667_s29 = smov 0  }
   0x9   :  { %s7669_s30 = smov 0   ;;  %s7671_s8 = smov 0  }
   0xa LB: > { %s5904_s1 = sadd.s32 4294967295, %s7605_s8   ;;  %s5905_s9 = sadd.s32 4294967294, %s7605_s8   ;;  %s7605_s8 = sphi %s7671_s8, %s25_s8   ;;  %s7601_s30 = sphi %s7669_s30, %s9894_s30   ;;  %s7597_s29 = sphi %s7667_s29, %s9893_s29   ;;  %s7593_s28 = sphi %s7665_s28, %s9892_s28   ;;  %s7589_s27 = sphi %s7663_s27, %s9891_s27   ;;  %s7585_s26 = sphi %s7661_s26, %s9890_s26  }
   0xb   : > { %p147_p0 = scmp.ne.s32.totalorder %s7593_s28, %s7589_s27  ;;  %p148_p1 = scmp.eq.s32.totalorder %s7605_s8, 0 }
   0xc   : > { %p153_p2 = scmp.ne.s32.totalorder %s7589_s27, %s7585_s26  ;;  %p7699_p3 = scmp.eq.s32.totalorder %s5904_s1, 0 }
   0xd   : > { %p219_p4 = scmp.eq.s32.totalorder %s5904_s1, 1  ;;  %p7703_p5 = por %p148_p1, %p147_p0 }
   0xe   : > { %s9738_s11 = scalar_select %p7699_p3, 1, 0 }
   0xf   : > { %p225_p6 = scmp.eq.s32.totalorder %s5905_s9, 1  ;;  %p7709_p7 = por %p7699_p3, %p153_p2 }
  0x10   : > { %p7713_p8 = por %p219_p4, %p147_p0  ;;  %p5906_p10 = scmp.ge.s32.totalorder %s7605_s8, 1 }
  0x11   : > { %s9740_s13 = scalar_select %p7709_p7, 1, 0 }
  0x12   : > { %s9741_s14 = scalar_select %p7713_p8, 1, 0 }
  0x13   : > { %p7717_p9 = por %p225_p6, %p153_p2  ;;  %p232_p11 = scmp.lt.s32.totalorder %s7605_s8, 3 }
  0x14   : > { %s9743_s0 = sld [smem:[#allocation46_spill]]  ;;  %p7339_p0 = scmp.lt.s32.totalorder %s7605_s8, 2 }
  0x15   : > { %s9742_s15 = scalar_select %p7717_p9, 1, 0 }
  0x16   : > { %p7726_p12 = pnand %p5906_p10, %p232_p11  ;;  %p7736_p2 = pnand %p7339_p0, %p7703_p5 }
  0x17   : > { %s37_s22 = sadd.s32 1, %s7601_s30  ;;  %s279_s24 = sand.u32 1, %s7593_s28  }
  0x18   : > { %p7326_p1 = pneg %p7726_p12  ;;  %p7747_p6 = scmp.ge.s32.totalorder %s37_s22, 2 }
  0x1a   : > { %s245_s18 = sshll.u32 %s9743_s0, 4  ;;  %p7742_p4 = pnand %p7326_p1, %p7699_p3  ;;  %s246_s18 = int_to_ptr.vmem [resolvable:$true] %s245_s18 }
  0x1b   : > { %s7474_s25 = scalar_lea.vmem %s246_s18, 16  ;;  %p7482_p13 = scmp.lt.s32.totalorder %s246_s18, %s246_s18 }
  0x1c   : > { %p7475_p10 = scmp.ne.s32.totalorder %s246_s18, %s7474_s25  ;;  %p7476_p11 = pneg %p7742_p4 }
  0x1d   : > { %p7483_p9 = scmp.lt.s32.totalorder %s7474_s25, %s7474_s25 }
  0x1e   : > { %p7477_p5 = pnand %p7476_p11, %p7475_p10 }
  0x1f   : > { %p7484_p8 = por %p7483_p9, %p7482_p13 }
  0x20   : > { %p7478_p0 = pneg %p7477_p5 }
  0x22   : > { %p7485_p1 = pnand %p7484_p8, %p7478_p0 }
  0x24   : > { %7488 = shalt.err (!%p7485_p1)
}
  0x25   : > { %s7607_s1 = smov [#allocation5]   ;;  %s9896_s22 = smov (%p7747_p6, %s37_s22), 0 }
  0x26   : > { %7329 = dma.vmem_to_smem (!%p7742_p4), %s246_s18, 16, %s7607_s1, [#allocation8]  }
  0x27   : > { %s5909_s9 = sshll.u32 %s279_s24, 9  ;;  %s135_s12 = ssub.s32 %s7601_s30, %s9896_s22 }
  0x28   : > { %p138_p9 = scmp.eq.s32.totalorder %s135_s12, 0  ;;  %s6108_s16 = sshll.u32 %s7601_s30, 13 }
  0x29   : > { %s7766_s21 = scalar_lea.hbm %s9670_s4, %s6108_s16  ;;  %s283_s10 = scalar_lea.vmem [#allocation9], %s5909_s9 }
  0x2a   : > { %s293_s0 = sshll.u32 %s283_s10, 4  ;;  %s9748_s18 = sadd.s32 1, %s7593_s28  ;;  %s7773_s0 = int_to_ptr.vmem [resolvable:$true] %s293_s0 }
  0x2b   : > { %s7771_s23 = scalar_select %p138_p9, %s7593_s28, %s9748_s18  }
  0x2c   : > { %s7775_s1 = scalar_lea.sflag [#allocation6], %s279_s24  ;;  %s7489_s12 = scalar_lea.hbm %s7766_s21, 8192 }
  0x2d   : > { %p7490_p8 = scmp.ne.s32.totalorder %s7766_s21, %s7489_s12  ;;  %p7491_p13 = pneg %p7736_p2 }
  0x2e   : > { %s7494_s9 = scalar_lea.hbm %s9670_s4, 16384  ;;  %p7495_p10 = scmp.lt.u32.totalorder %s7766_s21, %s9670_s4 }
  0x2f   : > { %p7492_p4 = pnand %p7491_p13, %p7490_p8  ;;  %p7496_p11 = scmp.lt.u32.totalorder %s7494_s9, %s7489_s12 }
  0x30   : > { %p7498_p0 = scmp.lt.u32.totalorder %s7489_s12, %s7766_s21 }
  0x31   : > { %p7493_p6 = pneg %p7492_p4  ;;  %p7497_p5 = por %p7496_p11, %p7495_p10 }
  0x33   : > { %p7499_p1 = por %p7498_p0, %p7497_p5 }
  0x35   : > { %p7500_p9 = pnand %p7499_p1, %p7493_p6 }
  0x37   : > { %7503 = shalt.err (!%p7500_p9)
}
  0x38   : > { %s7504_s24 = scalar_lea.vmem %s7773_s0, 8192  ;;  %s7608_s18 = smov [#allocation9]  }
  0x39   : > { %p7505_p8 = scmp.ne.s32.totalorder %s7773_s0, %s7504_s24  ;;  %s7509_s16 = sshll.u32 %s7608_s18, 4  ;;  %s7510_s16 = int_to_ptr.vmem [resolvable:$false] %s7509_s16 }
  0x3a   : > { %s7511_s17 = scalar_lea.vmem %s7510_s16, 16384  ;;  %p7512_p3 = scmp.lt.s32.totalorder %s7773_s0, %s7510_s16 }
  0x3b   : > { %p7507_p4 = pnand %p7505_p8, %p7491_p13  ;;  %p7513_p10 = scmp.lt.s32.totalorder %s7511_s17, %s7504_s24 }
  0x3d   : > { %p7508_p7 = pneg %p7507_p4  ;;  %p7514_p11 = por %p7513_p10, %p7512_p3 }
  0x3f   : > { %p7515_p5 = pnand %p7514_p11, %p7508_p7 }
  0x41   : > { %7518 = shalt.err (!%p7515_p5)
}
  0x42   : > { %s7609_s12 = smov 64   ;;  %s7610_s9 = smov 4  }
  0x43   : > { %7333 = dma.hbm_to_vmem [thread:$0]  (!%p7736_p2), %s7766_s21, 8192, %s7773_s0, %s7775_s1, %s7609_s12, %s7609_s12, %s7610_s9  }
  0x44   : > { %305 = sbr.rel (%p7726_p12) target bundleno = 1950 (0x79e), region = 48 }
  0x4b   : > { %p9749_p13 = scmp.ne.s32.totalorder %s9738_s11, 0 }
  0x4d   : > { %7572 = dma.done.wait (%p9749_p13), [#allocation8], 16  }
  0x4e   : > { %7574 = vsyncadd (%p9749_p13), [#allocation8], 4294967280  ;;  %s7810_s10 = sand.u32 1, %s7589_s27   ;;  %p9750_p3 = scmp.ne.s32.totalorder %s9740_s13, 0 }
  0x4f   : > { %s5914_s25 = sshll.u32 %s7810_s10, 9  ;;  %s312_s24 = scalar_lea.sflag [#allocation6], %s7810_s10 }
  0x50   : > { %s7814_s18 = scalar_lea.vmem [#allocation9], %s5914_s25 }
  0x51   : > { %7576 = dma.done.wait (%p9750_p3), %s312_s24, 8192  }
  0x52   : > { %7578 = vsyncadd (%p9750_p3), %s312_s24, 4294959104 }
  0x53   : > { %320 = sfence }
  0x54   : > { %v7821_v0 = vld [vmem:[%s7814_s18] sm:$0xff]   ;;  %v9680_v1 = vmov 0.0   ;;  %v7830_v3 = vld [vmem:[%s7814_s18 + $0x8] sm:$0xff]   ;;  %vm7612_vm0 = vmmov 0   ;;  %v7844_v5 = vld [vmem:[%s7814_s18 + $0x10] sm:$0xff]   ;;  %p355_p7 = scmp.lt.s32.totalorder %s7597_s29, 1 }
  0x55   : > { %6700 = vmatprep.subr.bf16.mxu0 %v9680_v1  ;;  %6800 = vmatprep.subr.bf16.mxu1 %v9680_v1  ;;  %v7826_v2 = vld [vmem:[%s7814_s18 + $0x140] sm:$0xff]   ;;  %v7837_v4 = vld [vmem:[%s7814_s18 + $0x148] sm:$0xff]   ;;  %v7849_v6 = vld [vmem:[%s7814_s18 + $0x150] sm:$0xff]   ;;  %v9678_v60 = vmov 0   ;;  %vm3093_vm1 = vcmask 130112   ;;  %vm3100_vm2 = vcmask 195712  }
  0x56   : > { %6701 = vmatpush3.bf16.msra.mxu0 %v7821_v0  ;;  %6716 = vmatprep.mubr.msk.bf16.mxu0 %vm7612_vm0, %v9680_v1  ;;  %v7854_v7 = vld [vmem:[%s7814_s18 + $0x18] sm:$0xff]   ;;  %v7864_v9 = vld [vmem:[%s7814_s18 + $0x20] sm:$0xff]   ;;  %v7875_v11 = vld [vmem:[%s7814_s18 + $0x28] sm:$0xff]   ;;  %s7883_s0 = scalar_select %p355_p7, %s7597_s29, 1  ;;  %vm3107_vm3 = vcmask 261312   ;;  %vm3114_vm4 = vcmask 326912  }
  0x57   : > { %6801 = vmatpush3.bf16.msra.mxu1 %v7826_v2  ;;  %6702 = vmatprep.subr.bf16.mxu0 %v9680_v1  ;;  %v7859_v8 = vld [vmem:[%s7814_s18 + $0x158] sm:$0xff]   ;;  %v7869_v10 = vld [vmem:[%s7814_s18 + $0x160] sm:$0xff]   ;;  %v7880_v12 = vld [vmem:[%s7814_s18 + $0x168] sm:$0xff]   ;;  %vm3121_vm5 = vcmask 392512   ;;  %vm3128_vm6 = vcmask 458112   ;;  %vm3135_vm7 = vcmask 523712  }
  0x58   : > { %6802 = vmatprep.subr.bf16.mxu1 %v9680_v1  ;;  %6816 = vmatprep.mubr.msk.bf16.mxu1 %vm7612_vm0, %v9680_v1  ;;  %v7888_v13 = vld [vmem:[%s7814_s18 + $0x30] sm:$0xff]   ;;  %s7899_s19 = scalar_lea.vmem %s9668_s2, %s7883_s0  ;;  %v7903_v15 = vld [vmem:[%s7814_s18 + $0x38] sm:$0xff]   ;;  %v7421_v19 = vld [vmem:[%s7814_s18 + $0x40] sm:$0xff]   ;;  %vm3142_vm8 = vcmask 589312   ;;  %vm3149_vm9 = vcmask 654912   ;;  %vm3156_vm10 = vcmask 720512  }
  0x59   : > { %v7893_v14 = vld [vmem:[%s7814_s18 + $0x170] sm:$0xff]   ;;  %v1088_v16 = vld [vmem:[%s7899_s19] sm:$0x1]  ;;  %v7910_v17 = vld [vmem:[%s7814_s18 + $0x178] sm:$0xff]   ;;  %7399 = vset.pattern.permute.xlu1 %v9678_v60  ;;  %7400 = vset.pattern.permute.xlu0 %v9678_v60  ;;  %vm9684_vm11 = vcmask 786112   ;;  %vm3170_vm12 = vcmask 851712  }
  0x5a   : > { %6703 = vmatpush3.bf16.msra.mxu0 %v7830_v3  ;;  %v7913_v18 = vpack.c.bf16 %v1088_v16, %v1088_v16  ;;  %v7920_v20 = vld [vmem:[%s7814_s18 + $0x1c0] sm:$0xff]   ;;  %v7926_v21 = vld [vmem:[%s7814_s18 + $0x48] sm:$0xff]   ;;  %v7425_v23 = vld [vmem:[%s7814_s18 + $0x50] sm:$0xff]   ;;  %vm9683_vm13 = vcmask 917312   ;;  %vm9682_vm14 = vcmask 64512   ;;  %vm3184_vm15 = vcmask 982912  }
  0x5b   : > { %6803 = vmatpush3.bf16.msra.mxu1 %v7837_v4  ;;  %6704 = vmatprep.subr.bf16.mxu0 %v9680_v1  ;;  %v7931_v22 = vld [vmem:[%s7814_s18 + $0x1c8] sm:$0xff]   ;;  %v7943_v24 = vld [vmem:[%s7814_s18 + $0x1d0] sm:$0xff]   ;;  %v7427_v25 = vld [vmem:[%s7814_s18 + $0x58] sm:$0xff]   ;;  %s6109_s24 = sshll.u32 %s7883_s0, 7  ;;  %s402_s0 = sld [smem:[#allocation5]] }
  0x5c   : > { %6804 = vmatprep.subr.bf16.mxu1 %v9680_v1  ;;  %v7950_v26 = vld [vmem:[%s7814_s18 + $0x1d8] sm:$0xff]   ;;  %v7429_v27 = vld [vmem:[%s7814_s18 + $0x60] sm:$0xff]   ;;  %v7431_v29 = vld [vmem:[%s7814_s18 + $0x68] sm:$0xff]   ;;  %s8837_s20 = scalar_lea.vmem %s9669_s3, %s6109_s24  ;;  %s5918_s21 = sld [smem:[#allocation5 + $0x1]] }
  0x5d   : > { %v7957_v28 = vld [vmem:[%s7814_s18 + $0x1e0] sm:$0xff]   ;;  %v7964_v30 = vld [vmem:[%s7814_s18 + $0x1e8] sm:$0xff]   ;;  %v7433_v31 = vld [vmem:[%s7814_s18 + $0x70] sm:$0xff]   ;;  %s5935_s1 = sld [smem:[#allocation5 + $0x2]]  ;;  %s5952_s16 = sld [smem:[#allocation5 + $0x3]] }
  0x5e   : > { %6705 = vmatpush3.bf16.msra.mxu0 %v7844_v5  ;;  %v7971_v32 = vld [vmem:[%s7814_s18 + $0x1f0] sm:$0xff]   ;;  %v7435_v33 = vld [vmem:[%s7814_s18 + $0x78] sm:$0xff]   ;;  %v7982_v35 = vld [vmem:[%s7814_s18 + $0x80] sm:$0xff]   ;;  %s5969_s17 = sld [smem:[#allocation5 + $0x4]]  ;;  %s5986_s12 = sld [smem:[#allocation5 + $0x5]] }
  0x5f   : > { %6805 = vmatpush3.bf16.msra.mxu1 %v7849_v6  ;;  %6706 = vmatprep.subr.bf16.mxu0 %v9680_v1  ;;  %v7978_v34 = vld [vmem:[%s7814_s18 + $0x1f8] sm:$0xff]   ;;  %v7990_v36 = vld [vmem:[%s7814_s18 + $0x88] sm:$0xff]   ;;  %v7998_v37 = vld [vmem:[%s7814_s18 + $0x90] sm:$0xff]   ;;  %s6003_s9 = sld [smem:[#allocation5 + $0x6]]  ;;  %s6020_s25 = sld [smem:[#allocation5 + $0x7]] }
  0x60   : > { %6806 = vmatprep.subr.bf16.mxu1 %v9680_v1  ;;  %v8005_v38 = vld [vmem:[%s7814_s18 + $0x98] sm:$0xff]   ;;  %v8010_v39 = vld [vmem:[%s7814_s18 + $0xa0] sm:$0xff]   ;;  %v8018_v40 = vld [vmem:[%s7814_s18 + $0xa8] sm:$0xff]   ;;  %s6110_s11 = sshll.u32 %s7597_s29, 11  ;;  %s5772_s29 = scalar_lea.sflag [#allocation7], %s7810_s10 }
  0x61   : > { %v8023_v41 = vld [vmem:[%s7814_s18 + $0xb0] sm:$0xff]   ;;  %v8028_v42 = vld [vmem:[%s7814_s18 + $0xb8] sm:$0xff]   ;;  %v7445_v43 = vld [vmem:[%s7814_s18 + $0xc0] sm:$0xff]   ;;  %p9887_p2 = scmp.ne.s32.totalorder %s9741_s14, 0 }
  0x62   : > { %6707 = vmatpush3.bf16.msra.mxu0 %v7854_v7  ;;  %v7446_v44 = vld [vmem:[%s7814_s18 + $0xc8] sm:$0xff]   ;;  %v7447_v45 = vld [vmem:[%s7814_s18 + $0xd0] sm:$0xff]   ;;  %v7448_v46 = vld [vmem:[%s7814_s18 + $0xd8] sm:$0xff]  }
  0x63   : > { %6807 = vmatpush3.bf16.msra.mxu1 %v7859_v8  ;;  %6708 = vmatprep.subr.bf16.mxu0 %v9680_v1  ;;  %v7449_v47 = vld [vmem:[%s7814_s18 + $0xe0] sm:$0xff]   ;;  %v7450_v48 = vld [vmem:[%s7814_s18 + $0xe8] sm:$0xff]   ;;  %v7451_v49 = vld [vmem:[%s7814_s18 + $0xf0] sm:$0xff]  }
  0x64   : > { %6808 = vmatprep.subr.bf16.mxu1 %v9680_v1  ;;  %v7452_v50 = vld [vmem:[%s7814_s18 + $0xf8] sm:$0xff]   ;;  %v8054_v51 = vld [vmem:[%s7814_s18 + $0x100] sm:$0xff]   ;;  %v8060_v52 = vld [vmem:[%s7814_s18 + $0x108] sm:$0xff]  }
  0x65   : > { %v8067_v53 = vld [vmem:[%s7814_s18 + $0x110] sm:$0xff]   ;;  %v8073_v54 = vld [vmem:[%s7814_s18 + $0x118] sm:$0xff]   ;;  %v8078_v55 = vld [vmem:[%s7814_s18 + $0x120] sm:$0xff]  }
  0x66   : > { %6709 = vmatpush3.bf16.msra.mxu0 %v7864_v9  ;;  %v8086_v56 = vld [vmem:[%s7814_s18 + $0x128] sm:$0xff]   ;;  %v8091_v57 = vld [vmem:[%s7814_s18 + $0x130] sm:$0xff]   ;;  %v8098_v58 = vld [vmem:[%s7814_s18 + $0x138] sm:$0xff]  }
  0x67   : > { %6809 = vmatpush3.bf16.msra.mxu1 %v7869_v10  ;;  %6710 = vmatprep.subr.bf16.mxu0 %v9680_v1  ;;  %v8103_v59 = vld [vmem:[%s7814_s18 + $0x180] sm:$0xff]   ;;  %v8113_v61 = vld [vmem:[%s7814_s18 + $0x188] sm:$0xff]   ;;  %v8120_v62 = vld [vmem:[%s7814_s18 + $0x190] sm:$0xff]  }
  0x68   : > { %6810 = vmatprep.subr.bf16.mxu1 %v9680_v1  ;;  %v8127_v63 = vld [vmem:[%s7814_s18 + $0x198] sm:$0xff]  }
  0x6a   : > { %6711 = vmatpush3.bf16.msra.mxu0 %v7875_v11 }
  0x6b   : > { %6811 = vmatpush3.bf16.msra.mxu1 %v7880_v12  ;;  %6712 = vmatprep.subr.bf16.mxu0 %v9680_v1 }
  0x6c   : > { %6812 = vmatprep.subr.bf16.mxu1 %v9680_v1 }
  0x6e   : > { %6713 = vmatpush3.bf16.msra.mxu0 %v7888_v13 }
  0x6f   : > { %6813 = vmatpush3.bf16.msra.mxu1 %v7893_v14  ;;  %6714 = vmatprep.subr.bf16.mxu0 %v9680_v1 }
  0x70   : > { %6814 = vmatprep.subr.bf16.mxu1 %v9680_v1 }
  0x72   : > { %6715 = vmatpush3.bf16.msra.mxu0 %v7903_v15 }
  0x73   : > { %6815 = vmatpush3.bf16.msra.mxu1 %v7910_v17  ;;  %6720 = vmatprep.subr.bf16.mxu0 %v9680_v1 }
  0x74   : > { %6840 = vmatprep.subr.bf16.mxu1 %v9680_v1 }
  0x75   : > { %6717 = vmatmul.mubr.bf16.vlgmr.msra.gmra.mrb[0].mxu0 %v7913_v18 }
  0x76   : > { %6721 = vmatpush3.bf16.msra.mxu0 %v7421_v19  ;;  %6817 = vmatmul.mubr.bf16.vlgmr.msra.gmra.mrb[0].mxu1 %v7913_v18 }
  0x77   : > { %6841 = vmatpush3.bf16.msra.mxu1 %v7920_v20  ;;  %6722 = vmatprep.subr.bf16.mxu0 %v9680_v1 }
  0x78   : > { %6842 = vmatprep.subr.bf16.mxu1 %v9680_v1  ;;  %6736 = vmatprep.mubr.msk.bf16.mxu0 %vm7612_vm0, %v9680_v1 }
  0x79   : > { %6856 = vmatprep.mubr.msk.bf16.mxu1 %vm7612_vm0, %v9680_v1 }
  0x7a   : > { %6723 = vmatpush3.bf16.msra.mxu0 %v7926_v21 }
  0x7b   : > { %6843 = vmatpush3.bf16.msra.mxu1 %v7931_v22  ;;  %6724 = vmatprep.subr.bf16.mxu0 %v9680_v1 }
  0x7c   : > { %6844 = vmatprep.subr.bf16.mxu1 %v9680_v1 }
  0x7e   : > { %6725 = vmatpush3.bf16.msra.mxu0 %v7425_v23 }
  0x7f   : > { %6845 = vmatpush3.bf16.msra.mxu1 %v7943_v24  ;;  %6726 = vmatprep.subr.bf16.mxu0 %v9680_v1 }
  0x80   : > { %6846 = vmatprep.subr.bf16.mxu1 %v9680_v1 }
  0x82   : > { %6727 = vmatpush3.bf16.msra.mxu0 %v7427_v25 }
  0x83   : > { %6847 = vmatpush3.bf16.msra.mxu1 %v7950_v26  ;;  %6728 = vmatprep.subr.bf16.mxu0 %v9680_v1 }
  0x84   : > { %6848 = vmatprep.subr.bf16.mxu1 %v9680_v1 }
  0x86   : > { %6729 = vmatpush3.bf16.msra.mxu0 %v7429_v27 }
  0x87   : > { %6849 = vmatpush3.bf16.msra.mxu1 %v7957_v28  ;;  %6730 = vmatprep.subr.bf16.mxu0 %v9680_v1 }
  0x88   : > { %6850 = vmatprep.subr.bf16.mxu1 %v9680_v1 }
  0x8a   : > { %6731 = vmatpush3.bf16.msra.mxu0 %v7431_v29 }
  0x8b   : > { %6851 = vmatpush3.bf16.msra.mxu1 %v7964_v30  ;;  %6732 = vmatprep.subr.bf16.mxu0 %v9680_v1 }
  0x8c   : > { %6852 = vmatprep.subr.bf16.mxu1 %v9680_v1 }
  0x8e   : > { %6733 = vmatpush3.bf16.msra.mxu0 %v7433_v31 }
  0x8f   : > { %6853 = vmatpush3.bf16.msra.mxu1 %v7971_v32  ;;  %6734 = vmatprep.subr.bf16.mxu0 %v9680_v1 }
  0x90   : > { %6854 = vmatprep.subr.bf16.mxu1 %v9680_v1 }
  0x92   : > { %6735 = vmatpush3.bf16.msra.mxu0 %v7435_v33 }
  0x93   : > { %6855 = vmatpush3.bf16.msra.mxu1 %v7978_v34  ;;  %6740 = vmatprep.subr.bf16.mxu0 %v9680_v1 }
  0x94   : > { %6878 = vmatprep.subr.bf16.mxu1 %v7913_v18 }
  0x95   : > { %6737 = vmatmul.mubr.bf16.vlgmr.msra.gmra.mrb[4].mxu0 %v7913_v18 }
  0x96   : > { %6741 = vmatpush3.bf16.msra.mxu0 %v7982_v35  ;;  %6857 = vmatmul.mubr.bf16.vlgmr.msra.gmra.mrb[4].mxu1 %v7913_v18 }
  0x97   : > { %6742 = vmatprep.subr.bf16.mxu0 %v9680_v1  ;;  %6880 = vmatprep.mubr.bf16.mxu1 %v7421_v19 }
  0x98   : > { %6756 = vmatprep.mubr.msk.bf16.mxu0 %vm7612_vm0, %v9680_v1 }
  0x9a   : > { %6743 = vmatpush3.bf16.msra.mxu0 %v7990_v36 }
  0x9b   : > { %6744 = vmatprep.subr.bf16.mxu0 %v9680_v1 }
  0x9c   : > { %6879 = vmatpush3.bf16.xpose.msra.mxu1 %v7913_v18 }
  0x9d   : > { %6914 = vmatprep.subr.bf16.mxu1 %v7913_v18 }
  0x9e   : > { %6745 = vmatpush3.bf16.msra.mxu0 %v7998_v37 }
  0x9f   : > { %6746 = vmatprep.subr.bf16.mxu0 %v9680_v1 }
  0xa2   : > { %6747 = vmatpush3.bf16.msra.mxu0 %v8005_v38 }
  0xa3   : > { %6881 = vmatmul.mubr.bf16.vlgmr.msra.gmra.mrb[8].mxu1 %v7926_v21  ;;  %6748 = vmatprep.subr.bf16.mxu0 %v9680_v1 }
  0xa4   : > { %6884 = vmatprep.mubr.bf16.mxu1 %v7425_v23  ;;  %6915 = vmatpush3.bf16.xpose.msra.mxu1 %v7913_v18 }
  0xa5   : > { %6950 = vmatprep.subr.bf16.mxu1 %v7913_v18 }
  0xa6   : > { %6749 = vmatpush3.bf16.msra.mxu0 %v8010_v39 }
  0xa7   : > { %6750 = vmatprep.subr.bf16.mxu0 %v9680_v1 }
  0xaa   : > { %6751 = vmatpush3.bf16.msra.mxu0 %v8018_v40 }
  0xab   : > { %6885 = vmatmul.mubr.bf16.gmra.mrb[12].mxu1 %v7427_v25  ;;  %6752 = vmatprep.subr.bf16.mxu0 %v9680_v1 }
  0xac   : > { %6888 = vmatprep.mubr.bf16.mxu1 %v7429_v27 }
  0xae   : > { %6753 = vmatpush3.bf16.msra.mxu0 %v8023_v41 }
  0xaf   : > { %6754 = vmatprep.subr.bf16.mxu0 %v9680_v1 }
  0xb2   : > { %6755 = vmatpush3.bf16.msra.mxu0 %v8028_v42 }
  0xb3   : > { %6889 = vmatmul.mubr.bf16.gmra.mrb[16].mxu1 %v7431_v29  ;;  %6760 = vmatprep.subr.bf16.mxu0 %v9680_v1 }
  0xb4   : > { %6892 = vmatprep.mubr.bf16.mxu1 %v7433_v31 }
  0xb5   : > { %6757 = vmatmul.mubr.bf16.vlgmr.msra.gmra.mrb[8].mxu0 %v7913_v18 }
  0xb6   : > { %6761 = vmatpush3.bf16.msra.mxu0 %v7445_v43  ;;  %6776 = vmatprep.mubr.msk.bf16.mxu0 %vm7612_vm0, %v9680_v1 }
  0xb7   : > { %6762 = vmatprep.subr.bf16.mxu0 %v9680_v1 }
  0xba   : > { %6763 = vmatpush3.bf16.msra.mxu0 %v7446_v44 }
  0xbb   : > { %6893 = vmatmul.mubr.bf16.gmra.mrb[20].mxu1 %v7435_v33  ;;  %6764 = vmatprep.subr.bf16.mxu0 %v9680_v1 }
  0xbc   : > { %6916 = vmatprep.mubr.bf16.mxu1 %v7445_v43 }
  0xbe   : > { %6765 = vmatpush3.bf16.msra.mxu0 %v7447_v45 }
  0xbf   : > { %6766 = vmatprep.subr.bf16.mxu0 %v9680_v1 }
  0xc2   : > { %6767 = vmatpush3.bf16.msra.mxu0 %v7448_v46 }
  0xc3   : > { %6917 = vmatmul.mubr.bf16.vlgmr.msra.gmra.mrb[24].mxu1 %v7446_v44  ;;  %6768 = vmatprep.subr.bf16.mxu0 %v9680_v1 }
  0xc4   : > { %6920 = vmatprep.mubr.bf16.mxu1 %v7447_v45  ;;  %6951 = vmatpush3.bf16.xpose.msra.mxu1 %v7913_v18 }
  0xc5   : > { %6986 = vmatprep.subr.bf16.mxu1 %v7913_v18 }
  0xc6   : > { %6769 = vmatpush3.bf16.msra.mxu0 %v7449_v47 }
  0xc7   : > { %6770 = vmatprep.subr.bf16.mxu0 %v9680_v1 }
  0xca   : > { %6771 = vmatpush3.bf16.msra.mxu0 %v7450_v48 }
  0xcb   : > { %6921 = vmatmul.mubr.bf16.gmra.mrb[28].mxu1 %v7448_v46  ;;  %6772 = vmatprep.subr.bf16.mxu0 %v9680_v1 }
  0xcc   : > { %6924 = vmatprep.mubr.bf16.mxu1 %v7449_v47 }
  0xce   : > { %6773 = vmatpush3.bf16.msra.mxu0 %v7451_v49 }
  0xcf   : > { %6774 = vmatprep.subr.bf16.mxu0 %v9680_v1 }
  0xd2   : > { %6775 = vmatpush3.bf16.msra.mxu0 %v7452_v50 }
  0xd3   : > { %6925 = vmatmul.mubr.bf16.gmra.mrb[32].mxu1 %v7450_v48  ;;  %6780 = vmatprep.subr.bf16.mxu0 %v9680_v1 }
  0xd4   : > { %6928 = vmatprep.mubr.bf16.mxu1 %v7451_v49 }
  0xd5   : > { %6777 = vmatmul.mubr.bf16.vlgmr.msra.gmra.mrb[12].mxu0 %v7913_v18 }
  0xd6   : > { %6781 = vmatpush3.bf16.msra.mxu0 %v8054_v51  ;;  %6796 = vmatprep.mubr.msk.bf16.mxu0 %vm7612_vm0, %v9680_v1 }
  0xd7   : > { %6782 = vmatprep.subr.bf16.mxu0 %v9680_v1 }
  0xda   : > { %6783 = vmatpush3.bf16.msra.mxu0 %v8060_v52 }
  0xdb   : > { %6929 = vmatmul.mubr.bf16.gmra.mrb[36].mxu1 %v7452_v50  ;;  %6784 = vmatprep.subr.bf16.mxu0 %v9680_v1 }
  0xdc   : > { %6952 = vmatprep.mubr.bf16.mxu1 %v7826_v2  ;;  %v8132_v2 = vld [vmem:[%s7814_s18 + $0x1a0] sm:$0xff]  }
  0xde   : > { %6785 = vmatpush3.bf16.msra.mxu0 %v8067_v53 }
  0xdf   : > { %6786 = vmatprep.subr.bf16.mxu0 %v9680_v1 }
  0xe2   : > { %6787 = vmatpush3.bf16.msra.mxu0 %v8073_v54 }
  0xe3   : > { %6953 = vmatmul.mubr.bf16.vlgmr.msra.gmra.mrb[40].mxu1 %v7837_v4  ;;  %6788 = vmatprep.subr.bf16.mxu0 %v9680_v1  ;;  %v8139_v4 = vld [vmem:[%s7814_s18 + $0x1a8] sm:$0xff]  }
  0xe4   : > { %6956 = vmatprep.mubr.bf16.mxu1 %v7849_v6  ;;  %6987 = vmatpush3.bf16.xpose.msra.mxu1 %v7913_v18  ;;  %v8144_v6 = vld [vmem:[%s7814_s18 + $0x1b0] sm:$0xff]  }
  0xe6   : > { %6789 = vmatpush3.bf16.msra.mxu0 %v8078_v55 }
  0xe7   : > { %6790 = vmatprep.subr.bf16.mxu0 %v9680_v1 }
  0xea   : > { %6791 = vmatpush3.bf16.msra.mxu0 %v8086_v56 }
  0xeb   : > { %6957 = vmatmul.mubr.bf16.gmra.mrb[44].mxu1 %v7859_v8  ;;  %6792 = vmatprep.subr.bf16.mxu0 %v9680_v1  ;;  %v8151_v8 = vld [vmem:[%s7814_s18 + $0x1b8] sm:$0xff]  }
  0xec   : > { %6960 = vmatprep.mubr.bf16.mxu1 %v7869_v10 }
  0xee   : > { %6793 = vmatpush3.bf16.msra.mxu0 %v8091_v57 }
  0xef   : > { %6794 = vmatprep.subr.bf16.mxu0 %v9680_v1 }
  0xf2   : > { %6795 = vmatpush3.bf16.msra.mxu0 %v8098_v58 }
  0xf3   : > { %6961 = vmatmul.mubr.bf16.gmra.mrb[48].mxu1 %v7880_v12  ;;  %6820 = vmatprep.subr.bf16.mxu0 %v9680_v1 }
  0xf4   : > { %6964 = vmatprep.mubr.bf16.mxu1 %v7893_v14 }
  0xf5   : > { %6797 = vmatmul.mubr.bf16.vlgmr.msra.gmra.mrb[16].mxu0 %v7913_v18 }
  0xf6   : > { %6821 = vmatpush3.bf16.msra.mxu0 %v8103_v59  ;;  %6836 = vmatprep.mubr.msk.bf16.mxu0 %vm7612_vm0, %v9680_v1  ;;  %vm3191_vm0 = vcmask 1048512  }
  0xf7   : > { %6822 = vmatprep.subr.bf16.mxu0 %v9680_v1 }
  0xfa   : > { %6823 = vmatpush3.bf16.msra.mxu0 %v8113_v61 }
  0xfb   : > { %6965 = vmatmul.mubr.bf16.gmra.mrb[52].mxu1 %v7910_v17  ;;  %6824 = vmatprep.subr.bf16.mxu0 %v9680_v1 }
  0xfc   : > { %6988 = vmatprep.mubr.bf16.mxu1 %v7920_v20 }
  0xfe   : > { %6825 = vmatpush3.bf16.msra.mxu0 %v8120_v62 }
  0xff   : > { %6826 = vmatprep.subr.bf16.mxu0 %v9680_v1 }
 0x102   : > { %6827 = vmatpush3.bf16.msra.mxu0 %v8127_v63 }
 0x103   : > { %6989 = vmatmul.mubr.bf16.vlgmr.msra.gmra.mrb[56].mxu1 %v7931_v22  ;;  %6828 = vmatprep.subr.bf16.mxu0 %v9680_v1 }
 0x104   : > { %6992 = vmatprep.mubr.bf16.mxu1 %v7943_v24 }
 0x106   : > { %6829 = vmatpush3.bf16.msra.mxu0 %v8132_v2 }
 0x107   : > { %6830 = vmatprep.subr.bf16.mxu0 %v9680_v1 }
 0x10a   : > { %6831 = vmatpush3.bf16.msra.mxu0 %v8139_v4 }
 0x10b   : > { %6993 = vmatmul.mubr.bf16.gmra.mrb[60].mxu1 %v7950_v26  ;;  %6832 = vmatprep.subr.bf16.mxu0 %v9680_v1 }
 0x10c   : > { %6996 = vmatprep.mubr.bf16.mxu1 %v7957_v28 }
 0x10e   : > { %6833 = vmatpush3.bf16.msra.mxu0 %v8144_v6 }
 0x10f   : > { %6834 = vmatprep.subr.bf16.mxu0 %v9680_v1 }
 0x112   : > { %6835 = vmatpush3.bf16.msra.mxu0 %v8151_v8 }
 0x113   : > { %6997 = vmatmul.mubr.bf16.gmra.mrb[64].mxu1 %v7964_v30  ;;  %6860 = vmatprep.subr.bf16.mxu0 %v7913_v18 }
 0x114   : > { %7000 = vmatprep.mubr.bf16.mxu1 %v7971_v32 }
 0x115   : > { %6837 = vmatmul.mubr.bf16.vlgmr.msra.gmra.mrb[20].mxu0 %v7913_v18 }
 0x116   : > { %6862 = vmatprep.mubr.bf16.mxu0 %v7821_v0 }
 0x11b   : > { %7001 = vmatmul.mubr.bf16.gmra.mrb[68].mxu1 %v7978_v34  ;;  %6861 = vmatpush3.bf16.xpose.msra.mxu0 %v7913_v18 }
 0x11c   : > { %6896 = vmatprep.subr.bf16.mxu0 %v7913_v18 }
 0x122   : > { %6863 = vmatmul.mubr.bf16.vlgmr.msra.gmra.mrb[24].mxu0 %v7830_v3 }
 0x123   : > { %6866 = vmatprep.mubr.bf16.mxu0 %v7844_v5  ;;  %6897 = vmatpush3.bf16.xpose.msra.mxu0 %v7913_v18 }
 0x124   : > { %6932 = vmatprep.subr.bf16.mxu0 %v7913_v18 }
 0x12a   : > { %6867 = vmatmul.mubr.bf16.gmra.mrb[28].mxu0 %v7854_v7 }
 0x12b   : > { %6870 = vmatprep.mubr.bf16.mxu0 %v7864_v9 }
 0x132   : > { %6871 = vmatmul.mubr.bf16.gmra.mrb[32].mxu0 %v7875_v11 }
 0x133   : > { %6874 = vmatprep.mubr.bf16.mxu0 %v7888_v13 }
 0x13a   : > { %6875 = vmatmul.mubr.bf16.gmra.mrb[36].mxu0 %v7903_v15 }
 0x13b   : > { %6898 = vmatprep.mubr.bf16.mxu0 %v7982_v35 }
 0x142   : > { %6899 = vmatmul.mubr.bf16.vlgmr.msra.gmra.mrb[40].mxu0 %v7990_v36 }
 0x143   : > { %6902 = vmatprep.mubr.bf16.mxu0 %v7998_v37  ;;  %6933 = vmatpush3.bf16.xpose.msra.mxu0 %v7913_v18 }
 0x144   : > { %6968 = vmatprep.subr.bf16.mxu0 %v7913_v18 }
 0x148   : > { %v8177_v0 = vpop.f32.mrb[0].mxu0 }
 0x149   : > { %9751 = vst [vmem:[#allocation14_spill] sm:$0xff] %v8177_v0  ;;  %v6718_v3 = vpop.f32.mrb[1].mxu0  ;;  %v8179_v5 = vpop.f32.mrb[0].mxu1 }
 0x14a   : > { %9752 = vst [vmem:[#allocation15_spill] sm:$0xff] %v8179_v5  ;;  %v1175_v7 = vpop.f32.mrb[2].mxu0  ;;  %v6818_v9 = vpop.f32.mrb[1].mxu1  ;;  %6903 = vmatmul.mubr.bf16.gmra.mrb[44].mxu0 %v8005_v38 }
 0x14b   : > { %v6719_v10 = vpop.f32.mrb[3].mxu0  ;;  %v1615_v11 = vpop.f32.mrb[2].mxu1  ;;  %6906 = vmatprep.mubr.bf16.mxu0 %v8010_v39 }
 0x14c   : > { %v6819_v12 = vpop.f32.mrb[3].mxu1 }
 0x152   : > { %6907 = vmatmul.mubr.bf16.gmra.mrb[48].mxu0 %v8018_v40 }
 0x153   : > { %6910 = vmatprep.mubr.bf16.mxu0 %v8023_v41 }
 0x15a   : > { %6911 = vmatmul.mubr.bf16.gmra.mrb[52].mxu0 %v8028_v42 }
 0x15b   : > { %6934 = vmatprep.mubr.bf16.mxu0 %v8054_v51 }
 0x162   : > { %6935 = vmatmul.mubr.bf16.vlgmr.msra.gmra.mrb[56].mxu0 %v8060_v52 }
 0x163   : > { %6938 = vmatprep.mubr.bf16.mxu0 %v8067_v53  ;;  %6969 = vmatpush3.bf16.xpose.msra.mxu0 %v7913_v18 }
 0x168   : > { %v8190_v13 = vpop.f32.mrb[4].mxu0 }
 0x169   : > { %v6738_v14 = vpop.f32.mrb[5].mxu0  ;;  %v8192_v15 = vpop.f32.mrb[4].mxu1 }
 0x16a   : > { %9753 = vst [vmem:[#allocation16_spill] sm:$0xff] %v8192_v15  ;;  %v1263_v16 = vpop.f32.mrb[6].mxu0  ;;  %6939 = vmatmul.mubr.bf16.gmra.mrb[60].mxu0 %v8073_v54  ;;  %v6858_v17 = vpop.f32.mrb[5].mxu1 }
 0x16b   : > { %v6739_v19 = vpop.f32.mrb[7].mxu0  ;;  %v1791_v20 = vpop.f32.mrb[6].mxu1  ;;  %6942 = vmatprep.mubr.bf16.mxu0 %v8078_v55 }
 0x16c   : > { %v6859_v21 = vpop.f32.mrb[7].mxu1 }
 0x172   : > { %6943 = vmatmul.mubr.bf16.gmra.mrb[64].mxu0 %v8086_v56 }
 0x173   : > { %6946 = vmatprep.mubr.bf16.mxu0 %v8091_v57 }
 0x176   : > { %v6882_v22 = vpop.f32.mrb[8].mxu1 }
 0x177   : > { %2753 = vperm.xlu1 %7399, %v6882_v22   ;;  %v1925_v18 = vpop.f32.mrb[9].mxu1 }
 0x178   : > { %2747 = vperm.xlu0 %7400, %v1925_v18   ;;  %v6883_v23 = vpop.f32.mrb[10].mxu1 }
 0x179   : > { %v1928_v24 = vpop.f32.mrb[11].mxu1 }
 0x17a   : > { %6947 = vmatmul.mubr.bf16.gmra.mrb[68].mxu0 %v8098_v58 }
 0x17b   : > { %2756 = vperm.xlu1 %7399, %v6883_v23   ;;  %6970 = vmatprep.mubr.bf16.mxu0 %v8103_v59 }
 0x17c   : > { %2750 = vperm.xlu0 %7400, %v1928_v24  }
 0x17e   : > { %v6886_v25 = vpop.f32.mrb[12].mxu1 }
 0x17f   : > { %2765 = vperm.xlu1 %7399, %v6886_v25   ;;  %v1941_v26 = vpop.f32.mrb[13].mxu1 }
 0x180   : > { %2759 = vperm.xlu0 %7400, %v1941_v26   ;;  %v6887_v27 = vpop.f32.mrb[14].mxu1 }
 0x181   : > { %v1944_v28 = vpop.f32.mrb[15].mxu1 }
 0x182   : > { %6971 = vmatmul.mubr.bf16.vlgmr.msra.gmra.mrb[72].mxu0 %v8113_v61 }
 0x183   : > { %2768 = vperm.xlu1 %7399, %v6887_v27   ;;  %6974 = vmatprep.mubr.bf16.mxu0 %v8120_v62 }
 0x184   : > { %2762 = vperm.xlu0 %7400, %v1944_v28  }
 0x186   : > { %v6890_v29 = vpop.f32.mrb[16].mxu1 }
 0x187   : > { %v1957_v30 = vpop.f32.mrb[17].mxu1 }
 0x188   : > { %2777 = vperm.xlu0 %7400, %v6890_v29   ;;  %v6891_v31 = vpop.f32.mrb[18].mxu1  ;;  %v8202_v32 = vpop.f32.mrb[8].mxu0 }
 0x189   : > { %9754 = vst [vmem:[#allocation17_spill] sm:$0xff] %v8202_v32  ;;  %v1960_v33 = vpop.f32.mrb[19].mxu1  ;;  %v6758_v34 = vpop.f32.mrb[9].mxu0 }
 0x18a   : > { %v1351_v35 = vpop.f32.mrb[10].mxu0  ;;  %6975 = vmatmul.mubr.bf16.gmra.mrb[76].mxu0 %v8127_v63 }
 0x18b   : > { %v6759_v36 = vpop.f32.mrb[11].mxu0  ;;  %6978 = vmatprep.mubr.bf16.mxu0 %v8132_v2 }
 0x18c   : > { %2771 = vperm.xlu0 %7400, %v1957_v30  }
 0x18e   : > { %v6894_v37 = vpop.f32.mrb[20].mxu1 }
 0x18f   : > { %v1973_v38 = vpop.f32.mrb[21].mxu1 }
 0x190   : > { %2780 = vperm.xlu0 %7400, %v6891_v31   ;;  %v6895_v39 = vpop.f32.mrb[22].mxu1 }
 0x191   : > { %v1976_v40 = vpop.f32.mrb[23].mxu1 }
 0x192   : > { %6979 = vmatmul.mubr.bf16.gmra.mrb[80].mxu0 %v8139_v4 }
 0x193   : > { %6982 = vmatprep.mubr.bf16.mxu0 %v8144_v6 }
 0x194   : > { %2774 = vperm.xlu0 %7400, %v1960_v33  }
 0x196   : > { %v6918_v41 = vpop.f32.mrb[24].mxu1 }
 0x197   : > { %v2119_v42 = vpop.f32.mrb[25].mxu1 }
 0x198   : > { %2789 = vperm.xlu0 %7400, %v6894_v37   ;;  %v6919_v43 = vpop.f32.mrb[26].mxu1  ;;  %2843 = vperm.xlu1 %7399, %v2119_v42  }
 0x199   : > { %v2122_v44 = vpop.f32.mrb[27].mxu1 }
 0x19a   : > { %6983 = vmatmul.mubr.bf16.gmra.mrb[84].mxu0 %v8151_v8 }
 0x19c   : > { %2783 = vperm.xlu0 %7400, %v1973_v38  }
 0x19e   : > { %v6922_v45 = vpop.f32.mrb[28].mxu1 }
 0x19f   : > { %v2135_v46 = vpop.f32.mrb[29].mxu1 }
 0x1a0   : > { %2792 = vperm.xlu0 %7400, %v6895_v39   ;;  %2855 = vperm.xlu1 %7399, %v2135_v46   ;;  %v6923_v47 = vpop.f32.mrb[30].mxu1 }
 0x1a1   : > { %v2138_v48 = vpop.f32.mrb[31].mxu1 }
 0x1a4   : > { %2786 = vperm.xlu0 %7400, %v1976_v40   ;;  %2858 = vperm.xlu1 %7399, %v2138_v48  }
 0x1a6   : > { %v6926_v49 = vpop.f32.mrb[32].mxu1 }
 0x1a7   : > { %v2151_v50 = vpop.f32.mrb[33].mxu1 }
 0x1a8   : > { %2849 = vperm.xlu0 %7400, %v6918_v41   ;;  %v6927_v51 = vpop.f32.mrb[34].mxu1  ;;  %v8209_v52 = vpop.f32.mrb[12].mxu0 }
 0x1a9   : > { %9755 = vst [vmem:[#allocation18_spill] sm:$0xff] %v8209_v52  ;;  %v2154_v53 = vpop.f32.mrb[35].mxu1  ;;  %v6778_v54 = vpop.f32.mrb[13].mxu0 }
 0x1aa   : > { %v1439_v55 = vpop.f32.mrb[14].mxu0 }
 0x1ab   : > { %v6779_v56 = vpop.f32.mrb[15].mxu0 }
 0x1ac   : > { %2852 = vperm.xlu0 %7400, %v6919_v43  }
 0x1ae   : > { %v6930_v57 = vpop.f32.mrb[36].mxu1 }
 0x1af   : > { %2885 = vperm.xlu1 %7399, %v6930_v57   ;;  %v2167_v58 = vpop.f32.mrb[37].mxu1 }
 0x1b0   : > { %2846 = vperm.xlu0 %7400, %v2122_v44   ;;  %v6931_v59 = vpop.f32.mrb[38].mxu1 }
 0x1b1   : > { %v2170_v61 = vpop.f32.mrb[39].mxu1 }
 0x1b3   : > { %2888 = vperm.xlu1 %7399, %v6931_v59  }
 0x1b4   : > { %2861 = vperm.xlu0 %7400, %v6922_v45  }
 0x1b6   : > { %v6954_v62 = vpop.f32.mrb[40].mxu1 }
 0x1b7   : > { %2945 = vperm.xlu1 %7399, %v6954_v62   ;;  %v2313_v63 = vpop.f32.mrb[41].mxu1 }
 0x1b8   : > { %2864 = vperm.xlu0 %7400, %v6923_v47   ;;  %v6955_v2 = vpop.f32.mrb[42].mxu1 }
 0x1b9   : > { %v2316_v4 = vpop.f32.mrb[43].mxu1 }
 0x1bb   : > { %2948 = vperm.xlu1 %7399, %v6955_v2  }
 0x1bc   : > { %2873 = vperm.xlu0 %7400, %v6926_v49  }
 0x1be   : > { %v6958_v6 = vpop.f32.mrb[44].mxu1 }
 0x1bf   : > { %2942 = vperm.xlu1 %7399, %v2316_v4   ;;  %v2329_v8 = vpop.f32.mrb[45].mxu1 }
 0x1c0   : > { %2867 = vperm.xlu0 %7400, %v2151_v50   ;;  %v6959_v3 = vpop.f32.mrb[46].mxu1 }
 0x1c1   : > { %v2332_v7 = vpop.f32.mrb[47].mxu1 }
 0x1c4   : > { %2876 = vperm.xlu0 %7400, %v6927_v51  }
 0x1c6   : > { %v6962_v9 = vpop.f32.mrb[48].mxu1 }
 0x1c7   : > { %v2345_v10 = vpop.f32.mrb[49].mxu1 }
 0x1c8   : > { %2870 = vperm.xlu0 %7400, %v2154_v53   ;;  %v6963_v11 = vpop.f32.mrb[50].mxu1  ;;  %v8211_v12 = vpop.f32.mrb[16].mxu0 }
 0x1c9   : > { %9756 = vst [vmem:[#allocation19_spill] sm:$0xff] %v8211_v12  ;;  %v2348_v14 = vpop.f32.mrb[51].mxu1  ;;  %v6798_v16 = vpop.f32.mrb[17].mxu0 }
 0x1ca   : > { %v1527_v17 = vpop.f32.mrb[18].mxu0 }
 0x1cb   : > { %v6799_v19 = vpop.f32.mrb[19].mxu0 }
 0x1cc   : > { %2879 = vperm.xlu0 %7400, %v2167_v58  }
 0x1ce   : > { %v6966_v20 = vpop.f32.mrb[52].mxu1 }
 0x1cf   : > { %2981 = vperm.xlu1 %7399, %v6966_v20   ;;  %v2361_v21 = vpop.f32.mrb[53].mxu1 }
 0x1d0   : > { %2882 = vperm.xlu0 %7400, %v2170_v61   ;;  %v6967_v22 = vpop.f32.mrb[54].mxu1 }
 0x1d1   : > { %v2364_v18 = vpop.f32.mrb[55].mxu1 }
 0x1d3   : > { %2975 = vperm.xlu1 %7399, %v2361_v21  }
 0x1d4   : > { %2939 = vperm.xlu0 %7400, %v2313_v63  }
 0x1d6   : > { %v6990_v23 = vpop.f32.mrb[56].mxu1 }
 0x1d7   : > { %2978 = vperm.xlu1 %7399, %v2364_v18   ;;  %v2507_v24 = vpop.f32.mrb[57].mxu1 }
 0x1d8   : > { %2957 = vperm.xlu0 %7400, %v6958_v6   ;;  %v6991_v25 = vpop.f32.mrb[58].mxu1 }
 0x1d9   : > { %v2510_v26 = vpop.f32.mrb[59].mxu1 }
 0x1db   : > { %3035 = vperm.xlu1 %7399, %v2507_v24  }
 0x1dc   : > { %2951 = vperm.xlu0 %7400, %v2329_v8  }
 0x1de   : > { %v6994_v27 = vpop.f32.mrb[60].mxu1 }
 0x1df   : > { %v2523_v28 = vpop.f32.mrb[61].mxu1 }
 0x1e0   : > { %2960 = vperm.xlu0 %7400, %v6959_v3   ;;  %v6995_v29 = vpop.f32.mrb[62].mxu1 }
 0x1e1   : > { %v2526_v30 = vpop.f32.mrb[63].mxu1 }
 0x1e4   : > { %2954 = vperm.xlu0 %7400, %v2332_v7  }
 0x1e6   : > { %v6998_v31 = vpop.f32.mrb[64].mxu1 }
 0x1e7   : > { %3065 = vperm.xlu1 %7399, %v6998_v31   ;;  %v2539_v33 = vpop.f32.mrb[65].mxu1 }
 0x1e8   : > { %2969 = vperm.xlu0 %7400, %v6962_v9   ;;  %v6999_v34 = vpop.f32.mrb[66].mxu1  ;;  %v8213_v35 = vpop.f32.mrb[20].mxu0 }
 0x1e9   : > { %9757 = vst [vmem:[#allocation20_spill] sm:$0xff] %v8213_v35  ;;  %v8215_v36 = vpop.f32.mrb[67].mxu1  ;;  %v6838_v37 = vpop.f32.mrb[21].mxu0 }
 0x1ea   : > { %v1703_v38 = vpop.f32.mrb[22].mxu0 }
 0x1eb   : > { %3068 = vperm.xlu1 %7399, %v6999_v34   ;;  %v6839_v39 = vpop.f32.mrb[23].mxu0 }
 0x1ec   : > { %2963 = vperm.xlu0 %7400, %v2345_v10  }
 0x1ee   : > { %v8217_v40 = vpop.f32.mrb[68].mxu1 }
 0x1ef   : > { %v2555_v41 = vpop.f32.mrb[69].mxu1 }
 0x1f0   : > { %2972 = vperm.xlu0 %7400, %v6963_v11   ;;  %3071 = vperm.xlu1 %7399, %v2555_v41   ;;  %v8219_v42 = vpop.f32.mrb[70].mxu1 }
 0x1f1   : > { %v2558_v43 = vpop.f32.mrb[71].mxu1 }
 0x1f4   : > { %2966 = vperm.xlu0 %7400, %v2348_v14  }
 0x1f5   : > { %v6864_v44 = vpop.f32.mrb[24].mxu0 }
 0x1f6   : > { %2705 = vperm.xlu1 %7399, %v6864_v44   ;;  %v1828_v45 = vpop.f32.mrb[25].mxu0  ;;  %v8235_v3 = vpop.permute.xlu1 %2753 }
 0x1f7   : > { %v8221_v46 = vpop.permute.xlu0 %2747  ;;  %v6865_v47 = vpop.f32.mrb[26].mxu0 }
 0x1f8   : > { %2984 = vperm.xlu0 %7400, %v6967_v22   ;;  %v1831_v48 = vpop.f32.mrb[27].mxu0 }
 0x1fa   : > { %2699 = vperm.xlu1 %7399, %v1828_v45   ;;  %v8239_v11 = vpop.permute.xlu1 %2756 }
 0x1fb   : > { %v8223_v49 = vpop.permute.xlu0 %2750 }
 0x1fc   : > { %3041 = vperm.xlu0 %7400, %v6990_v23  }
 0x1fd   : > { %v6868_v50 = vpop.f32.mrb[28].mxu0 }
 0x1fe   : > { %2708 = vperm.xlu1 %7399, %v6865_v47   ;;  %v1844_v51 = vpop.f32.mrb[29].mxu0  ;;  %v8245_v21 = vpop.permute.xlu1 %2765 }
 0x1ff   : > { %v8225_v53 = vpop.permute.xlu0 %2759  ;;  %v6869_v54 = vpop.f32.mrb[30].mxu0 }
 0x200   : > { %3044 = vperm.xlu0 %7400, %v6991_v25   ;;  %v1847_v55 = vpop.f32.mrb[31].mxu0 }
 0x202   : > { %2717 = vperm.xlu1 %7399, %v6868_v50  }
 0x203   : > { %v8227_v56 = vpop.permute.xlu0 %2762 }
 0x204   : > { %3038 = vperm.xlu0 %7400, %v2510_v26   ;;  %v8250_v26 = vpop.permute.xlu1 %2768 }
 0x205   : > { %v6872_v57 = vpop.f32.mrb[32].mxu0 }
 0x206   : > { %2720 = vperm.xlu1 %7399, %v6869_v54   ;;  %v1860_v58 = vpop.f32.mrb[33].mxu0 }
 0x207   : > { %v8229_v59 = vpop.permute.xlu0 %2777  ;;  %v6873_v61 = vpop.f32.mrb[34].mxu0 }
 0x208   : > { %3053 = vperm.xlu0 %7400, %v6994_v27   ;;  %v1863_v62 = vpop.f32.mrb[35].mxu0 }
 0x20a   : > { %2729 = vperm.xlu1 %7399, %v6872_v57  }
 0x20b   : > { %v8231_v63 = vpop.permute.xlu0 %2771 }
 0x20c   : > { %3047 = vperm.xlu0 %7400, %v2523_v28  }
 0x20d   : > { %v6876_v2 = vpop.f32.mrb[36].mxu0 }
 0x20e   : > { %2723 = vperm.xlu1 %7399, %v1860_v58   ;;  %v1876_v4 = vpop.f32.mrb[37].mxu0 }
 0x20f   : > { %v8233_v6 = vpop.permute.xlu0 %2780  ;;  %v6877_v8 = vpop.f32.mrb[38].mxu0 }
 0x210   : > { %3056 = vperm.xlu0 %7400, %v6995_v29   ;;  %v1879_v7 = vpop.f32.mrb[39].mxu0 }
 0x212   : > { %2732 = vperm.xlu1 %7399, %v6873_v61  }
 0x213   : > { %v8237_v9 = vpop.permute.xlu0 %2774 }
 0x214   : > { %3050 = vperm.xlu0 %7400, %v2526_v30  }
 0x215   : > { %v6900_v10 = vpop.f32.mrb[40].mxu0 }
 0x216   : > { %2726 = vperm.xlu1 %7399, %v1863_v62   ;;  %v2022_v14 = vpop.f32.mrb[41].mxu0 }
 0x217   : > { %v8241_v16 = vpop.permute.xlu0 %2789  ;;  %v6901_v17 = vpop.f32.mrb[42].mxu0 }
 0x218   : > { %3059 = vperm.xlu0 %7400, %v2539_v33   ;;  %v2025_v19 = vpop.f32.mrb[43].mxu0  ;;  %v8254_v29 = vpop.permute.xlu1 %2843 }
 0x21a   : > { %2741 = vperm.xlu1 %7399, %v6876_v2  }
 0x21b   : > { %v8243_v20 = vpop.permute.xlu0 %2783 }
 0x21c   : > { %3062 = vperm.xlu0 %7400, %v8215_v36  }
 0x21d   : > { %v6904_v22 = vpop.f32.mrb[44].mxu0 }
 0x21e   : > { %2735 = vperm.xlu1 %7399, %v1876_v4   ;;  %v2038_v18 = vpop.f32.mrb[45].mxu0 }
 0x21f   : > { %v8248_v23 = vpop.permute.xlu0 %2792  ;;  %v6905_v24 = vpop.f32.mrb[46].mxu0 }
 0x220   : > { %3074 = vperm.xlu0 %7400, %v2558_v43   ;;  %v2041_v25 = vpop.f32.mrb[47].mxu0  ;;  %v8258_v36 = vpop.permute.xlu1 %2855 }
 0x222   : > { %2738 = vperm.xlu1 %7399, %v1879_v7  }
 0x223   : > { %v8252_v27 = vpop.permute.xlu0 %2786 }
 0x224   : > { %2702 = vperm.xlu0 %7400, %v1831_v48   ;;  %v8264_v44 = vpop.permute.xlu1 %2858 }
 0x225   : > { %v6908_v28 = vpop.f32.mrb[48].mxu0 }
 0x226   : > { %2795 = vperm.xlu1 %7399, %v2022_v14   ;;  %v2054_v30 = vpop.f32.mrb[49].mxu0 }
 0x227   : > { %v8256_v31 = vpop.permute.xlu0 %2849  ;;  %v6909_v33 = vpop.f32.mrb[50].mxu0 }
 0x228   : > { %2711 = vperm.xlu0 %7400, %v1844_v51   ;;  %v2057_v34 = vpop.f32.mrb[51].mxu0 }
 0x22a   : > { %2804 = vperm.xlu1 %7399, %v6901_v17  }
 0x22b   : > { %v8260_v37 = vpop.permute.xlu0 %2852 }
 0x22c   : > { %2714 = vperm.xlu0 %7400, %v1847_v55  }
 0x22d   : > { %v6912_v38 = vpop.f32.mrb[52].mxu0 }
 0x22e   : > { %2807 = vperm.xlu1 %7399, %v2038_v18   ;;  %v2070_v39 = vpop.f32.mrb[53].mxu0  ;;  %v8268_v48 = vpop.permute.xlu1 %2885 }
 0x22f   : > { %v8262_v41 = vpop.permute.xlu0 %2846  ;;  %v6913_v43 = vpop.f32.mrb[54].mxu0  ;;  %9758 = vst [vmem:[#allocation21_spill] sm:$0xff] %v8268_v48 }
 0x230   : > { %2744 = vperm.xlu0 %7400, %v6877_v8   ;;  %v2073_v45 = vpop.f32.mrb[55].mxu0 }
 0x232   : > { %2816 = vperm.xlu1 %7399, %v6905_v24   ;;  %v8272_v58 = vpop.permute.xlu1 %2888 }
 0x233   : > { %v8266_v47 = vpop.permute.xlu0 %2861  ;;  %9759 = vst [vmem:[#allocation22_spill] sm:$0xff] %v8272_v58 }
 0x234   : > { %2801 = vperm.xlu0 %7400, %v6900_v10  }
 0x235   : > { %v6936_v50 = vpop.f32.mrb[56].mxu0 }
 0x236   : > { %2825 = vperm.xlu1 %7399, %v6908_v28   ;;  %v2216_v51 = vpop.f32.mrb[57].mxu0  ;;  %v8278_v7 = vpop.permute.xlu1 %2945 }
 0x237   : > { %v8270_v54 = vpop.permute.xlu0 %2864  ;;  %v6937_v55 = vpop.f32.mrb[58].mxu0  ;;  %9762 = vst [vmem:[#allocation25_spill] sm:$0xff] %v8278_v7 }
 0x238   : > { %2798 = vperm.xlu0 %7400, %v2025_v19   ;;  %v2219_v57 = vpop.f32.mrb[59].mxu0 }
 0x23a   : > { %2819 = vperm.xlu1 %7399, %v2054_v30   ;;  %v8282_v19 = vpop.permute.xlu1 %2948 }
 0x23b   : > { %v8274_v61 = vpop.permute.xlu0 %2873  ;;  %9764 = vst [vmem:[#allocation27_spill] sm:$0xff] %v8282_v19 }
 0x23c   : > { %9760 = vst [vmem:[#allocation23_spill] sm:$0xff] %v8274_v61  ;;  %2813 = vperm.xlu0 %7400, %v6904_v22  }
 0x23d   : > { %v6940_v62 = vpop.f32.mrb[60].mxu0 }
 0x23e   : > { %2828 = vperm.xlu1 %7399, %v6909_v33   ;;  %v2232_v2 = vpop.f32.mrb[61].mxu0  ;;  %v8288_v33 = vpop.permute.xlu1 %2942 }
 0x23f   : > { %v8276_v4 = vpop.permute.xlu0 %2867  ;;  %v6941_v8 = vpop.f32.mrb[62].mxu0  ;;  %9767 = vst [vmem:[#allocation30_spill] sm:$0xff] %v8288_v33 }
 0x240   : > { %9761 = vst [vmem:[#allocation24_spill] sm:$0xff] %v8276_v4  ;;  %2810 = vperm.xlu0 %7400, %v2041_v25   ;;  %v2235_v10 = vpop.f32.mrb[63].mxu0 }
 0x242   : > { %2822 = vperm.xlu1 %7399, %v2057_v34  }
 0x243   : > { %v8280_v14 = vpop.permute.xlu0 %2876 }
 0x244   : > { %9763 = vst [vmem:[#allocation26_spill] sm:$0xff] %v8280_v14  ;;  %2840 = vperm.xlu0 %7400, %v6913_v43  }
 0x245   : > { %v6944_v17 = vpop.f32.mrb[64].mxu0 }
 0x246   : > { %2837 = vperm.xlu1 %7399, %v6912_v38   ;;  %v2248_v18 = vpop.f32.mrb[65].mxu0 }
 0x247   : > { %v8284_v22 = vpop.permute.xlu0 %2870  ;;  %v6945_v24 = vpop.f32.mrb[66].mxu0 }
 0x248   : > { %9765 = vst [vmem:[#allocation28_spill] sm:$0xff] %v8284_v22  ;;  %2900 = vperm.xlu0 %7400, %v6937_v55   ;;  %v2251_v28 = vpop.f32.mrb[67].mxu0 }
 0x24a   : > { %2831 = vperm.xlu1 %7399, %v2070_v39  }
 0x24b   : > { %v8286_v30 = vpop.permute.xlu0 %2879 }
 0x24c   : > { %9766 = vst [vmem:[#allocation29_spill] sm:$0xff] %v8286_v30  ;;  %2894 = vperm.xlu0 %7400, %v2219_v57  }
 0x24d   : > { %v6948_v25 = vpop.f32.mrb[68].mxu0 }
 0x24e   : > { %2834 = vperm.xlu1 %7399, %v2073_v45   ;;  %v2264_v34 = vpop.f32.mrb[69].mxu0  ;;  %v8292_v1 = vpop.permute.xlu1 %2981 }
 0x24f   : > { %v8290_v43 = vpop.permute.xlu0 %2882  ;;  %v6949_v60 = vpop.f32.mrb[70].mxu0  ;;  %9769 = vst [vmem:[#allocation32_spill] sm:$0xff] %v8292_v1 }
 0x250   : > { %9768 = vst [vmem:[#allocation31_spill] sm:$0xff] %v8290_v43  ;;  %2903 = vperm.xlu0 %7400, %v2232_v2   ;;  %v2267_v38 = vpop.f32.mrb[71].mxu0 }
 0x252   : > { %2897 = vperm.xlu1 %7399, %v6936_v50   ;;  %v8296_v55 = vpop.permute.xlu1 %2975 }
 0x253   : > { %v8294_v15 = vpop.permute.xlu0 %2939  ;;  %9771 = vst [vmem:[#allocation34_spill] sm:$0xff] %v8296_v55 }
 0x254   : > { %9770 = vst [vmem:[#allocation33_spill] sm:$0xff] %v8294_v15  ;;  %2933 = vperm.xlu0 %7400, %v6948_v25  }
 0x255   : > { %v6972_v39 = vpop.f32.mrb[72].mxu0 }
 0x256   : > { %2891 = vperm.xlu1 %7399, %v2216_v51   ;;  %v2410_v35 = vpop.f32.mrb[73].mxu0  ;;  %v8302_v1 = vpop.permute.xlu1 %2978 }
 0x257   : > { %v8298_v57 = vpop.permute.xlu0 %2957  ;;  %v6973_v45 = vpop.f32.mrb[74].mxu0  ;;  %9774 = vst [vmem:[#allocation37_spill] sm:$0xff] %v8302_v1 }
 0x258   : > { %9772 = vst [vmem:[#allocation35_spill] sm:$0xff] %v8298_v57  ;;  %2936 = vperm.xlu0 %7400, %v6949_v60   ;;  %v2413_v12 = vpop.f32.mrb[75].mxu0 }
 0x25a   : > { %2909 = vperm.xlu1 %7399, %v6940_v62   ;;  %v3036_v57 = vpop.permute.xlu1 %3035 }
 0x25b   : > { %v8300_v5 = vpop.permute.xlu0 %2951 }
 0x25c   : > { %9773 = vst [vmem:[#allocation36_spill] sm:$0xff] %v8300_v5  ;;  %2930 = vperm.xlu0 %7400, %v2267_v38  }
 0x25d   : > { %v6976_v50 = vpop.f32.mrb[76].mxu0 }
 0x25e   : > { %2912 = vperm.xlu1 %7399, %v6941_v8   ;;  %v8304_v2 = vpop.f32.mrb[77].mxu0 }
 0x25f   : > { %v8306_v25 = vpop.permute.xlu0 %2960  ;;  %v8308_v55 = vpop.f32.mrb[78].mxu0 }
 0x260   : > { %9775 = vst [vmem:[#allocation38_spill] sm:$0xff] %v8306_v25  ;;  %2993 = vperm.xlu0 %7400, %v6972_v39   ;;  %v8310_v51 = vpop.f32.mrb[79].mxu0 }
 0x262   : > { %2906 = vperm.xlu1 %7399, %v2235_v10  }
 0x263   : > { %v8312_v60 = vpop.permute.xlu0 %2954 }
 0x264   : > { %9776 = vst [vmem:[#allocation39_spill] sm:$0xff] %v8312_v60  ;;  %2987 = vperm.xlu0 %7400, %v2410_v35  }
 0x265   : > { %v8314_v62 = vpop.f32.mrb[80].mxu0 }
 0x266   : > { %v8316_v1 = vpop.permute.xlu1 %3065  ;;  %2921 = vperm.xlu1 %7399, %v6944_v17   ;;  %v8318_v8 = vpop.f32.mrb[81].mxu0 }
 0x267   : > { %v8320_v38 = vpop.permute.xlu0 %2969  ;;  %v6981_v25 = vpop.f32.mrb[82].mxu0 }
 0x268   : > { %9777 = vst [vmem:[#allocation40_spill] sm:$0xff] %v8320_v38  ;;  %3020 = vperm.xlu0 %7400, %v6981_v25   ;;  %v8322_v19 = vpop.f32.mrb[83].mxu0 }
 0x26a   : > { %2915 = vperm.xlu1 %7399, %v2248_v18   ;;  %v8324_v39 = vpop.permute.xlu1 %3068 }
 0x26b   : > { %v8326_v10 = vpop.permute.xlu0 %2963 }
 0x26c   : > { %9778 = vst [vmem:[#allocation41_spill] sm:$0xff] %v8326_v10  ;;  %v3082_v10 = vlaneseq }
 0x26d   : > { %v8328_v60 = vpop.f32.mrb[84].mxu0 }
 0x26e   : > { %2924 = vperm.xlu1 %7399, %v6945_v24   ;;  %v2458_v35 = vpop.f32.mrb[85].mxu0  ;;  %v8346_v24 = vld [vmem:[%s9672_s6] sm:$0xff] }
 0x26f   : > { %v8330_v5 = vpop.permute.xlu0 %2972  ;;  %3023 = vperm.xlu0 %7400, %v2458_v35   ;;  %v8332_v17 = vpop.f32.mrb[86].mxu0  ;;  %9782 = vst [vmem:[#allocation45_spill] sm:$0xff] %v8346_v24 }
 0x270   : > { %9779 = vst [vmem:[#allocation42_spill] sm:$0xff] %v8330_v5  ;;  %v8334_v7 = vpop.permute.xlu1 %3071  ;;  %v2461_v38 = vpop.f32.mrb[87].mxu0 }
 0x272   : > { %2918 = vperm.xlu1 %7399, %v2251_v28   ;;  %v8350_v28 = vand.u32 127, %v3082_v10 }
 0x273   : > { %v8336_v25 = vpop.permute.xlu0 %2966  ;;  %3026 = vperm.xlu0 %7400, %v2461_v38  }
 0x274   : > { %9780 = vst [vmem:[#allocation43_spill] sm:$0xff] %v8336_v25  ;;  %v3102_v32 = vadd.s32 4294967272, %v8350_v28 }
 0x275   : > { %v8338_v18 = vpop.permute.xlu1 %2705 }
 0x276   : > { %2927 = vperm.xlu1 %7399, %v2264_v34   ;;  %v8355_v34 = vshrl.u32 %v3082_v10, 7 }
 0x277   : > { %v8340_v33 = vpop.permute.xlu0 %2984  ;;  %3077 = vperm.xlu0 %7400, %v8217_v40   ;;  %v3095_v40 = vadd.s32 4294967280, %v8350_v28 }
 0x278   : > { %9781 = vst [vmem:[#allocation44_spill] sm:$0xff] %v8340_v33  ;;  %v3088_v33 = vadd.s32 4294967288, %v8350_v28 }
 0x279   : > { %v8348_v35 = vpop.permute.xlu1 %2699  ;;  %v8370_v10 = vsub.s32 %v3095_v40, %v8355_v34 }
 0x27a   : > { %2996 = vperm.xlu1 %7399, %v6973_v45   ;;  %v8364_v45 = vsub.s32 %v8350_v28, %v8355_v34 }
 0x27b   : > { %v3042_v5 = vpop.permute.xlu0 %3041  ;;  %4320 = vperm.xlu0 %7400, %v8346_v24   ;;  %v8367_v24 = vsub.s32 %v3088_v33, %v8355_v34  ;;  %v3109_v33 = vadd.s32 4294967264, %v8350_v28 }
 0x27c   : > { %v3670_v58 = vrot.slane %v3036_v57, %v8364_v45  ;;  %v3679_v43 = vrot.slane %v3042_v5, %v8370_v10 }
 0x27d   : > { %v8353_v38 = vpop.permute.xlu1 %2708  ;;  %v8389_v5 = vsub.s32 %v3109_v33, %v8355_v34  ;;  %v3123_v33 = vadd.s32 4294967248, %v8350_v28 }
 0x27e   : > { %2990 = vperm.xlu1 %7399, %v2413_v12   ;;  %v8373_v12 = vsub.s32 %v3102_v32, %v8355_v34 }
 0x27f   : > { %v3045_v25 = vpop.permute.xlu0 %3044 }
 0x281   : > { %v8360_v15 = vpop.permute.xlu1 %2717 }
 0x282   : > { %3005 = vperm.xlu1 %7399, %v6976_v50   ;;  %v3684_v50 = vrot.slane %v3045_v25, %v8373_v12  ;;  %v3200_v25 = vrot.slane %v8223_v49, %v8367_v24 }
 0x283   : > { %v3039_v52 = vpop.permute.xlu0 %3038 }
 0x284   : > { %v3674_v48 = vrot.slane %v3039_v52, %v8367_v24 }
 0x285   : > { %v8378_v30 = vpop.permute.xlu1 %2720 }
 0x286   : > { %v3675_v40 = vsel %vm3093_vm1, %v3674_v48, %v3670_v58  ;;  %2999 = vperm.xlu1 %7399, %v8304_v2   ;;  %v3196_v58 = vrot.slane %v8221_v46, %v8364_v45 }
 0x287   : > { %v3680_v32 = vsel %vm3100_vm2, %v3679_v43, %v3675_v40  ;;  %v3054_v57 = vpop.permute.xlu0 %3053  ;;  %v3116_v43 = vadd.s32 4294967256, %v8350_v28  ;;  %v3130_v40 = vadd.s32 4294967240, %v8350_v28 }
 0x288   : > { %v3685_v52 = vsel %vm3107_vm3, %v3684_v50, %v3680_v32 }
 0x289   : > { %v8386_v14 = vpop.permute.xlu1 %2729  ;;  %v8408_v46 = vsub.s32 %v3116_v43, %v8355_v34 }
 0x28a   : > { %3008 = vperm.xlu1 %7399, %v8308_v55   ;;  %v3201_v55 = vsel %vm3093_vm1, %v3200_v25, %v3196_v58  ;;  %v8418_v25 = vsub.s32 %v3123_v33, %v8355_v34  ;;  %v8423_v58 = vsub.s32 %v3130_v40, %v8355_v34 }
 0x28b   : > { %v3048_v61 = vpop.permute.xlu0 %3047 }
 0x28c   : > { %v3689_v48 = vrot.slane %v3048_v61, %v8389_v5  ;;  %v3205_v61 = vrot.slane %v8235_v3, %v8370_v10  ;;  %v3699_v33 = vrot.slane %v3054_v57, %v8418_v25 }
 0x28d   : > { %v8398_v2 = vpop.permute.xlu1 %2723 }
 0x28e   : > { %v3690_v50 = vsel %vm3114_vm4, %v3689_v48, %v3685_v52  ;;  %3002 = vperm.xlu1 %7399, %v8310_v51   ;;  %v3206_v22 = vsel %vm3100_vm2, %v3205_v61, %v3201_v55  ;;  %v3137_v52 = vadd.s32 4294967232, %v8350_v28  ;;  %v3210_v51 = vrot.slane %v8239_v11, %v8373_v12 }
 0x28f   : > { %v3057_v49 = vpop.permute.xlu0 %3056  ;;  %v3215_v48 = vrot.slane %v8225_v53, %v8389_v5  ;;  %v3144_v11 = vadd.s32 4294967224, %v8350_v28 }
 0x290   : > { %v3211_v55 = vsel %vm3107_vm3, %v3210_v51, %v3206_v22  ;;  %v8434_v53 = vsub.s32 %v3137_v52, %v8355_v34  ;;  %v3704_v40 = vrot.slane %v3057_v49, %v8423_v58  ;;  %v3151_v22 = vadd.s32 4294967216, %v8350_v28 }
 0x291   : > { %v8410_v32 = vpop.permute.xlu1 %2732 }
 0x292   : > { %3017 = vperm.xlu1 %7399, %v8314_v62   ;;  %v3220_v62 = vrot.slane %v8227_v56, %v8408_v46  ;;  %v3158_v56 = vadd.s32 4294967208, %v8350_v28 }
 0x293   : > { %v3051_v3 = vpop.permute.xlu0 %3050 }
 0x294   : > { %v3694_v43 = vrot.slane %v3051_v3, %v8408_v46  ;;  %v3216_v3 = vsel %vm3114_vm4, %v3215_v48, %v3211_v55  ;;  %v8458_v55 = vsub.s32 %v3151_v22, %v8355_v34 }
 0x295   : > { %v8431_v61 = vpop.permute.xlu1 %2726  ;;  %v3221_v49 = vsel %vm3121_vm5, %v3220_v62, %v3216_v3  ;;  %v8461_v62 = vsub.s32 %v3158_v56, %v8355_v34 }
 0x296   : > { %v3695_v4 = vsel %vm3121_vm5, %v3694_v43, %v3690_v50  ;;  %3011 = vperm.xlu1 %7399, %v8318_v8   ;;  %v8447_v50 = vsub.s32 %v3144_v11, %v8355_v34  ;;  %v3165_v8 = vadd.s32 4294967200, %v8350_v28  ;;  %v3719_v56 = vrot.slane %v8316_v1, %v8458_v55 }
 0x297   : > { %v3700_v51 = vsel %vm3128_vm6, %v3699_v33, %v3695_v4  ;;  %v3060_v57 = vpop.permute.xlu0 %3059  ;;  %v3225_v4 = vrot.slane %v8245_v21, %v8418_v25  ;;  %v3172_v33 = vadd.s32 4294967192, %v8350_v28  ;;  %v3724_v3 = vrot.slane %v8324_v39, %v8461_v62 }
 0x298   : > { %v3705_v0 = vsel %vm3135_vm7, %v3704_v40, %v3700_v51  ;;  %v3709_v52 = vrot.slane %v3060_v57, %v8434_v53  ;;  %v3235_v51 = vrot.slane %v8231_v63, %v8434_v53  ;;  %v8472_v22 = vsub.s32 %v3165_v8, %v8355_v34 }
 0x299   : > { %v8450_v43 = vpop.permute.xlu1 %2741  ;;  %v3226_v40 = vsel %vm3128_vm6, %v3225_v4, %v3221_v49  ;;  %v8479_v63 = vsub.s32 %v3172_v33, %v8355_v34 }
 0x29a   : > { %v3710_v48 = vsel %vm3142_vm8, %v3709_v52, %v3705_v0  ;;  %3014 = vperm.xlu1 %7399, %v8322_v19   ;;  %v3230_v0 = vrot.slane %v8250_v26, %v8423_v58  ;;  %v3240_v19 = vrot.slane %v8237_v9, %v8447_v50  ;;  %v3729_v52 = vrot.slane %v8334_v7, %v8472_v22 }
 0x29b   : > { %v3063_v11 = vpop.permute.xlu0 %3062  ;;  %v3245_v7 = vrot.slane %v8229_v59, %v8458_v55 }
 0x29c   : > { %v3714_v21 = vrot.slane %v3063_v11, %v8447_v50  ;;  %v3231_v9 = vsel %vm3135_vm7, %v3230_v0, %v3226_v40  ;;  %v3179_v11 = vadd.s32 4294967184, %v8350_v28 }
 0x29d   : > { %v8476_v57 = vpop.permute.xlu1 %2735  ;;  %v3236_v8 = vsel %vm3142_vm8, %v3235_v51, %v3231_v9  ;;  %v3186_v51 = vadd.s32 4294967176, %v8350_v28 }
 0x29e   : > { %v3715_v26 = vsel %vm3149_vm9, %v3714_v21, %v3710_v48  ;;  %3029 = vperm.xlu1 %7399, %v8328_v60   ;;  %v3241_v33 = vsel %vm3149_vm9, %v3240_v19, %v3236_v8  ;;  %v3255_v19 = vrot.slane %v8243_v20, %v8472_v22  ;;  %v3106_v20 = vrot.slane %v8353_v38, %v8373_v12 }
 0x29f   : > { %v3720_v1 = vsel %vm3156_vm10, %v3719_v56, %v3715_v26  ;;  %v3075_v49 = vpop.permute.xlu0 %3074  ;;  %v3246_v0 = vsel %vm3156_vm10, %v3245_v7, %v3241_v33  ;;  %v3087_v56 = vrot.slane %v8348_v35, %v8364_v45  ;;  %v3260_v26 = vrot.slane %v8252_v27, %v8479_v63 }
 0x2a0   : > { %v3725_v4 = vsel %vm9684_vm11, %v3724_v3, %v3720_v1  ;;  %v3734_v39 = vrot.slane %v3075_v49, %v8479_v63  ;;  %v3250_v3 = vrot.slane %v8233_v6, %v8461_v62  ;;  %v3814_v6 = vld [vmem:[%s9671_s5] sm:$0xff]  ;;  %v8533_v49 = vld [vmem:[%s9672_s6 + $0x8] sm:$0xff] }
 0x2a1   : > { %v3730_v60 = vsel %vm3170_vm12, %v3729_v52, %v3725_v4  ;;  %v8494_v48 = vpop.permute.xlu1 %2738  ;;  %v8519_v52 = vsub.s32 %v3179_v11, %v8355_v34  ;;  %v3819_v38 = vsel %vm9682_vm14, %v3814_v6, 0  ;;  %vm3771_vm14 = vcmask 1041409  }
 0x2a2   : > { %v8500_v40 = vsel %vm9683_vm13, %v3734_v39, %v3730_v60  ;;  %3032 = vperm.xlu1 %7399, %v8332_v17   ;;  %v3099_v17 = vrot.slane %v8338_v18, %v8370_v10  ;;  %v3251_v27 = vsel %vm9684_vm11, %v3250_v3, %v3246_v0  ;;  %v8541_v39 = vand.u32 4294901760, %v3819_v38 }
 0x2a3   : > { %v2703_v21 = vpop.permute.xlu0 %2702  ;;  %v3256_v8 = vsel %vm3170_vm12, %v3255_v19, %v3251_v27  ;;  %v3358_v60 = vrot.slane %v8262_v41, %v8367_v24  ;;  %v3127_v3 = vrot.slane %v8360_v15, %v8418_v25  ;;  %v3141_v15 = vrot.slane %v8398_v2, %v8434_v53 }
 0x2a4   : > { %v3092_v59 = vrot.slane %v2703_v21, %v8367_v24  ;;  %v3261_v33 = vsel %vm9683_vm13, %v3260_v26, %v3256_v8  ;;  %v3265_v21 = vrot.slane %v8241_v16, %v8519_v52  ;;  %v3368_v8 = vrot.slane %v8260_v37, %v8373_v12 }
 0x2a5   : > { %v8516_v9 = vpop.permute.xlu1 %2795 }
 0x2a6   : > { %v3094_v35 = vsel %vm3093_vm1, %v3092_v59, %v3087_v56  ;;  %3080 = vperm.xlu1 %7399, %v8219_v42   ;;  %v8538_v42 = vsub.s32 %v3186_v51, %v8355_v34  ;;  %v8553_v34 = vsub.f32 %v3819_v38, %v8541_v39  ;;  %v3354_v51 = vrot.slane %v8254_v29, %v8364_v45 }
 0x2a7   : > { %v3101_v18 = vsel %vm3100_vm2, %v3099_v17, %v3094_v35  ;;  %v2712_v1 = vpop.permute.xlu0 %2711  ;;  %v3266_v19 = vsel %vm3184_vm15, %v3265_v21, %v3261_v33  ;;  %v3363_v29 = vrot.slane %v8256_v31, %v8370_v10  ;;  %v3148_v31 = vrot.slane %v8431_v61, %v8447_v50 }
 0x2a8   : > { %v3108_v4 = vsel %vm3107_vm3, %v3106_v20, %v3101_v18  ;;  %v3113_v7 = vrot.slane %v2712_v1, %v8389_v5  ;;  %v3892_v56 = vand.u32 4294901760, %v8553_v34  ;;  %v3270_v59 = vrot.slane %v8248_v23, %v8538_v42 }
 0x2a9   : > { %v8547_v11 = vpop.permute.xlu1 %2804  ;;  %v3359_v16 = vsel %vm3093_vm1, %v3358_v60, %v3354_v51  ;;  %v3134_v20 = vrot.slane %v8378_v30, %v8423_v58  ;;  %v3162_v60 = vrot.slane %v8410_v32, %v8461_v62  ;;  %v3169_v51 = vrot.slane %v8476_v57, %v8472_v22 }
 0x2aa   : > { %4325 = vperm.xlu1 %7399, %v8533_v49   ;;  %v3115_v26 = vsel %vm3114_vm4, %v3113_v7, %v3108_v4  ;;  %v3893_v23 = vsub.f32 %v8553_v34, %v3892_v56  ;;  %v3271_v6 = vsel %vm3191_vm0, %v3270_v59, %v3266_v19  ;;  %v3364_v1 = vsel %vm3100_vm2, %v3363_v29, %v3359_v16 }
 0x2ab   : > { %v2715_v0 = vpop.permute.xlu0 %2714  ;;  %v3155_v4 = vrot.slane %v8386_v14, %v8458_v55  ;;  %v3755_v61 = vadd.f32 %v3271_v6, %v8190_v13  ;;  %v3369_v21 = vsel %vm3107_vm3, %v3368_v8, %v3364_v1  ;;  %v3373_v14 = vrot.slane %v8258_v36, %v8389_v5  ;;  %v9784_v1 = vld [vmem:[#allocation24_spill] sm:$0xff] }
 0x2ac   : > { %v3120_v41 = vrot.slane %v2715_v0, %v8408_v46  ;;  %v3894_v38 = vand.u32 4294901760, %v3893_v23  ;;  %v3176_v19 = vrot.slane %v8494_v48, %v8479_v63  ;;  %v3378_v36 = vrot.slane %v8264_v44, %v8408_v46  ;;  %v9783_v44 = vld [vmem:[#allocation14_spill] sm:$0xff] }
 0x2ad   : > { %v8566_v17 = vpop.permute.xlu1 %2807  ;;  %v3374_v16 = vsel %vm3114_vm4, %v3373_v14, %v3369_v21  ;;  %v3383_v48 = vrot.slane %v8266_v47, %v8418_v25  ;;  %v9786_v14 = vld [vmem:[#allocation23_spill] sm:$0xff] }
 0x2ae   : > { %v3122_v35 = vsel %vm3121_vm5, %v3120_v41, %v3115_v26  ;;  %7006 = vmatprep.mubr.f32.mxu0 %v3894_v38  ;;  %v3183_v41 = vrot.slane %v8450_v43, %v8519_v52  ;;  %v3770_v26 = vrot.slane %v3755_v61, 7  ;;  %v3275_v43 = vrot.slane %v8516_v9, %v8364_v45  ;;  %v9785_v38 = vld [vmem:[#allocation28_spill] sm:$0xff] }
 0x2af   : > { %v3129_v27 = vsel %vm3128_vm6, %v3127_v3, %v3122_v35  ;;  %v2745_v18 = vpop.permute.xlu0 %2744  ;;  %v3379_v6 = vsel %vm3121_vm5, %v3378_v36, %v3374_v16  ;;  %v3289_v9 = vrot.slane %v8547_v11, %v8373_v12  ;;  %v3398_v8 = vrot.slane %v9785_v38, %v8447_v50 }
 0x2b0   : > { %v3136_v30 = vsel %vm3135_vm7, %v3134_v20, %v3129_v27  ;;  %v3190_v3 = vrot.slane %v2745_v18, %v8538_v42 }
 0x2b1   : > { %v3143_v33 = vsel %vm3142_vm8, %v3141_v15, %v3136_v30  ;;  %v2817_v2 = vpop.permute.xlu1 %2816  ;;  %v3388_v15 = vrot.slane %v8270_v54, %v8423_v58 }
 0x2b2   : > { %v3150_v7 = vsel %vm3149_vm9, %v3148_v31, %v3143_v33  ;;  %v3393_v31 = vrot.slane %v9784_v1, %v8434_v53 }
 0x2b3   : > { %v3157_v37 = vsel %vm3156_vm10, %v3155_v4, %v3150_v7  ;;  %v2802_v0 = vpop.permute.xlu0 %2801 }
 0x2b4   : > { %v3164_v32 = vsel %vm9684_vm11, %v3162_v60, %v3157_v37  ;;  %v3284_v47 = vrot.slane %v2802_v0, %v8370_v10  ;;  %v3384_v60 = vsel %vm3128_vm6, %v3383_v48, %v3379_v6  ;;  %v3294_v37 = vrot.slane %v8566_v17, %v8389_v5  ;;  %v9787_v17 = vld [vmem:[#allocation26_spill] sm:$0xff] }
 0x2b5   : > { %v3171_v13 = vsel %vm3170_vm12, %v3169_v51, %v3164_v32  ;;  %v2826_v59 = vpop.permute.xlu1 %2825  ;;  %v3389_v61 = vsel %vm3135_vm7, %v3388_v15, %v3384_v60  ;;  %v3408_v48 = vrot.slane %v9787_v17, %v8461_v62 }
 0x2b6   : > { %v3178_v57 = vsel %vm9683_vm13, %v3176_v19, %v3171_v13  ;;  %v3394_v51 = vsel %vm3142_vm8, %v3393_v31, %v3389_v61  ;;  %v3403_v19 = vrot.slane %v9786_v14, %v8458_v55 }
 0x2b7   : > { %v3185_v29 = vsel %vm3184_vm15, %v3183_v41, %v3178_v57  ;;  %v2799_v20 = vpop.permute.xlu0 %2798  ;;  %v3399_v11 = vsel %vm3149_vm9, %v3398_v8, %v3394_v51 }
 0x2b8   : > { %v3192_v35 = vsel %vm3191_vm0, %v3190_v3, %v3185_v29  ;;  %v3279_v23 = vrot.slane %v2799_v20, %v8367_v24  ;;  %v3404_v57 = vsel %vm3156_vm10, %v3403_v19, %v3399_v11  ;;  %v3309_v3 = vrot.slane %v2817_v2, %v8423_v58  ;;  %v9789_v2 = vld [vmem:[#allocation31_spill] sm:$0xff] }
 0x2b9   : > { %v3754_v27 = vadd.f32 %v3192_v35, %v9783_v44  ;;  %v2820_v18 = vpop.permute.xlu1 %2819  ;;  %v3409_v6 = vsel %vm9684_vm11, %v3408_v48, %v3404_v57  ;;  %v3418_v15 = vrot.slane %v9789_v2, %v8479_v63  ;;  %v3324_v44 = vrot.slane %v2826_v59, %v8458_v55  ;;  %v9792_v57 = vld [vmem:[#allocation18_spill] sm:$0xff]  ;;  %v9794_v48 = vld [vmem:[#allocation17_spill] sm:$0xff] }
 0x2ba   : > { %v3280_v30 = vsel %vm3093_vm1, %v3279_v23, %v3275_v43  ;;  %v3314_v29 = vrot.slane %v2820_v18, %v8434_v53  ;;  %v9788_v43 = vld [vmem:[#allocation29_spill] sm:$0xff] }
 0x2bb   : > { %v8629_v4 = vsel %vm3771_vm14, %v3770_v26, %v3754_v27  ;;  %v3285_v54 = vsel %vm3100_vm2, %v3284_v47, %v3280_v30  ;;  %v2814_v33 = vpop.permute.xlu0 %2813  ;;  %v3413_v35 = vrot.slane %v9788_v43, %v8472_v22  ;;  %vm3774_vm14 = vcmask 1042434  }
 0x2bc   : > { %v3290_v7 = vsel %vm3107_vm3, %v3289_v9, %v3285_v54  ;;  %v3304_v41 = vrot.slane %v2814_v33, %v8418_v25  ;;  %v9790_v33 = vld [vmem:[#allocation21_spill] sm:$0xff] }
 0x2bd   : > { %v2829_v21 = vpop.permute.xlu1 %2828  ;;  %v3295_v13 = vsel %vm3114_vm4, %v3294_v37, %v3290_v7  ;;  %v3414_v9 = vsel %vm3170_vm12, %v3413_v35, %v3409_v6  ;;  %v3423_v59 = vrot.slane %v9790_v33, %v8519_v52 }
 0x2be   : > { %v3329_v1 = vrot.slane %v2829_v21, %v8461_v62  ;;  %v3419_v38 = vsel %vm9683_vm13, %v3418_v15, %v3414_v9  ;;  %v9791_v21 = vld [vmem:[#allocation22_spill] sm:$0xff] }
 0x2bf   : > { %v2811_v0 = vpop.permute.xlu0 %2810  ;;  %v3424_v7 = vsel %vm3184_vm15, %v3423_v59, %v3419_v38  ;;  %v3428_v51 = vrot.slane %v9791_v21, %v8538_v42  ;;  %v9799_v59 = vld [vmem:[#allocation39_spill] sm:$0xff] }
 0x2c0   : > { %v3299_v32 = vrot.slane %v2811_v0, %v8408_v46 }
 0x2c1   : > { %v2823_v16 = vpop.permute.xlu1 %2822  ;;  %v3429_v0 = vsel %vm3191_vm0, %v3428_v51, %v3424_v7 }
 0x2c2   : > { %v3300_v26 = vsel %vm3121_vm5, %v3299_v32, %v3295_v13  ;;  %v3319_v36 = vrot.slane %v2823_v16, %v8447_v50 }
 0x2c3   : > { %v3305_v20 = vsel %vm3128_vm6, %v3304_v41, %v3300_v26  ;;  %v2841_v8 = vpop.permute.xlu0 %2840  ;;  %v9793_v26 = vld [vmem:[#allocation33_spill] sm:$0xff] }
 0x2c4   : > { %v3310_v23 = vsel %vm3135_vm7, %v3309_v3, %v3305_v20  ;;  %v3349_v32 = vrot.slane %v2841_v8, %v8538_v42  ;;  %v3757_v3 = vadd.f32 %v3429_v0, %v9792_v57  ;;  %v9795_v20 = vld [vmem:[#allocation30_spill] sm:$0xff] }
 0x2c5   : > { %v3315_v27 = vsel %vm3142_vm8, %v3314_v29, %v3310_v23  ;;  %v2838_v47 = vpop.permute.xlu1 %2837  ;;  %v3516_v43 = vrot.slane %v9795_v20, %v8367_v24 }
 0x2c6   : > { %v3320_v18 = vsel %vm3149_vm9, %v3319_v36, %v3315_v27  ;;  %v3344_v14 = vrot.slane %v2838_v47, %v8519_v52  ;;  %v3512_v36 = vrot.slane %v9793_v26, %v8364_v45  ;;  %v3776_v2 = vrot.slane %v3757_v3, 5  ;;  %v9796_v27 = vld [vmem:[#allocation25_spill] sm:$0xff] }
 0x2c7   : > { %v3325_v31 = vsel %vm3156_vm10, %v3324_v44, %v3320_v18  ;;  %v2901_v19 = vpop.permute.xlu0 %2900  ;;  %v3521_v47 = vrot.slane %v9796_v27, %v8370_v10 }
 0x2c8   : > { %v3330_v30 = vsel %vm9684_vm11, %v3329_v1, %v3325_v31  ;;  %v3517_v15 = vsel %vm3093_vm1, %v3516_v43, %v3512_v36  ;;  %v3447_v0 = vrot.slane %v2901_v19, %v8373_v12 }
 0x2c9   : > { %v2832_v54 = vpop.permute.xlu1 %2831  ;;  %v3522_v9 = vsel %vm3100_vm2, %v3521_v47, %v3517_v15  ;;  %v9804_v47 = vld [vmem:[#allocation40_spill] sm:$0xff] }
 0x2ca   : > { %v3334_v60 = vrot.slane %v2832_v54, %v8472_v22  ;;  %v9798_v54 = vld [vmem:[#allocation27_spill] sm:$0xff] }
 0x2cb   : > { %v2895_v35 = vpop.permute.xlu0 %2894  ;;  %v3526_v33 = vrot.slane %v9798_v54, %v8373_v12 }
 0x2cc   : > { %v3335_v61 = vsel %vm3170_vm12, %v3334_v60, %v3330_v30  ;;  %v3437_v18 = vrot.slane %v2895_v35, %v8367_v24  ;;  %v9797_v30 = vld [vmem:[#allocation36_spill] sm:$0xff]  ;;  %v3536_v60 = vrot.slane %v9799_v59, %v8408_v46 }
 0x2cd   : > { %v2835_v11 = vpop.permute.xlu1 %2834  ;;  %v3531_v38 = vrot.slane %v9797_v30, %v8389_v5 }
 0x2ce   : > { %v3339_v37 = vrot.slane %v2835_v11, %v8479_v63 }
 0x2d0   : > { %v3340_v41 = vsel %vm9683_vm13, %v3339_v37, %v3335_v61  ;;  %vm3777_vm13 = vcmask 1043459   ;;  %v3527_v61 = vsel %vm3107_vm3, %v3526_v33, %v3522_v9  ;;  %v9806_v33 = vld [vmem:[#allocation34_spill] sm:$0xff] }
 0x2d1   : > { %v3345_v13 = vsel %vm3184_vm15, %v3344_v14, %v3340_v41  ;;  %v2898_v16 = vpop.permute.xlu1 %2897  ;;  %v3532_v21 = vsel %vm3114_vm4, %v3531_v38, %v3527_v61  ;;  %v2904_v14 = vpop.permute.xlu0 %2903  ;;  %v9805_v38 = vld [vmem:[#allocation42_spill] sm:$0xff]  ;;  %v3571_v59 = vrot.slane %v9806_v33, %v8472_v22 }
 0x2d2   : > { %v3350_v17 = vsel %vm3191_vm0, %v3349_v32, %v3345_v13  ;;  %v3537_v37 = vsel %vm3121_vm5, %v3536_v60, %v3532_v21  ;;  %v9800_v32 = vld [vmem:[#allocation35_spill] sm:$0xff]  ;;  %v3452_v26 = vrot.slane %v2904_v14, %v8389_v5  ;;  %v9807_v21 = vld [vmem:[#allocation37_spill] sm:$0xff] }
 0x2d3   : > { %v3756_v29 = vadd.f32 %v3350_v17, %v9794_v48  ;;  %v3541_v41 = vrot.slane %v9800_v32, %v8418_v25  ;;  %v9802_v17 = vld [vmem:[#allocation38_spill] sm:$0xff] }
 0x2d4   : > { %v3546_v48 = vrot.slane %v9802_v17, %v8423_v58 }
 0x2d5   : > { %v3773_v23 = vrot.slane %v3756_v29, 6  ;;  %v2892_v6 = vpop.permute.xlu1 %2891  ;;  %v3542_v57 = vsel %vm3128_vm6, %v3541_v41, %v3537_v37  ;;  %v9803_v29 = vld [vmem:[#allocation43_spill] sm:$0xff] }
 0x2d6   : > { %v3433_v44 = vrot.slane %v2892_v6, %v8364_v45  ;;  %v3556_v19 = vrot.slane %v9803_v29, %v8447_v50 }
 0x2d7   : > { %v3775_v1 = vsel %vm3774_vm14, %v3773_v23, %v8629_v4  ;;  %v3442_v4 = vrot.slane %v2898_v16, %v8370_v10  ;;  %v9801_v16 = vld [vmem:[#allocation41_spill] sm:$0xff]  ;;  %v3547_v23 = vsel %vm3135_vm7, %v3546_v48, %v3542_v57 }
 0x2d8   : > { %v8692_v31 = vsel %vm3777_vm13, %v3776_v2, %v3775_v1  ;;  %v3438_v7 = vsel %vm3093_vm1, %v3437_v18, %v3433_v44  ;;  %v3551_v3 = vrot.slane %v9801_v16, %v8434_v53  ;;  %v3561_v1 = vrot.slane %v9804_v47, %v8458_v55  ;;  %v2934_v18 = vpop.permute.xlu0 %2933 }
 0x2d9   : > { %v2910_v8 = vpop.permute.xlu1 %2909  ;;  %v3443_v51 = vsel %vm3100_vm2, %v3442_v4, %v3438_v7  ;;  %vm9808_vm13 = vcmask 917312  }
 0x2da   : > { %v3448_v13 = vsel %vm3107_vm3, %v3447_v0, %v3443_v51  ;;  %v3462_v43 = vrot.slane %v2910_v8, %v8418_v25  ;;  %v3552_v2 = vsel %vm3142_vm8, %v3551_v3, %v3547_v23  ;;  %v3566_v8 = vrot.slane %v9805_v38, %v8461_v62  ;;  %vm9811_vm14 = vmmov %vm9808_vm13 }
 0x2db   : > { %v3453_v35 = vsel %vm3114_vm4, %v3452_v26, %v3448_v13  ;;  %v3557_v27 = vsel %vm3149_vm9, %v3556_v19, %v3552_v2  ;;  %v3576_v51 = vrot.slane %v9807_v21, %v8479_v63  ;;  %v9809_v13 = vld [vmem:[#allocation32_spill] sm:$0xff]  ;;  %v3502_v2 = vrot.slane %v2934_v18, %v8519_v52 }
 0x2dc   : > { %v3562_v9 = vsel %vm3156_vm10, %v3561_v1, %v3557_v27  ;;  %v2937_v7 = vpop.permute.xlu0 %2936  ;;  %v3581_v57 = vrot.slane %v9809_v13, %v8519_v52  ;;  %v9810_v19 = vld [vmem:[#allocation44_spill] sm:$0xff] }
 0x2dd   : > { %v2913_v11 = vpop.permute.xlu1 %2912  ;;  %v3567_v54 = vsel %vm9684_vm11, %v3566_v8, %v3562_v9  ;;  %v9812_v9 = vld [vmem:[#allocation15_spill] sm:$0xff] }
 0x2de   : > { %v3572_v4 = vsel %vm3170_vm12, %v3571_v59, %v3567_v54  ;;  %v3467_v37 = vrot.slane %v2913_v11, %v8423_v58  ;;  %v9813_v8 = vld [vmem:[#allocation19_spill] sm:$0xff] }
 0x2df   : > { %v3577_v14 = vsel %vm9808_vm13, %v3576_v51, %v3572_v4  ;;  %vm3780_vm13 = vcmask 1044484  }
 0x2e0   : > { %v2931_v26 = vpop.permute.xlu0 %2930  ;;  %v3582_v11 = vsel %vm3184_vm15, %v3581_v57, %v3577_v14 }
 0x2e1   : > { %v2907_v36 = vpop.permute.xlu1 %2906  ;;  %v3497_v23 = vrot.slane %v2931_v26, %v8479_v63 }
 0x2e2   : > { %v3457_v20 = vrot.slane %v2907_v36, %v8408_v46 }
 0x2e4   : > { %v3458_v6 = vsel %vm3121_vm5, %v3457_v20, %v3453_v35  ;;  %v3586_v20 = vrot.slane %v9810_v19, %v8538_v42  ;;  %v2994_v4 = vpop.permute.xlu0 %2993 }
 0x2e5   : > { %v3463_v15 = vsel %vm3128_vm6, %v3462_v43, %v3458_v6  ;;  %v2922_v44 = vpop.permute.xlu1 %2921 }
 0x2e6   : > { %v3468_v32 = vsel %vm3135_vm7, %v3467_v37, %v3463_v15  ;;  %v3482_v16 = vrot.slane %v2922_v44, %v8458_v55  ;;  %v3587_v6 = vsel %vm3191_vm0, %v3586_v20, %v3582_v11  ;;  %v3507_v44 = vrot.slane %v2937_v7, %v8538_v42 }
 0x2e8   : > { %v2988_v51 = vpop.permute.xlu0 %2987 }
 0x2e9   : > { %v2916_v30 = vpop.permute.xlu1 %2915  ;;  %v3591_v14 = vrot.slane %v2988_v51, %v8364_v45 }
 0x2ea   : > { %v3472_v61 = vrot.slane %v2916_v30, %v8434_v53  ;;  %v3759_v30 = vadd.f32 %v3587_v6, %v9812_v9 }
 0x2ec   : > { %v3473_v3 = vsel %vm3142_vm8, %v3472_v61, %v3468_v32  ;;  %v3782_v18 = vrot.slane %v3759_v30, 3 }
 0x2ed   : > { %v2925_v60 = vpop.permute.xlu1 %2924 }
 0x2ee   : > { %v3487_v36 = vrot.slane %v2925_v60, %v8461_v62 }
 0x2f1   : > { %v2919_v0 = vpop.permute.xlu1 %2918 }
 0x2f2   : > { %v3477_v41 = vrot.slane %v2919_v0, %v8447_v50 }
 0x2f4   : > { %v3478_v17 = vsel %vm3149_vm9, %v3477_v41, %v3473_v3  ;;  %v3600_v41 = vrot.slane %v2994_v4, %v8370_v10 }
 0x2f5   : > { %v3483_v48 = vsel %vm3156_vm10, %v3482_v16, %v3478_v17  ;;  %v2928_v29 = vpop.permute.xlu1 %2927 }
 0x2f6   : > { %v3488_v43 = vsel %vm9684_vm11, %v3487_v36, %v3483_v48  ;;  %v3492_v35 = vrot.slane %v2928_v29, %v8472_v22  ;;  %vm3783_vm11 = vcmask 1045509  }
 0x2f8   : > { %v3493_v15 = vsel %vm3170_vm12, %v3492_v35, %v3488_v43 }
 0x2f9   : > { %v3498_v27 = vsel %vm9811_vm14, %v3497_v23, %v3493_v15  ;;  %v2997_v47 = vpop.permute.xlu1 %2996 }
 0x2fa   : > { %v3503_v1 = vsel %vm3184_vm15, %v3502_v2, %v3498_v27  ;;  %v3605_v3 = vrot.slane %v2997_v47, %v8373_v12  ;;  %v3815_v12 = vld [vmem:[%s9671_s5 + $0x8] sm:$0xff] }
 0x2fb   : > { %v3508_v38 = vsel %vm3191_vm0, %v3507_v44, %v3503_v1 }
 0x2fc   : > { %v3758_v54 = vadd.f32 %v3508_v38, %v9813_v8 }
 0x2fd   : > { %v2991_v33 = vpop.permute.xlu1 %2990 }
 0x2fe   : > { %v3779_v59 = vrot.slane %v3758_v54, 4  ;;  %v3595_v37 = vrot.slane %v2991_v33, %v8367_v24  ;;  %v9817_v33 = vld [vmem:[#allocation20_spill] sm:$0xff] }
 0x300   : > { %v3781_v60 = vsel %vm3780_vm13, %v3779_v59, %v8692_v31  ;;  %v3596_v32 = vsel %vm3093_vm1, %v3595_v37, %v3591_v14  ;;  %v3021_v31 = vpop.permute.xlu0 %3020  ;;  %vm9814_vm1 = vcmask 64512  }
 0x301   : > { %v3006_v7 = vpop.permute.xlu1 %3005  ;;  %v3784_v61 = vsel %vm3783_vm11, %v3782_v18, %v3781_v60  ;;  %v3601_v57 = vsel %vm3100_vm2, %v3600_v41, %v3596_v32  ;;  %v3822_v6 = vsel %vm9814_vm1, %v3815_v12, 0  ;;  %vm9815_vm2 = vcmask 786112  }
 0x302   : > { %v3606_v24 = vsel %vm3107_vm3, %v3605_v3, %v3601_v57  ;;  %v3620_v10 = vrot.slane %v3006_v7, %v8418_v25  ;;  %vm9816_vm3 = vmmov %vm9811_vm14  ;;  %v6102_v3 = vld [vmem:[%s7899_s19] ss:$0 sm:$0xff] }
 0x304   : > { %v3024_v45 = vpop.permute.xlu0 %3023 }
 0x305   : > { %v3000_v21 = vpop.permute.xlu1 %2999  ;;  %v3650_v2 = vrot.slane %v3024_v45, %v8472_v22 }
 0x306   : > { %v3610_v16 = vrot.slane %v3000_v21, %v8389_v5 }
 0x308   : > { %v3611_v17 = vsel %vm3114_vm4, %v3610_v16, %v3606_v24  ;;  %v3027_v20 = vpop.permute.xlu0 %3026  ;;  %vm3786_vm4 = vcmask 1046534  }
 0x309   : > { %v3009_v0 = vpop.permute.xlu1 %3008  ;;  %v3655_v27 = vrot.slane %v3027_v20, %v8479_v63 }
 0x30a   : > { %v3625_v19 = vrot.slane %v3009_v0, %v8423_v58  ;;  %v9818_v0 = vld [vmem:[#allocation16_spill] sm:$0xff] }
 0x30c   : > { %v3078_v9 = vpop.permute.xlu0 %3077 }
 0x30d   : > { %v3003_v13 = vpop.permute.xlu1 %3002  ;;  %v3739_v22 = vrot.slane %v3078_v9, %v8519_v52  ;;  %v9821_v9 = vmov 0  }
 0x30e   : > { %v3615_v26 = vrot.slane %v3003_v13, %v8408_v46 }
 0x30f   : > { %v3740_v7 = vsel %vm3184_vm15, %v3739_v22, %v8500_v40  ;;  %v3799_v22 = vld [vmem:[%s8837_s20 + $0x8] sm:$0xff] }
 0x310   : > { %v3616_v11 = vsel %vm3121_vm5, %v3615_v26, %v3611_v17  ;;  %vm3789_vm5 = vcmask 1047559   ;;  %v9819_v26 = vmov 0.0   ;;  %v4321_v24 = vpop.permute.xlu0 %4320 }
 0x311   : > { %v3018_v36 = vpop.permute.xlu1 %3017  ;;  %v3621_v29 = vsel %vm3128_vm6, %v3620_v10, %v3616_v11  ;;  %vm4315_vm6 = vcmp.lt.s32.totalorder %v8350_v28, 120 }
 0x312   : > { %v3626_v43 = vsel %vm3135_vm7, %v3625_v19, %v3621_v29  ;;  %v3640_v23 = vrot.slane %v3018_v36, %v8458_v55  ;;  %v6101_v36 = vsel %vm4315_vm6, 1.0, %v9819_v26  ;;  %v6390_v26 = vld [vmem:[%s7814_s18 + $0xc0] sm:$0xff]   ;;  %vm4392_vm7 = vcmask 130048  }
 0x313   : > { %v4328_v11 = vmul.f32 %v6101_v36, %v4321_v24 }
 0x315   : > { %v3012_v48 = vpop.permute.xlu1 %3011 }
 0x316   : > { %v3630_v5 = vrot.slane %v3012_v48, %v8434_v53  ;;  %v3645_v53 = vrot.slane %v3021_v31, %v8461_v62 }
 0x318   : > { %v3631_v25 = vsel %vm3142_vm8, %v3630_v5, %v3626_v43 }
 0x319   : > { %v3015_v46 = vpop.permute.xlu1 %3014 }
 0x31a   : > { %v3635_v35 = vrot.slane %v3015_v46, %v8447_v50  ;;  %v3900_v50 = vand.u32 4294901760, %v3822_v6 }
 0x31c   : > { %v3636_v58 = vsel %vm3149_vm9, %v3635_v35, %v3631_v25  ;;  %v3901_v8 = vsub.f32 %v3822_v6, %v3900_v50 }
 0x31d   : > { %v3641_v15 = vsel %vm3156_vm10, %v3640_v23, %v3636_v58  ;;  %v3030_v44 = vpop.permute.xlu1 %3029 }
 0x31e   : > { %v3646_v47 = vsel %vm9815_vm2, %v3645_v53, %v3641_v15  ;;  %v3660_v1 = vrot.slane %v3030_v44, %v8519_v52  ;;  %v3902_v4 = vand.u32 4294901760, %v3901_v8 }
 0x31f   : > { %v3651_v55 = vsel %vm3170_vm12, %v3650_v2, %v3646_v47  ;;  %v7614_v2 = vmov 1  }
 0x320   : > { %v3656_v30 = vsel %vm9816_vm3, %v3655_v27, %v3651_v55  ;;  %v3903_v14 = vsub.f32 %v3901_v8, %v3902_v4  ;;  %7402 = vset.pattern.permute.xlu1 %v7614_v2  ;;  %7401 = vset.pattern.permute.xlu0 %v7614_v2  ;;  %v9820_v55 = vld [vmem:[#allocation45_spill] sm:$0xff]  ;;  %v8881_v2 = vstv %s5986_s12 }
 0x321   : > { %v3033_v62 = vpop.permute.xlu1 %3032  ;;  %v3661_v54 = vsel %vm3184_vm15, %v3660_v1, %v3656_v30 }
 0x322   : > { %v3665_v38 = vrot.slane %v3033_v62, %v8538_v42  ;;  %v3904_v57 = vand.u32 4294901760, %v3903_v14  ;;  %v6112_v14 = vld [vmem:[%s7814_s18] sm:$0xff]  }
 0x324   : > { %v3666_v63 = vsel %vm3191_vm0, %v3665_v38, %v3661_v54  ;;  %v3800_v54 = vld [vmem:[%s8837_s20 + $0x10] sm:$0xff] }
 0x325   : > { %v3760_v59 = vadd.f32 %v3666_v63, %v9817_v33  ;;  %v3081_v18 = vpop.permute.xlu1 %3080  ;;  %v3801_v63 = vld [vmem:[%s8837_s20 + $0x18] sm:$0xff]  ;;  %v3802_v33 = vld [vmem:[%s8837_s20 + $0x20] sm:$0xff] }
 0x326   : > { %v3744_v60 = vrot.slane %v3081_v18, %v8538_v42  ;;  %v3805_v18 = vld [vmem:[%s8837_s20 + $0x38] sm:$0xff] }
 0x327   : > { %v3785_v21 = vrot.slane %v3760_v59, 2  ;;  %v3804_v59 = vld [vmem:[%s8837_s20 + $0x30] sm:$0xff] }
 0x328   : > { %v3745_v51 = vsel %vm3191_vm0, %v3744_v60, %v3740_v7  ;;  %v3806_v60 = vld [vmem:[%s8837_s20 + $0x40] sm:$0xff]  ;;  %v3808_v7 = vld [vmem:[%s8837_s20 + $0x50] sm:$0xff] }
 0x329   : > { %v3787_v37 = vsel %vm3786_vm4, %v3785_v21, %v3784_v61  ;;  %v3761_v52 = vadd.f32 %v3745_v51, %v9818_v0  ;;  %v4326_v61 = vpop.permute.xlu1 %4325  ;;  %v3809_v21 = vld [vmem:[%s8837_s20 + $0x58] sm:$0xff]  ;;  %v3810_v51 = vld [vmem:[%s8837_s20 + $0x60] sm:$0xff]  ;;  %v3812_v0 = vld [vmem:[%s8837_s20 + $0x70] sm:$0xff] }
 0x32b   : > { %v3788_v32 = vrot.slane %v3761_v52, 1  ;;  %v3813_v52 = vld [vmem:[%s8837_s20 + $0x78] sm:$0xff] }
 0x32d   : > { %v3790_v41 = vsel %vm3789_vm5, %v3788_v32, %v3787_v37  ;;  %v3811_v37 = vld [vmem:[%s8837_s20 + $0x68] sm:$0xff]  ;;  %v6374_v32 = vld [vmem:[%s7814_s18 + $0x40] sm:$0xff]  }
 0x32e   : > { %v3825_v13 = vand.u32 4294901760, %v3790_v41 }
 0x330   : > { %v3912_v16 = vsub.f32 %v3790_v41, %v3825_v13  ;;  %7004 = vmatprep.subr.mxu0 %v3825_v13  ;;  %v6113_v41 = vunpack.c.l.bf16 %v6112_v14 }
 0x331   : > { %7005 = vmatpush3.msra.mxu0 %v3825_v13 }
 0x332   : > { %7007 = vmatmul.mubr.f32.vlgmr.msra.gmra.mrb[88].mxu0 %v3904_v57  ;;  %v3913_v42 = vand.u32 4294901760, %v3912_v16  ;;  %v8857_v57 = vstv %s402_s0 }
 0x333   : > { %7011 = vmatprep.mubr.f32.mxu0 %v8541_v39 }
 0x334   : > { %v3914_v40 = vsub.f32 %v3912_v16, %v3913_v42 }
 0x336   : > { %v3915_v31 = vand.u32 4294901760, %v3914_v40  ;;  %v436_v40 = vmul.f32 %v6113_v41, %v8857_v57 }
 0x338   : > { %7009 = vmatprep.subr.mxu0 %v3915_v31 }
 0x339   : > { %7010 = vmatpush3.msra.mxu0 %v3915_v31 }
 0x33a   : > { %7012 = vmatmul.mubr.f32.vlgmr.msra.gmra.mrb[88].mxu0 %v3900_v50  ;;  %7014 = vmatprep.subr.mxu0 %v3912_v16 }
 0x33b   : > { %7015 = vmatpush3.msra.mxu0 %v3912_v16  ;;  %7016 = vmatprep.mubr.f32.mxu0 %v8553_v34  ;;  %v8859_v16 = vstv %s5918_s21  ;;  %s9613_s21 = scalar_lea.hbm %s9673_s7, %s6110_s11 }
 0x33c   : > { %7019 = vmatprep.subr.mxu0 %v3825_v13 }
 0x342   : > { %7017 = vmatmul.mubr.f32.vlgmr.msra.gmra.mrb[88].mxu0 %v3901_v8 }
 0x343   : > { %7020 = vmatpush3.msra.mxu0 %v3825_v13  ;;  %7021 = vmatprep.mubr.f32.mxu0 %v3892_v56  ;;  %v4329_v56 = vmul.f32 %v6101_v36, %v4326_v61 }
 0x344   : > { %7024 = vmatprep.subr.mxu0 %v3913_v42 }
 0x34a   : > { %7022 = vmatmul.mubr.f32.vlgmr.msra.gmra.mrb[88].mxu0 %v3902_v4  ;;  %v3807_v4 = vld [vmem:[%s8837_s20 + $0x48] sm:$0xff] }
 0x34b   : > { %7025 = vmatpush3.msra.mxu0 %v3913_v42  ;;  %7026 = vmatprep.mubr.f32.mxu0 %v8541_v39  ;;  %v6382_v42 = vld [vmem:[%s7814_s18 + $0x80] sm:$0xff]  }
 0x34c   : > { %7029 = vmatprep.subr.mxu0 %v3825_v13  ;;  %v6177_v61 = vunpack.c.l.bf16 %v6382_v42 }
 0x352   : > { %7027 = vmatmul.mubr.f32.vlgmr.msra.gmra.mrb[88].mxu0 %v3900_v50 }
 0x353   : > { %7030 = vmatpush3.msra.mxu0 %v3825_v13  ;;  %7031 = vmatprep.mubr.f32.mxu0 %v8541_v39  ;;  %v6145_v13 = vunpack.c.l.bf16 %v6374_v32 }
 0x355   : > { %v504_v31 = vmul.f32 %v6145_v13, %v8859_v16 }
 0x357   : > { %v520_v36 = vadd.f32 %v504_v31, %v436_v40  ;;  %v6407_v31 = vld [vmem:[%s7814_s18 + $0x148] sm:$0xff]  }
 0x35a   : > { %7032 = vmatmul.mubr.f32.vlgmr.msra.gmra.mrb[88].mxu0 %v3900_v50 }
 0x42d   : > { %v7033_v34 = vpop.f32.mrb[88].mxu0 }
 0x42e   : > { %v4337_v17 = vmul.f32 %v7033_v34, %v6102_v3  ;;  %v4303_v45 = vpop.f32.mrb[89].mxu0  ;;  %v6209_v34 = vunpack.c.l.bf16 %v6390_v26 }
 0x42f   : > { %v4336_v10 = vmul.f32 %v6102_v3, %v4303_v45  ;;  %v8864_v3 = vstv %s5935_s1  ;;  %v6398_v45 = vld [vmem:[%s7814_s18 + $0x100] sm:$0xff]  }
 0x430   : > { %v4339_v48 = vadd.f32 %v4337_v17, %v4329_v56  ;;  %v572_v24 = vmul.f32 %v6177_v61, %v8864_v3  ;;  %v6114_v56 = vunpack.c.h.bf16 %v6112_v14  ;;  %v8868_v17 = vstv %s5952_s16  ;;  %s7615_s16 = smov [#allocation10]  }
 0x431   : > { %v4338_v29 = vadd.f32 %v4336_v10, %v4328_v11  ;;  %v6146_v11 = vunpack.c.h.bf16 %v6374_v32 }
 0x432   : > { %v4445_v5 = vand.u32 4294901760, %v4339_v48  ;;  %4342 = vadd.xlane.f32.xlu1 %v4339_v48  ;;  %v588_v10 = vadd.f32 %v572_v24, %v520_v36 }
 0x433   : > { %v4442_v19 = vand.u32 4294901760, %v4338_v29  ;;  %4340 = vadd.xlane.f32.xlu0 %v4338_v29 }
 0x434   : > { %v4677_v39 = vsub.f32 %v4339_v48, %v4445_v5 }
 0x435   : > { %v8817_v12 = vpack.c.bf16 %v4445_v5, %v4442_v19  ;;  %v4670_v28 = vsub.f32 %v4338_v29, %v4442_v19  ;;  %v437_v5 = vmul.f32 %v6114_v56, %v8857_v57  ;;  %v8873_v19 = vstv %s5969_s17  ;;  %s7523_s17 = sshll.u32 %s7615_s16, 4  ;;  %s7524_s17 = int_to_ptr.vmem [resolvable:$false] %s7523_s17 }
 0x436   : > { %v4678_v46 = vand.u32 4294901760, %v4677_v39  ;;  %s7525_s12 = scalar_lea.vmem %s7524_s17, 4096 }
 0x437   : > { %7203 = vmatprep.subr.bf16.mxu0 %v8817_v12  ;;  %7226 = vmatprep.subr.bf16.mxu1 %v8817_v12  ;;  %v4671_v20 = vand.u32 4294901760, %v4670_v28  ;;  %v8821_v43 = vpack.c.bf16 %v4677_v39, %v4670_v28 }
 0x438   : > { %7205 = vmatpush3.bf16.msra.mxu0 %v8817_v12  ;;  %7227 = vmatpush3.bf16.msra.mxu1 %v8817_v12  ;;  %v4679_v35 = vsub.f32 %v4677_v39, %v4678_v46  ;;  %v6406_v39 = vld [vmem:[%s7814_s18 + $0x140] sm:$0xff]  }
 0x439   : > { %v4672_v23 = vsub.f32 %v4670_v28, %v4671_v20  ;;  %v8825_v25 = vpack.c.bf16 %v4678_v46, %v4671_v20  ;;  %v505_v28 = vmul.f32 %v6146_v11, %v8859_v16  ;;  %v6178_v46 = vunpack.c.h.bf16 %v6382_v42  ;;  %v8878_v20 = vld [vmem:[%s7814_s18 + $0x8] sm:$0xff]  }
 0x43a   : > { %v4680_v6 = vand.u32 4294901760, %v4679_v35 }
 0x43b   : > { %v4673_v53 = vand.u32 4294901760, %v4672_v23 }
 0x43d   : > { %v8827_v58 = vpack.c.bf16 %v4680_v6, %v4673_v53  ;;  %v6273_v6 = vunpack.c.l.bf16 %v6406_v39  ;;  %v6210_v53 = vunpack.c.h.bf16 %v6390_v26 }
 0x43f   : > { %7207 = vmatprep.subr.bf16.mxu1 %v8827_v58 }
 0x4bf   : > { %v4343_v15 = vpop.xlane.xlu1 %4342 }
 0x4c0   : > { %7469 = vrcp.f32 %v4343_v15  ;;  %v4341_v44 = vpop.xlane.xlu0 %4340  ;;  %v6414_v15 = vld [vmem:[%s7814_s18 + $0x180] sm:$0xff]  }
 0x4c1   : > { %7471 = vrcp.f32 %v4341_v44  ;;  %v521_v44 = vadd.f32 %v505_v28, %v437_v5  ;;  %v6306_v32 = vunpack.c.h.bf16 %v6414_v15  ;;  %v6277_v5 = vunpack.c.l.bf16 %v6407_v31 }
 0x4ca   : > { %v7470_v27 = vpop.eup %7469 }
 0x4cb   : > { %v7472_v47 = vpop.eup %7471  ;;  %v4347_v50 = vmul.f32 %v7470_v27, %v8533_v49  ;;  %v3798_v49 = vld [vmem:[%s8837_s20] sm:$0xff]  ;;  %v573_v27 = vmul.f32 %v6178_v46, %v8864_v3 }
 0x4cc   : > { %v4345_v1 = vmul.f32 %v7472_v47, %v9820_v55  ;;  %v6117_v47 = vunpack.c.l.bf16 %v8878_v20  ;;  %v776_v55 = vmul.f32 %v6273_v6, %v8881_v2 }
 0x4cd   : > { %4355 = vperm.xlu1 %7402, %v4347_v50  }
 0x4ce   : > { %4350 = vperm.xlu0 %7401, %v4345_v1   ;;  %v6305_v1 = vunpack.c.l.bf16 %v6414_v15 }
 0x4d2   : > { %7403 = vset.pattern.permute.xlu0 %v9821_v9 }
 0x4d3   : > { %5563 = vperm.xlu0 %7403, %v3798_v49   ;;  %v6242_v49 = vunpack.c.h.bf16 %v6398_v45 }
 0x4d7   : > { %5568 = vperm.xlu0 %7403, %v3799_v22   ;;  %v438_v22 = vmul.f32 %v6117_v47, %v8857_v57 }
 0x4db   : > { %5573 = vperm.xlu0 %7403, %v3800_v54  }
 0x4df   : > { %5578 = vperm.xlu0 %7403, %v3801_v63  }
 0x4e3   : > { %5583 = vperm.xlu0 %7403, %v3802_v33  }
 0x4e7   : > { %5593 = vperm.xlu0 %7403, %v3804_v59   ;;  %v6274_v59 = vunpack.c.h.bf16 %v6406_v39 }
 0x4e9   : > { %v777_v14 = vmul.f32 %v6274_v59, %v8881_v2  ;;  %v6384_v59 = vld [vmem:[%s7814_s18 + $0x90] sm:$0xff]  }
 0x4eb   : > { %5598 = vperm.xlu0 %7403, %v3805_v18   ;;  %v6383_v18 = vld [vmem:[%s7814_s18 + $0x88] sm:$0xff]  }
 0x4ec   : > { %v6181_v42 = vunpack.c.l.bf16 %v6383_v18 }
 0x4ef   : > { %5603 = vperm.xlu0 %7403, %v3806_v60   ;;  %v6391_v60 = vld [vmem:[%s7814_s18 + $0xc8] sm:$0xff]  }
 0x4f0   : > { %v6213_v40 = vunpack.c.l.bf16 %v6391_v60 }
 0x4f2   : > { %v642_v11 = vmul.f32 %v6213_v40, %v8868_v17 }
 0x4f3   : > { %5608 = vperm.xlu0 %7403, %v3807_v4   ;;  %v8896_v4 = vstv %s6020_s25 }
 0x4f7   : > { %5613 = vperm.xlu0 %7403, %v3808_v7  }
 0x4fb   : > { %5618 = vperm.xlu0 %7403, %v3809_v21   ;;  %v709_v21 = vmul.f32 %v6242_v49, %v8873_v19 }
 0x4ff   : > { %5623 = vperm.xlu0 %7403, %v3810_v51  }
 0x503   : > { %5628 = vperm.xlu0 %7403, %v3811_v37   ;;  %v6399_v37 = vld [vmem:[%s7814_s18 + $0x108] sm:$0xff]  }
 0x504   : > { %v6245_v24 = vunpack.c.l.bf16 %v6399_v37 }
 0x507   : > { %5633 = vperm.xlu0 %7403, %v3812_v0  }
 0x50b   : > { %5638 = vperm.xlu0 %7403, %v3813_v52  }
 0x54c   : > { %v4356_v38 = vpop.permute.xlu1 %4355 }
 0x54d   : > { %v4351_v30 = vpop.permute.xlu0 %4350  ;;  %v4359_v8 = vmul.f32 %v4356_v38, %v4339_v48  ;;  %v640_v48 = vmul.f32 %v6209_v34, %v8868_v17  ;;  %v6422_v38 = vld [vmem:[%s7814_s18 + $0x1c0] sm:$0xff]  }
 0x54e   : > { %v4358_v62 = vmul.f32 %v4351_v30, %v4338_v29  ;;  %v6241_v29 = vunpack.c.l.bf16 %v6398_v45  ;;  %v6375_v30 = vld [vmem:[%s7814_s18 + $0x48] sm:$0xff]   ;;  %v6337_v33 = vunpack.c.l.bf16 %v6422_v38  ;;  %v6338_v36 = vunpack.c.h.bf16 %v6422_v38 }
 0x54f   : > { %v656_v35 = vadd.f32 %v640_v48, %v588_v10  ;;  %v6149_v51 = vunpack.c.l.bf16 %v6375_v30  ;;  %v574_v45 = vmul.f32 %v6181_v42, %v8864_v3  ;;  %v6415_v10 = vld [vmem:[%s7814_s18 + $0x188] sm:$0xff]   ;;  %v6150_v6 = vunpack.c.h.bf16 %v6375_v30 }
 0x550   : > { %4360 = vxpose.xlu1.b32.start [1/2] (short) %v4358_v62, 128  ;;  %v708_v23 = vmul.f32 %v6241_v29, %v8873_v19  ;;  %v8889_v62 = vstv %s6003_s9  ;;  %v912_v52 = vmul.f32 %v6337_v33, %v8896_v4  ;;  %v913_v48 = vmul.f32 %v6338_v36, %v8896_v4  ;;  %v6376_v33 = vld [vmem:[%s7814_s18 + $0x50] sm:$0xff]  }
 0x551   : > { %v844_v63 = vmul.f32 %v6305_v1, %v8889_v62  ;;  %v506_v13 = vmul.f32 %v6149_v51, %v8859_v16  ;;  %v845_v26 = vmul.f32 %v6306_v32, %v8889_v62  ;;  %v710_v29 = vmul.f32 %v6245_v24, %v8873_v19 }
 0x552   : > { %v724_v50 = vadd.f32 %v708_v23, %v656_v35  ;;  %v6309_v39 = vunpack.c.l.bf16 %v6415_v10  ;;  %v6423_v35 = vld [vmem:[%s7814_s18 + $0x1c8] sm:$0xff]   ;;  %v6118_v23 = vunpack.c.h.bf16 %v8878_v20  ;;  %v507_v1 = vmul.f32 %v6150_v6, %v8859_v16 }
 0x553   : > { %v522_v56 = vadd.f32 %v506_v13, %v438_v22  ;;  %v6214_v38 = vunpack.c.h.bf16 %v6391_v60  ;;  %v6400_v60 = vld [vmem:[%s7814_s18 + $0x110] sm:$0xff]  }
 0x554   : > { %4361 = vxpose.xlu1.b32.end [2/2] (short) %v4359_v8, 128  ;;  %v589_v8 = vadd.f32 %v573_v27, %v521_v44  ;;  %v792_v54 = vadd.f32 %v776_v55, %v724_v50  ;;  %v846_v15 = vmul.f32 %v6309_v39, %v8889_v62  ;;  %v6341_v44 = vunpack.c.l.bf16 %v6423_v35  ;;  %v6416_v13 = vld [vmem:[%s7814_s18 + $0x190] sm:$0xff]  }
 0x555   : > { %v590_v46 = vadd.f32 %v574_v45, %v522_v56  ;;  %v6182_v27 = vunpack.c.h.bf16 %v6383_v18  ;;  %v439_v55 = vmul.f32 %v6118_v23, %v8857_v57  ;;  %v643_v18 = vmul.f32 %v6214_v38, %v8868_v17  ;;  %v6424_v45 = vld [vmem:[%s7814_s18 + $0x1d0] sm:$0xff]  }
 0x556   : > { %v860_v0 = vadd.f32 %v844_v63, %v792_v54  ;;  %v914_v20 = vmul.f32 %v6341_v44, %v8896_v4  ;;  %v6278_v54 = vunpack.c.h.bf16 %v6407_v31  ;;  %v6310_v63 = vunpack.c.h.bf16 %v6415_v10 }
 0x557   : > { %v658_v50 = vadd.f32 %v642_v11, %v590_v46  ;;  %v575_v30 = vmul.f32 %v6182_v27, %v8864_v3  ;;  %v523_v22 = vadd.f32 %v507_v1, %v439_v55  ;;  %v6153_v31 = vunpack.c.l.bf16 %v6376_v33 }
 0x558   : > { %v8904_v61 = vadd.f32 %v912_v52, %v860_v0  ;;  %v6392_v0 = vld [vmem:[%s7814_s18 + $0xd0] sm:$0xff]   ;;  %v847_v32 = vmul.f32 %v6310_v63, %v8889_v62  ;;  %v6249_v56 = vunpack.c.l.bf16 %v6400_v60  ;;  %v6154_v27 = vunpack.c.h.bf16 %v6376_v33 }
 0x559   : > { %v726_v49 = vadd.f32 %v710_v29, %v658_v50  ;;  %v591_v52 = vadd.f32 %v575_v30, %v523_v22  ;;  %v508_v11 = vmul.f32 %v6153_v31, %v8859_v16  ;;  %v6313_v29 = vunpack.c.l.bf16 %v6416_v13  ;;  %v6401_v31 = vld [vmem:[%s7814_s18 + $0x118] sm:$0xff]  }
 0x55a   : > { %9822 = vst [vmem:[#allocation14_spill] sm:$0xff] %v8904_v61  ;;  %5657 = vxpose.xlu0.b32.start [1/16] %v8904_v61, 128  ;;  %v712_v46 = vmul.f32 %v6249_v56, %v8873_v19  ;;  %v6186_v50 = vunpack.c.h.bf16 %v6384_v59  ;;  %v6250_v30 = vunpack.c.h.bf16 %v6400_v60  ;;  %v6346_v60 = vunpack.c.h.bf16 %v6424_v45 }
 0x55b   : > { %v659_v24 = vadd.f32 %v643_v18, %v591_v52  ;;  %v848_v6 = vmul.f32 %v6313_v29, %v8889_v62 }
 0x55c   : > { %v577_v22 = vmul.f32 %v6186_v50, %v8864_v3 }
 0x572   : > { %7404 = vset.pattern.permute.xlu1 %v9821_v9  ;;  %v641_v9 = vmul.f32 %v6210_v53, %v8868_v17  ;;  %v778_v53 = vmul.f32 %v6277_v5, %v8881_v2 }
 0x574   : > { %v657_v7 = vadd.f32 %v641_v9, %v589_v8  ;;  %v6368_v9 = vld [vmem:[%s7814_s18 + $0x10] sm:$0xff]   ;;  %v6246_v8 = vunpack.c.h.bf16 %v6399_v37  ;;  %v794_v37 = vadd.f32 %v778_v53, %v726_v49  ;;  %v6345_v53 = vunpack.c.l.bf16 %v6424_v45 }
 0x575   : > { %v6121_v51 = vunpack.c.l.bf16 %v6368_v9  ;;  %v6122_v44 = vunpack.c.h.bf16 %v6368_v9  ;;  %v509_v49 = vmul.f32 %v6154_v27, %v8859_v16  ;;  %v6377_v9 = vld [vmem:[%s7814_s18 + $0x58] sm:$0xff]  }
 0x576   : > { %v725_v41 = vadd.f32 %v709_v21, %v657_v7  ;;  %v711_v7 = vmul.f32 %v6246_v8, %v8873_v19  ;;  %v6342_v21 = vunpack.c.h.bf16 %v6423_v35  ;;  %v862_v36 = vadd.f32 %v846_v15, %v794_v37  ;;  %v6393_v37 = vld [vmem:[%s7814_s18 + $0xd8] sm:$0xff]  }
 0x577   : > { %v440_v40 = vmul.f32 %v6121_v51, %v8857_v57  ;;  %v916_v1 = vmul.f32 %v6345_v53, %v8896_v4  ;;  %v441_v8 = vmul.f32 %v6122_v44, %v8857_v57 }
 0x578   : > { %v793_v34 = vadd.f32 %v777_v14, %v725_v41  ;;  %v779_v14 = vmul.f32 %v6278_v54, %v8881_v2  ;;  %v6408_v41 = vld [vmem:[%s7814_s18 + $0x150] sm:$0xff]   ;;  %v915_v42 = vmul.f32 %v6342_v21, %v8896_v4  ;;  %v8940_v5 = vadd.f32 %v914_v20, %v862_v36  ;;  %v6369_v54 = vld [vmem:[%s7814_s18 + $0x18] sm:$0xff]  }
 0x579   : > { %v727_v39 = vadd.f32 %v711_v7, %v659_v24  ;;  %v524_v35 = vadd.f32 %v508_v11, %v440_v40  ;;  %v6218_v20 = vunpack.c.h.bf16 %v6392_v0  ;;  %v6282_v18 = vunpack.c.h.bf16 %v6408_v41  ;;  %v6385_v7 = vld [vmem:[%s7814_s18 + $0x98] sm:$0xff]  }
 0x57a   : > { %v861_v28 = vadd.f32 %v845_v26, %v793_v34  ;;  %v6185_v26 = vunpack.c.l.bf16 %v6384_v59  ;;  %v6217_v34 = vunpack.c.l.bf16 %v6392_v0  ;;  %9824 = vst [vmem:[#allocation28_spill] sm:$0xff] %v8940_v5  ;;  %v713_v59 = vmul.f32 %v6250_v30, %v8873_v19 }
 0x57b   : > { %v795_v15 = vadd.f32 %v779_v14, %v727_v39  ;;  %v645_v33 = vmul.f32 %v6218_v20, %v8868_v17  ;;  %v525_v51 = vadd.f32 %v509_v49, %v441_v8  ;;  %v6314_v0 = vunpack.c.h.bf16 %v6416_v13 }
 0x57c   : > { %v8917_v47 = vadd.f32 %v913_v48, %v861_v28  ;;  %v576_v10 = vmul.f32 %v6185_v26, %v8864_v3  ;;  %v6281_v48 = vunpack.c.l.bf16 %v6408_v41  ;;  %v644_v28 = vmul.f32 %v6217_v34, %v8868_v17  ;;  %v6409_v26 = vld [vmem:[%s7814_s18 + $0x158] sm:$0xff]  }
 0x57d   : > { %v863_v38 = vadd.f32 %v847_v32, %v795_v15  ;;  %v781_v14 = vmul.f32 %v6282_v18, %v8881_v2  ;;  %v6125_v32 = vunpack.c.l.bf16 %v6369_v54  ;;  %v6157_v40 = vunpack.c.l.bf16 %v6377_v9  ;;  %v8966_v34 = vld [vmem:[%s7814_s18 + $0x198] sm:$0xff]  }
 0x57e   : > { %9823 = vst [vmem:[#allocation24_spill] sm:$0xff] %v8917_v47  ;;  %5658 = vxpose.xlu0.b32.cont [2/16] %v8917_v47, 128  ;;  %v780_v23 = vmul.f32 %v6281_v48, %v8881_v2  ;;  %v592_v55 = vadd.f32 %v576_v10, %v524_v35  ;;  %v593_v36 = vadd.f32 %v577_v22, %v525_v51  ;;  %v6189_v24 = vunpack.c.l.bf16 %v6385_v7  ;;  %v6425_v10 = vld [vmem:[%s7814_s18 + $0x1d8] sm:$0xff]  }
 0x57f   : > { %v8956_v21 = vadd.f32 %v915_v42, %v863_v38  ;;  %v849_v41 = vmul.f32 %v6314_v0, %v8889_v62  ;;  %v917_v42 = vmul.f32 %v6346_v60, %v8896_v4  ;;  %v442_v56 = vmul.f32 %v6125_v32, %v8857_v57 }
 0x580   : > { %v660_v63 = vadd.f32 %v644_v28, %v592_v55  ;;  %v510_v45 = vmul.f32 %v6157_v40, %v8859_v16  ;;  %v6221_v11 = vunpack.c.l.bf16 %v6393_v37  ;;  %v661_v48 = vadd.f32 %v645_v33, %v593_v36 }
 0x581   : > { %9825 = vst [vmem:[#allocation23_spill] sm:$0xff] %v8956_v21  ;;  %v578_v29 = vmul.f32 %v6189_v24, %v8864_v3  ;;  %v6253_v39 = vunpack.c.l.bf16 %v6401_v31  ;;  %v6285_v28 = vunpack.c.l.bf16 %v6409_v26  ;;  %v6317_v15 = vunpack.c.l.bf16 %v8966_v34 }
 0x582   : > { %5659 = vxpose.xlu0.b32.cont [3/16] %v8940_v5, 128  ;;  %v728_v52 = vadd.f32 %v712_v46, %v660_v63  ;;  %v526_v35 = vadd.f32 %v510_v45, %v442_v56  ;;  %v646_v53 = vmul.f32 %v6221_v11, %v8868_v17  ;;  %v729_v44 = vadd.f32 %v713_v59, %v661_v48 }
 0x583   : > { %v782_v27 = vmul.f32 %v6285_v28, %v8881_v2  ;;  %v6349_v50 = vunpack.c.l.bf16 %v6425_v10  ;;  %v850_v38 = vmul.f32 %v6317_v15, %v8889_v62  ;;  %v6126_v8 = vunpack.c.h.bf16 %v6369_v54  ;;  %v9015_v15 = vld [vmem:[%s7814_s18 + $0xa0] sm:$0xff]  }
 0x584   : > { %v796_v13 = vadd.f32 %v780_v23, %v728_v52  ;;  %v714_v23 = vmul.f32 %v6253_v39, %v8873_v19  ;;  %v594_v30 = vadd.f32 %v578_v29, %v526_v35  ;;  %v797_v49 = vadd.f32 %v781_v14, %v729_v44 }
 0x585   : > { %v918_v22 = vmul.f32 %v6349_v50, %v8896_v4  ;;  %v6158_v63 = vunpack.c.h.bf16 %v6377_v9  ;;  %v443_v18 = vmul.f32 %v6126_v8, %v8857_v57  ;;  %v6222_v60 = vunpack.c.h.bf16 %v6393_v37  ;;  %v9024_v50 = vld [vmem:[%s7814_s18 + $0x120] sm:$0xff]  }
 0x586   : > { %5660 = vxpose.xlu0.b32.cont [4/16] %v8956_v21, 128  ;;  %v864_v46 = vadd.f32 %v848_v6, %v796_v13  ;;  %v662_v59 = vadd.f32 %v646_v53, %v594_v30  ;;  %v865_v51 = vadd.f32 %v849_v41, %v797_v49  ;;  %v6254_v54 = vunpack.c.h.bf16 %v6401_v31  ;;  %v8995_v41 = vld [vmem:[%s7814_s18 + $0x20] sm:$0xff]  }
 0x587   : > { %v511_v0 = vmul.f32 %v6158_v63, %v8859_v16  ;;  %v6286_v40 = vunpack.c.h.bf16 %v6409_v26  ;;  %v6318_v11 = vunpack.c.h.bf16 %v8966_v34  ;;  %v6350_v48 = vunpack.c.h.bf16 %v6425_v10  ;;  %v9012_v53 = vld [vmem:[%s7814_s18 + $0x60] sm:$0xff]  }
 0x588   : > { %v8976_v20 = vadd.f32 %v916_v1, %v864_v46  ;;  %v6190_v1 = vunpack.c.h.bf16 %v6385_v7  ;;  %v730_v32 = vadd.f32 %v714_v23, %v662_v59  ;;  %v8991_v24 = vadd.f32 %v917_v42, %v865_v51 }
 0x589   : > { %v527_v13 = vadd.f32 %v511_v0, %v443_v18  ;;  %v647_v7 = vmul.f32 %v6222_v60, %v8868_v17  ;;  %v715_v45 = vmul.f32 %v6254_v54, %v8873_v19  ;;  %v783_v42 = vmul.f32 %v6286_v40, %v8881_v2  ;;  %v9044_v60 = vld [vmem:[%s7814_s18 + $0x160] sm:$0xff]  }
 0x58a   : > { %9826 = vst [vmem:[#allocation26_spill] sm:$0xff] %v8976_v20  ;;  %5661 = vxpose.xlu0.b32.cont [5/16] %v8976_v20, 128  ;;  %v579_v9 = vmul.f32 %v6190_v1, %v8864_v3  ;;  %9827 = vst [vmem:[#allocation29_spill] sm:$0xff] %v8991_v24  ;;  %v798_v56 = vadd.f32 %v782_v27, %v730_v32  ;;  %v6129_v35 = vunpack.c.l.bf16 %v8995_v41  ;;  %v9021_v27 = vld [vmem:[%s7814_s18 + $0xe0] sm:$0xff]   ;;  %v6161_v63 = vunpack.c.l.bf16 %v9012_v53  ;;  %v9262_v20 = vld [vmem:[%s7814_s18 + $0x1b0] sm:$0xff]  }
 0x58b   : > { %v851_v34 = vmul.f32 %v6318_v11, %v8889_v62  ;;  %v919_v10 = vmul.f32 %v6350_v48, %v8896_v4  ;;  %v6193_v59 = vunpack.c.l.bf16 %v9015_v15  ;;  %v6257_v0 = vunpack.c.l.bf16 %v9024_v50  ;;  %v9050_v40 = vld [vmem:[%s7814_s18 + $0x1a0] sm:$0xff]  }
 0x58c   : > { %v595_v26 = vadd.f32 %v579_v9, %v527_v13  ;;  %v866_v46 = vadd.f32 %v850_v38, %v798_v56  ;;  %v444_v49 = vmul.f32 %v6129_v35, %v8857_v57  ;;  %v512_v32 = vmul.f32 %v6161_v63, %v8859_v16 }
 0x58d   : > { %v580_v9 = vmul.f32 %v6193_v59, %v8864_v3  ;;  %v716_v48 = vmul.f32 %v6257_v0, %v8873_v19  ;;  %v6321_v35 = vunpack.c.l.bf16 %v9050_v40  ;;  %v6130_v0 = vunpack.c.h.bf16 %v8995_v41 }
 0x58e   : > { %5662 = vxpose.xlu0.b32.cont [6/16] %v8991_v24, 128  ;;  %v663_v23 = vadd.f32 %v647_v7, %v595_v26  ;;  %v9029_v8 = vadd.f32 %v918_v22, %v866_v46  ;;  %v6225_v22 = vunpack.c.l.bf16 %v9021_v27  ;;  %v528_v11 = vadd.f32 %v512_v32, %v444_v49 }
 0x58f   : > { %v445_v41 = vmul.f32 %v6130_v0, %v8857_v57 }
 0x590   : > { %9828 = vst [vmem:[#allocation31_spill] sm:$0xff] %v9029_v8 }
 0x592   : > { %5663 = vxpose.xlu0.b32.cont [7/16] %v9029_v8, 128 }
 0x5d0   : > { %v4376_v55 = vpop.trf.xlu1 }
 0x5d1   : > { %v4394_v6 = vsel %vm4392_vm7, %v4376_v55, 0 }
 0x5d2   : > { %v8981_v33 = vand.u32 4294901760, %v4394_v6 }
 0x5d4   : > { %v8987_v52 = vsub.f32 %v4394_v6, %v8981_v33  ;;  %v4377_v14 = vpop.trf.xlu1  ;;  %v731_v6 = vadd.f32 %v715_v45, %v663_v23  ;;  %v648_v45 = vmul.f32 %v6225_v22, %v8868_v17 }
 0x5d5   : > { %v4397_v36 = vsel %vm4392_vm7, %v4377_v14, 0 }
 0x5d6   : > { %v9690_v37 = vand.u32 4294901760, %v8987_v52  ;;  %v8998_v31 = vand.u32 4294901760, %v4397_v36  ;;  %v799_v14 = vadd.f32 %v783_v42, %v731_v6  ;;  %v6289_v42 = vunpack.c.l.bf16 %v9044_v60 }
 0x5d8   : > { %v9005_v29 = vsub.f32 %v4397_v36, %v8998_v31  ;;  %v4378_v39 = vpop.trf.xlu1  ;;  %v4511_v28 = vsub.f32 %v8987_v52, %v9690_v37  ;;  %v9053_v36 = vld [vmem:[%s7814_s18 + $0x1e0] sm:$0xff]   ;;  %v867_v26 = vadd.f32 %v851_v34, %v799_v14  ;;  %v784_v6 = vmul.f32 %v6289_v42, %v8881_v2 }
 0x5d9   : > { %v4400_v44 = vsel %vm4392_vm7, %v4378_v39, 0 }
 0x5da   : > { %v9689_v55 = vand.u32 4294901760, %v9005_v29  ;;  %v9027_v30 = vand.u32 4294901760, %v4400_v44  ;;  %v4512_v38 = vand.u32 4294901760, %v4511_v28  ;;  %v9070_v34 = vadd.f32 %v919_v10, %v867_v26 }
 0x5db   : > { %v6162_v10 = vunpack.c.h.bf16 %v9012_v53 }
 0x5dc   : > { %v4521_v18 = vsub.f32 %v9005_v29, %v9689_v55  ;;  %v9038_v1 = vsub.f32 %v4400_v44, %v9027_v30  ;;  %v4379_v51 = vpop.trf.xlu1  ;;  %7038 = vmatprep.mubr.f32.mxu0 %v4512_v38  ;;  %v6353_v44 = vunpack.c.l.bf16 %v9053_v36  ;;  %9830 = vst [vmem:[#allocation22_spill] sm:$0xff] %v9070_v34  ;;  %v596_v38 = vadd.f32 %v580_v9, %v528_v11 }
 0x5dd   : > { %v4403_v54 = vsel %vm4392_vm7, %v4379_v51, 0  ;;  %5664 = vxpose.xlu0.b32.cont [8/16] %v9070_v34, 128  ;;  %v6194_v9 = vunpack.c.h.bf16 %v9015_v15  ;;  %v513_v53 = vmul.f32 %v6162_v10, %v8859_v16 }
 0x5de   : > { %v4522_v13 = vand.u32 4294901760, %v4521_v18  ;;  %v9688_v7 = vand.u32 4294901760, %v9038_v1  ;;  %v9056_v56 = vand.u32 4294901760, %v4403_v54  ;;  %v852_v18 = vmul.f32 %v6321_v35, %v8889_v62 }
 0x5df   : > { %v664_v51 = vadd.f32 %v648_v45, %v596_v38  ;;  %v920_v22 = vmul.f32 %v6353_v44, %v8896_v4  ;;  %v529_v15 = vadd.f32 %v513_v53, %v445_v41  ;;  %v6258_v44 = vunpack.c.h.bf16 %v9024_v50 }
 0x5e0   : > { %v9062_v39 = vsub.f32 %v4403_v54, %v9056_v56  ;;  %v4380_v28 = vpop.trf.xlu1  ;;  %7039 = vmatmul.mubr.f32.vlgmr.msra.gmra.mrb[90].mxu0 %v4522_v13  ;;  %v4531_v46 = vsub.f32 %v9038_v1, %v9688_v7  ;;  %v6226_v13 = vunpack.c.h.bf16 %v9021_v27  ;;  %v6354_v53 = vunpack.c.h.bf16 %v9053_v36 }
 0x5e1   : > { %v4406_v23 = vsel %vm4392_vm7, %v4380_v28, 0  ;;  %v732_v26 = vadd.f32 %v716_v48, %v664_v51  ;;  %v6322_v51 = vunpack.c.h.bf16 %v9050_v40  ;;  %v717_v50 = vmul.f32 %v6258_v44, %v8873_v19  ;;  %v9134_v44 = vld [vmem:[%s7814_s18 + $0xe8] sm:$0xff]  }
 0x5e2   : > { %9829 = vst [vmem:[#allocation21_spill] sm:$0xff] %v9062_v39  ;;  %v9687_v49 = vand.u32 4294901760, %v9062_v39  ;;  %v9074_v63 = vand.u32 4294901760, %v4406_v23  ;;  %v4532_v59 = vand.u32 4294901760, %v4531_v46  ;;  %v581_v46 = vmul.f32 %v6194_v9, %v8864_v3 }
 0x5e3   : > { %v800_v35 = vadd.f32 %v784_v6, %v732_v26  ;;  %v649_v27 = vmul.f32 %v6226_v13, %v8868_v17  ;;  %v9119_v26 = vld [vmem:[%s7814_s18 + $0xa8] sm:$0xff]   ;;  %v853_v41 = vmul.f32 %v6322_v51, %v8889_v62 }
 0x5e4   : > { %v9082_v54 = vsub.f32 %v4406_v23, %v9074_v63  ;;  %v4381_v14 = vpop.trf.xlu1  ;;  %7041 = vmatprep.mubr.f32.mxu0 %v4532_v59  ;;  %v4541_v32 = vsub.f32 %v9062_v39, %v9687_v49  ;;  %v6290_v59 = vunpack.c.h.bf16 %v9044_v60  ;;  %v597_v10 = vadd.f32 %v581_v46, %v529_v15  ;;  %v9144_v51 = vld [vmem:[%s7814_s18 + $0x168] sm:$0xff]  }
 0x5e5   : > { %v4409_v45 = vsel %vm4392_vm7, %v4381_v14, 0  ;;  %v868_v0 = vadd.f32 %v852_v18, %v800_v35  ;;  %v9109_v14 = vld [vmem:[%s7814_s18 + $0x28] sm:$0xff]  }
 0x5e6   : > { %9831 = vst [vmem:[#allocation18_spill] sm:$0xff] %v9082_v54  ;;  %v9686_v11 = vand.u32 4294901760, %v9082_v54  ;;  %v9093_v42 = vand.u32 4294901760, %v4409_v45  ;;  %v4542_v28 = vand.u32 4294901760, %v4541_v32  ;;  %v9112_v32 = vld [vmem:[%s7814_s18 + $0x68] sm:$0xff]   ;;  %v785_v60 = vmul.f32 %v6290_v59, %v8881_v2 }
 0x5e7   : > { %v9121_v40 = vadd.f32 %v920_v22, %v868_v0  ;;  %v665_v18 = vadd.f32 %v649_v27, %v597_v10  ;;  %v6133_v15 = vunpack.c.l.bf16 %v9109_v14  ;;  %v6165_v22 = vunpack.c.l.bf16 %v9112_v32  ;;  %v9141_v59 = vld [vmem:[%s7814_s18 + $0x128] sm:$0xff]  }
 0x5e8   : > { %v9099_v48 = vsub.f32 %v4409_v45, %v9093_v42  ;;  %v4382_v23 = vpop.trf.xlu1  ;;  %7042 = vmatmul.mubr.f32.gmra.mrb[92].mxu0 %v4542_v28  ;;  %v4551_v38 = vsub.f32 %v9082_v54, %v9686_v11 }
 0x5e9   : > { %v4412_v6 = vsel %vm4392_vm7, %v4382_v23, 0  ;;  %9833 = vst [vmem:[#allocation17_spill] sm:$0xff] %v9121_v40  ;;  %5665 = vxpose.xlu0.b32.cont [9/16] %v9121_v40, 128  ;;  %v733_v36 = vadd.f32 %v717_v50, %v665_v18  ;;  %v921_v23 = vmul.f32 %v6354_v53, %v8896_v4  ;;  %v514_v50 = vmul.f32 %v6165_v22, %v8859_v16 }
 0x5ea   : > { %9832 = vst [vmem:[#allocation33_spill] sm:$0xff] %v9099_v48  ;;  %v9685_v9 = vand.u32 4294901760, %v9099_v48  ;;  %v9115_v13 = vand.u32 4294901760, %v4412_v6  ;;  %v4552_v45 = vand.u32 4294901760, %v4551_v38  ;;  %v6197_v38 = vunpack.c.l.bf16 %v9119_v26 }
 0x5eb   : > { %v6229_v53 = vunpack.c.l.bf16 %v9134_v44 }
 0x5ec   : > { %v9126_v28 = vsub.f32 %v4412_v6, %v9115_v13  ;;  %v4383_v46 = vpop.trf.xlu1  ;;  %7044 = vmatprep.mubr.f32.mxu0 %v4552_v45  ;;  %v4561_v35 = vsub.f32 %v9099_v48, %v9685_v9  ;;  %v446_v45 = vmul.f32 %v6133_v15, %v8857_v57  ;;  %v582_v18 = vmul.f32 %v6197_v38, %v8864_v3 }
 0x5ed   : > { %v4415_v27 = vsel %vm4392_vm7, %v4383_v46, 0  ;;  %v801_v46 = vadd.f32 %v785_v60, %v733_v36  ;;  %v6293_v15 = vunpack.c.l.bf16 %v9144_v51  ;;  %v9162_v60 = vld [vmem:[%s7814_s18 + $0x1a8] sm:$0xff]   ;;  %v650_v7 = vmul.f32 %v6229_v53, %v8868_v17 }
 0x5ee   : > { %9834 = vst [vmem:[#allocation30_spill] sm:$0xff] %v9126_v28  ;;  %v9691_v6 = vand.u32 4294901760, %v9126_v28  ;;  %v9147_v0 = vand.u32 4294901760, %v4415_v27  ;;  %v4562_v10 = vand.u32 4294901760, %v4561_v35  ;;  %v6261_v35 = vunpack.c.l.bf16 %v9141_v59 }
 0x5ef   : > { %v869_v36 = vadd.f32 %v853_v41, %v801_v46  ;;  %v530_v38 = vadd.f32 %v514_v50, %v446_v45  ;;  %v786_v34 = vmul.f32 %v6293_v15, %v8881_v2  ;;  %v6134_v50 = vunpack.c.h.bf16 %v9109_v14 }
 0x5f0   : > { %v9154_v9 = vsub.f32 %v4415_v27, %v9147_v0  ;;  %v4384_v11 = vpop.trf.xlu1  ;;  %7045 = vmatmul.mubr.f32.gmra.mrb[94].mxu0 %v4562_v10  ;;  %v4571_v49 = vsub.f32 %v9126_v28, %v9691_v6  ;;  %v9167_v27 = vld [vmem:[%s7814_s18 + $0x1e8] sm:$0xff]   ;;  %v718_v6 = vmul.f32 %v6261_v35, %v8873_v19  ;;  %v6166_v35 = vunpack.c.h.bf16 %v9112_v32 }
 0x5f1   : > { %v4418_v22 = vsel %vm4392_vm7, %v4384_v11, 0  ;;  %v9173_v40 = vadd.f32 %v921_v23, %v869_v36  ;;  %v598_v8 = vadd.f32 %v582_v18, %v530_v38  ;;  %v6325_v11 = vunpack.c.l.bf16 %v9162_v60 }
 0x5f2   : > { %9835 = vst [vmem:[#allocation25_spill] sm:$0xff] %v9154_v9  ;;  %v9695_v10 = vand.u32 4294901760, %v9154_v9  ;;  %v9170_v55 = vand.u32 4294901760, %v4418_v22  ;;  %v4572_v37 = vand.u32 4294901760, %v4571_v49  ;;  %v6357_v49 = vunpack.c.l.bf16 %v9167_v27 }
 0x5f3   : > { %9836 = vst [vmem:[#allocation36_spill] sm:$0xff] %v9173_v40  ;;  %5666 = vxpose.xlu0.b32.cont [10/16] %v9173_v40, 128  ;;  %v666_v18 = vadd.f32 %v650_v7, %v598_v8  ;;  %v854_v53 = vmul.f32 %v6325_v11, %v8889_v62  ;;  %v515_v14 = vmul.f32 %v6166_v35, %v8859_v16  ;;  %v6230_v11 = vunpack.c.h.bf16 %v9134_v44  ;;  %v9259_v40 = vld [vmem:[%s7814_s18 + $0x170] sm:$0xff]  }
 0x5f4   : > { %v9178_v41 = vsub.f32 %v4418_v22, %v9170_v55  ;;  %v4385_v45 = vpop.trf.xlu1  ;;  %7047 = vmatprep.mubr.f32.mxu0 %v4572_v37  ;;  %v4581_v46 = vsub.f32 %v9154_v9, %v9695_v10  ;;  %v922_v36 = vmul.f32 %v6357_v49, %v8896_v4  ;;  %v447_v10 = vmul.f32 %v6134_v50, %v8857_v57 }
 0x5f5   : > { %v4421_v23 = vsel %vm4392_vm7, %v4385_v45, 0  ;;  %v734_v38 = vadd.f32 %v718_v6, %v666_v18  ;;  %v6198_v45 = vunpack.c.h.bf16 %v9119_v26  ;;  %v6297_v47 = vunpack.c.l.bf16 %v9259_v40 }
 0x5f6   : > { %9837 = vst [vmem:[#allocation27_spill] sm:$0xff] %v9178_v41  ;;  %v9696_v15 = vand.u32 4294901760, %v9178_v41  ;;  %v9190_v37 = vand.u32 4294901760, %v4421_v23  ;;  %v4582_v22 = vand.u32 4294901760, %v4581_v46  ;;  %v6262_v46 = vunpack.c.h.bf16 %v9141_v59 }
 0x5f7   : > { %v802_v49 = vadd.f32 %v786_v34, %v734_v38  ;;  %v531_v50 = vadd.f32 %v515_v14, %v447_v10  ;;  %v583_v26 = vmul.f32 %v6198_v45, %v8864_v3  ;;  %v6294_v34 = vunpack.c.h.bf16 %v9144_v51 }
 0x5f8   : > { %v9197_v8 = vsub.f32 %v4421_v23, %v9190_v37  ;;  %v4386_v7 = vpop.trf.xlu1  ;;  %7048 = vmatmul.mubr.f32.gmra.mrb[96].mxu0 %v4582_v22  ;;  %v4591_v32 = vsub.f32 %v9178_v41, %v9696_v15  ;;  %v651_v22 = vmul.f32 %v6230_v11, %v8868_v17  ;;  %v719_v59 = vmul.f32 %v6262_v46, %v8873_v19 }
 0x5f9   : > { %v4424_v6 = vsel %vm4392_vm7, %v4386_v7, 0  ;;  %v870_v15 = vadd.f32 %v854_v53, %v802_v49  ;;  %v599_v44 = vadd.f32 %v583_v26, %v531_v50  ;;  %v6326_v45 = vunpack.c.h.bf16 %v9162_v60  ;;  %v9221_v7 = vld [vmem:[%s7814_s18 + $0x30] sm:$0xff]  }
 0x5fa   : > { %9838 = vst [vmem:[#allocation39_spill] sm:$0xff] %v9197_v8  ;;  %v9697_v23 = vand.u32 4294901760, %v9197_v8  ;;  %v9207_v18 = vand.u32 4294901760, %v4424_v6  ;;  %v4592_v35 = vand.u32 4294901760, %v4591_v32  ;;  %v6358_v53 = vunpack.c.h.bf16 %v9167_v27  ;;  %v9224_v32 = vld [vmem:[%s7814_s18 + $0x70] sm:$0xff]  }
 0x5fb   : > { %v9227_v51 = vadd.f32 %v922_v36, %v870_v15  ;;  %v667_v46 = vadd.f32 %v651_v22, %v599_v44  ;;  %v9231_v49 = vld [vmem:[%s7814_s18 + $0xb0] sm:$0xff]   ;;  %v6137_v22 = vunpack.c.l.bf16 %v9221_v7  ;;  %v6169_v44 = vunpack.c.l.bf16 %v9224_v32 }
 0x5fc   : > { %v9213_v10 = vsub.f32 %v4424_v6, %v9207_v18  ;;  %v4387_v38 = vpop.trf.xlu1  ;;  %7050 = vmatprep.mubr.f32.mxu0 %v4592_v35  ;;  %v4601_v14 = vsub.f32 %v9197_v8, %v9697_v23  ;;  %v787_v6 = vmul.f32 %v6294_v34, %v8881_v2  ;;  %v9234_v50 = vld [vmem:[%s7814_s18 + $0xf0] sm:$0xff]   ;;  %v855_v35 = vmul.f32 %v6326_v45, %v8889_v62 }
 0x5fd   : > { %v4427_v11 = vsel %vm4392_vm7, %v4387_v38, 0  ;;  %9840 = vst [vmem:[#allocation41_spill] sm:$0xff] %v9227_v51  ;;  %5667 = vxpose.xlu0.b32.cont [11/16] %v9227_v51, 128  ;;  %v735_v15 = vadd.f32 %v719_v59, %v667_v46  ;;  %v923_v36 = vmul.f32 %v6358_v53, %v8896_v4  ;;  %v6201_v45 = vunpack.c.l.bf16 %v9231_v49  ;;  %v9253_v46 = vld [vmem:[%s7814_s18 + $0x130] sm:$0xff]  }
 0x5fe   : > { %9839 = vst [vmem:[#allocation35_spill] sm:$0xff] %v9213_v10  ;;  %v9701_v60 = vand.u32 4294901760, %v9213_v10  ;;  %v9237_v26 = vand.u32 4294901760, %v4427_v11  ;;  %v4602_v27 = vand.u32 4294901760, %v4601_v14  ;;  %v6233_v59 = vunpack.c.l.bf16 %v9234_v50 }
 0x5ff   : > { %v803_v23 = vadd.f32 %v787_v6, %v735_v15  ;;  %v448_v51 = vmul.f32 %v6137_v22, %v8857_v57  ;;  %v584_v5 = vmul.f32 %v6201_v45, %v8864_v3  ;;  %v6265_v15 = vunpack.c.l.bf16 %v9253_v46  ;;  %v9279_v45 = vld [vmem:[%s7814_s18 + $0x1f0] sm:$0xff]  }
 0x600   : > { %v9245_v34 = vsub.f32 %v4427_v11, %v9237_v26  ;;  %v4388_v38 = vpop.trf.xlu1  ;;  %v4611_v14 = vsub.f32 %v9213_v10, %v9701_v60  ;;  %7051 = vmatmul.mubr.f32.gmra.mrb[98].mxu0 %v4602_v27  ;;  %v516_v11 = vmul.f32 %v6169_v44, %v8859_v16  ;;  %v652_v6 = vmul.f32 %v6233_v59, %v8868_v17 }
 0x601   : > { %v4430_v53 = vsel %vm4392_vm7, %v4388_v38, 0  ;;  %v871_v21 = vadd.f32 %v855_v35, %v803_v23  ;;  %v720_v59 = vmul.f32 %v6265_v15, %v8873_v19  ;;  %v6361_v8 = vunpack.c.l.bf16 %v9279_v45 }
 0x602   : > { %9841 = vst [vmem:[#allocation38_spill] sm:$0xff] %v9245_v34  ;;  %v9707_v27 = vand.u32 4294901760, %v9245_v34  ;;  %v9265_v60 = vand.u32 4294901760, %v4430_v53  ;;  %v4612_v24 = vand.u32 4294901760, %v4611_v14  ;;  %v532_v61 = vadd.f32 %v516_v11, %v448_v51 }
 0x603   : > { %v6329_v14 = vunpack.c.l.bf16 %v9262_v20  ;;  %v9282_v51 = vadd.f32 %v923_v36, %v871_v21  ;;  %v6138_v21 = vunpack.c.h.bf16 %v9221_v7  ;;  %v6202_v15 = vunpack.c.h.bf16 %v9231_v49 }
 0x604   : > { %v4621_v22 = vsub.f32 %v9245_v34, %v9707_v27  ;;  %v9274_v44 = vsub.f32 %v4430_v53, %v9265_v60  ;;  %v4389_v38 = vpop.trf.xlu1  ;;  %7053 = vmatprep.mubr.f32.mxu1 %v4612_v24  ;;  %v600_v35 = vadd.f32 %v584_v5, %v532_v61  ;;  %v788_v24 = vmul.f32 %v6297_v47, %v8881_v2 }
 0x605   : > { %v4433_v23 = vsel %vm4392_vm7, %v4389_v38, 0  ;;  %9843 = vst [vmem:[#allocation40_spill] sm:$0xff] %v9282_v51  ;;  %5668 = vxpose.xlu0.b32.cont [12/16] %v9282_v51, 128  ;;  %v856_v10 = vmul.f32 %v6329_v14, %v8889_v62  ;;  %v6170_v47 = vunpack.c.h.bf16 %v9224_v32  ;;  %v924_v7 = vmul.f32 %v6361_v8, %v8896_v4 }
 0x606   : > { %9842 = vst [vmem:[#allocation43_spill] sm:$0xff] %v9274_v44  ;;  %v4622_v11 = vand.u32 4294901760, %v4621_v22  ;;  %v9714_v27 = vand.u32 4294901760, %v9274_v44  ;;  %v9286_v53 = vand.u32 4294901760, %v4433_v23  ;;  %v668_v34 = vadd.f32 %v652_v6, %v600_v35 }
 0x607   : > { %v449_v38 = vmul.f32 %v6138_v21, %v8857_v57  ;;  %v517_v32 = vmul.f32 %v6170_v47, %v8859_v16 }
 0x608   : > { %v9294_v61 = vsub.f32 %v4433_v23, %v9286_v53  ;;  %v4390_v5 = vpop.trf.xlu1  ;;  %7054 = vmatmul.mubr.f32.vlgmr.msra.gmra.mrb[72].mxu1 %v4622_v11  ;;  %v4631_v36 = vsub.f32 %v9274_v44, %v9714_v27  ;;  %v736_v22 = vadd.f32 %v720_v59, %v668_v34  ;;  %v585_v11 = vmul.f32 %v6202_v15, %v8864_v3  ;;  %v6373_v15 = vld [vmem:[%s7814_s18 + $0x38] sm:$0xff]  }
 0x609   : > { %v4436_v6 = vsel %vm4392_vm7, %v4390_v5, 0  ;;  %7209 = vmatpush3.bf16.msra.mxu1 %v8827_v58  ;;  %v6234_v58 = vunpack.c.h.bf16 %v9234_v50  ;;  %v6266_v34 = vunpack.c.h.bf16 %v9253_v46  ;;  %v533_v5 = vadd.f32 %v517_v32, %v449_v38  ;;  %v6389_v38 = vld [vmem:[%s7814_s18 + $0xb8] sm:$0xff]  }
 0x60a   : > { %9844 = vst [vmem:[#allocation42_spill] sm:$0xff] %v9294_v61  ;;  %v9715_v14 = vand.u32 4294901760, %v9294_v61  ;;  %v9306_v23 = vand.u32 4294901760, %v4436_v6  ;;  %7211 = vmatprep.subr.bf16.mxu1 %v8821_v43  ;;  %v4632_v35 = vand.u32 4294901760, %v4631_v36  ;;  %v804_v49 = vadd.f32 %v788_v24, %v736_v22 }
 0x60b   : > { %v6298_v24 = vunpack.c.h.bf16 %v9259_v40  ;;  %v653_v50 = vmul.f32 %v6234_v58, %v8868_v17  ;;  %v721_v46 = vmul.f32 %v6266_v34, %v8873_v19  ;;  %v601_v27 = vadd.f32 %v585_v11, %v533_v5 }
 0x60c   : > { %v9314_v8 = vsub.f32 %v4436_v6, %v9306_v23  ;;  %v4391_v59 = vpop.trf.xlu1  ;;  %7056 = vmatprep.mubr.f32.mxu1 %v4632_v35  ;;  %v4641_v21 = vsub.f32 %v9294_v61, %v9715_v14  ;;  %v872_v47 = vadd.f32 %v856_v10, %v804_v49  ;;  %v6381_v14 = vld [vmem:[%s7814_s18 + $0x78] sm:$0xff]   ;;  %v6330_v32 = vunpack.c.h.bf16 %v9262_v20 }
 0x60d   : > { %v4439_v36 = vsel %vm4392_vm7, %v4391_v59, 0  ;;  %v789_v10 = vmul.f32 %v6298_v24, %v8881_v2  ;;  %v6362_v49 = vunpack.c.h.bf16 %v9279_v45  ;;  %v669_v11 = vadd.f32 %v653_v50, %v601_v27  ;;  %v6413_v45 = vld [vmem:[%s7814_s18 + $0x178] sm:$0xff]  }
 0x60e   : > { %9845 = vst [vmem:[#allocation34_spill] sm:$0xff] %v9314_v8  ;;  %v9717_v6 = vand.u32 4294901760, %v9314_v8  ;;  %v9325_v22 = vand.u32 4294901760, %v4439_v36  ;;  %v4642_v35 = vand.u32 4294901760, %v4641_v21  ;;  %v9329_v40 = vadd.f32 %v924_v7, %v872_v47  ;;  %v6397_v21 = vld [vmem:[%s7814_s18 + $0xf8] sm:$0xff]  }
 0x60f   : > { %v6141_v59 = vunpack.c.l.bf16 %v6373_v15  ;;  %v6405_v7 = vld [vmem:[%s7814_s18 + $0x138] sm:$0xff]   ;;  %v857_v5 = vmul.f32 %v6330_v32, %v8889_v62  ;;  %v6173_v20 = vunpack.c.l.bf16 %v6381_v14  ;;  %v6205_v24 = vunpack.c.l.bf16 %v6389_v38 }
 0x610   : > { %9846 = vst [vmem:[#allocation37_spill] sm:$0xff] %v9329_v40  ;;  %v9335_v58 = vsub.f32 %v4439_v36, %v9325_v22  ;;  %7057 = vmatmul.mubr.f32.gmra.mrb[74].mxu1 %v4642_v35  ;;  %v4651_v34 = vsub.f32 %v9314_v8, %v9717_v6  ;;  %5669 = vxpose.xlu0.b32.cont [13/16] %v9329_v40, 128  ;;  %v6237_v6 = vunpack.c.l.bf16 %v6397_v21  ;;  %v6269_v8 = vunpack.c.l.bf16 %v6405_v7  ;;  %v6421_v61 = vld [vmem:[%s7814_s18 + $0x1b8] sm:$0xff]  }
 0x611   : > { %v737_v35 = vadd.f32 %v721_v46, %v669_v11  ;;  %v450_v51 = vmul.f32 %v6141_v59, %v8857_v57  ;;  %v518_v27 = vmul.f32 %v6173_v20, %v8859_v16  ;;  %v586_v50 = vmul.f32 %v6205_v24, %v8864_v3 }
 0x612   : > { %v4660_v36 = vand.u32 4294901760, %v9335_v58  ;;  %v4652_v47 = vand.u32 4294901760, %v4651_v34  ;;  %v925_v44 = vmul.f32 %v6362_v49, %v8896_v4  ;;  %v6301_v41 = vunpack.c.l.bf16 %v6413_v45  ;;  %v6429_v34 = vld [vmem:[%s7814_s18 + $0x1f8] sm:$0xff]   ;;  %s5721_s18 = sld [smem:[#allocation4]] }
 0x613   : > { %v805_v40 = vadd.f32 %v789_v10, %v737_v35  ;;  %v534_v46 = vadd.f32 %v518_v27, %v450_v51  ;;  %v654_v11 = vmul.f32 %v6237_v6, %v8868_v17  ;;  %v722_v24 = vmul.f32 %v6269_v8, %v8873_v19 }
 0x614   : > { %7059 = vmatprep.mubr.f32.mxu1 %v4652_v47  ;;  %v4661_v32 = vsub.f32 %v9335_v58, %v4660_v36  ;;  %v6333_v9 = vunpack.c.l.bf16 %v6421_v61  ;;  %v6365_v48 = vunpack.c.l.bf16 %v6429_v34  ;;  %v6142_v47 = vunpack.c.h.bf16 %v6373_v15 }
 0x615   : > { %v873_v20 = vadd.f32 %v857_v5, %v805_v40  ;;  %v602_v28 = vadd.f32 %v586_v50, %v534_v46  ;;  %v6174_v54 = vunpack.c.h.bf16 %v6381_v14  ;;  %v790_v10 = vmul.f32 %v6301_v41, %v8881_v2  ;;  %v9849_v50 = vld [vmem:[#allocation33_spill] sm:$0xff]  ;;  %v9852_v46 = vld [vmem:[#allocation27_spill] sm:$0xff] }
 0x616   : > { %v4662_v59 = vand.u32 4294901760, %v4661_v32  ;;  %v6206_v49 = vunpack.c.h.bf16 %v6389_v38  ;;  %v6238_v35 = vunpack.c.h.bf16 %v6397_v21  ;;  %v451_v6 = vmul.f32 %v6142_v47, %v8857_v57  ;;  %v9850_v32 = vld [vmem:[#allocation30_spill] sm:$0xff] }
 0x617   : > { %v9357_v39 = vadd.f32 %v925_v44, %v873_v20  ;;  %v670_v51 = vadd.f32 %v654_v11, %v602_v28  ;;  %v519_v40 = vmul.f32 %v6174_v54, %v8859_v16  ;;  %v6270_v8 = vunpack.c.h.bf16 %v6405_v7  ;;  %v9853_v11 = vld [vmem:[#allocation39_spill] sm:$0xff]  ;;  %v9855_v20 = vld [vmem:[#allocation38_spill] sm:$0xff] }
 0x618   : > { %7060 = vmatmul.mubr.f32.gmra.mrb[76].mxu1 %v4662_v59  ;;  %v858_v15 = vmul.f32 %v6333_v9, %v8889_v62  ;;  %v587_v14 = vmul.f32 %v6206_v49, %v8864_v3  ;;  %v655_v41 = vmul.f32 %v6238_v35, %v8868_v17  ;;  %v6302_v38 = vunpack.c.h.bf16 %v6413_v45  ;;  %v9854_v59 = vld [vmem:[#allocation35_spill] sm:$0xff]  ;;  %v9857_v47 = vld [vmem:[#allocation42_spill] sm:$0xff] }
 0x619   : > { %7066 = vmatprep.mubr.f32.mxu1 %v8981_v33  ;;  %5670 = vxpose.xlu0.b32.cont [14/16] %v9357_v39, 128  ;;  %v738_v44 = vadd.f32 %v722_v24, %v670_v51  ;;  %v535_v5 = vadd.f32 %v519_v40, %v451_v6  ;;  %v926_v28 = vmul.f32 %v6365_v48, %v8896_v4  ;;  %v6334_v9 = vunpack.c.h.bf16 %v6421_v61  ;;  %v9856_v24 = vld [vmem:[#allocation43_spill] sm:$0xff]  ;;  %v9858_v49 = vld [vmem:[#allocation34_spill] sm:$0xff] }
 0x61a   : > { %v723_v54 = vmul.f32 %v6270_v8, %v8873_v19  ;;  %v791_v17 = vmul.f32 %v6302_v38, %v8881_v2  ;;  %v6366_v7 = vunpack.c.h.bf16 %v6429_v34  ;;  %v9851_v34 = vld [vmem:[#allocation25_spill] sm:$0xff]  ;;  %v9859_v35 = vand.u32 4294901760, %v8987_v52 }
 0x61b   : > { %v806_v57 = vadd.f32 %v790_v10, %v738_v44  ;;  %v603_v16 = vadd.f32 %v587_v14, %v535_v5  ;;  %v859_v45 = vmul.f32 %v6334_v9, %v8889_v62  ;;  %v9847_v62 = vld [vmem:[#allocation21_spill] sm:$0xff]  ;;  %v3803_v10 = vld [vmem:[%s8837_s20 + $0x28] sm:$0xff]  ;;  %v9860_v51 = vand.u32 4294901760, %v9005_v29 }
 0x61c   : > { %7067 = vmatmul.mubr.f32.vlgmr.msra.gmra.mrb[78].mxu1 %v8998_v31  ;;  %v927_v61 = vmul.f32 %v6366_v7, %v8896_v4  ;;  %v9848_v4 = vld [vmem:[#allocation18_spill] sm:$0xff]  ;;  %5588 = vperm.xlu1 %7404, %v3803_v10   ;;  %v9861_v6 = vand.u32 4294901760, %v9038_v1  ;;  %v9862_v40 = vand.u32 4294901760, %v9847_v62  ;;  %v9869_v14 = vand.u32 4294901760, %v9854_v59 }
 0x61d   : > { %7213 = vmatpush3.bf16.msra.mxu1 %v8821_v43  ;;  %7069 = vmatprep.mubr.f32.mxu1 %v9027_v30  ;;  %v874_v3 = vadd.f32 %v858_v15, %v806_v57  ;;  %v671_v21 = vadd.f32 %v655_v41, %v603_v16  ;;  %v9863_v8 = vand.u32 4294901760, %v9848_v4  ;;  %v9864_v15 = vand.u32 4294901760, %v9849_v50 }
 0x61e   : > { %7215 = vmatprep.subr.bf16.mxu1 %v8817_v12  ;;  %v9870_v44 = vand.u32 4294901760, %v9855_v20  ;;  %v9871_v5 = vand.u32 4294901760, %v9856_v24  ;;  %v9872_v41 = vand.u32 4294901760, %v9857_v47  ;;  %v9873_v38 = vand.u32 4294901760, %v9858_v49 }
 0x61f   : > { %v9376_v48 = vadd.f32 %v926_v28, %v874_v3  ;;  %v739_v43 = vadd.f32 %v723_v54, %v671_v21 }
 0x620   : > { %7070 = vmatmul.mubr.f32.gmra.mrb[80].mxu1 %v9056_v56 }
 0x621   : > { %7072 = vmatprep.mubr.f32.mxu1 %v9074_v63  ;;  %5671 = vxpose.xlu0.b32.cont [15/16] %v9376_v48, 128  ;;  %v807_v19 = vadd.f32 %v791_v17, %v739_v43 }
 0x623   : > { %v875_v2 = vadd.f32 %v859_v45, %v807_v19 }
 0x624   : > { %7073 = vmatmul.mubr.f32.gmra.mrb[82].mxu1 %v9093_v42 }
 0x625   : > { %7075 = vmatprep.mubr.f32.mxu1 %v9115_v13  ;;  %v9383_v27 = vadd.f32 %v927_v61, %v875_v2 }
 0x627   : > { %5672 = vxpose.xlu0.b32.end [16/16] %v9383_v27, 128 }
 0x628   : > { %7076 = vmatmul.mubr.f32.gmra.mrb[84].mxu1 %v9147_v0 }
 0x629   : > { %7078 = vmatprep.mubr.f32.mxu1 %v9170_v55 }
 0x62c   : > { %7079 = vmatmul.mubr.f32.gmra.mrb[86].mxu1 %v9190_v37 }
 0x62d   : > { %7081 = vmatprep.mubr.f32.mxu1 %v9207_v18 }
 0x630   : > { %7082 = vmatmul.mubr.f32.gmra.mrb[72].mxu1 %v9237_v26 }
 0x631   : > { %7084 = vmatprep.mubr.f32.mxu1 %v9265_v60 }
 0x634   : > { %7085 = vmatmul.mubr.f32.gmra.mrb[74].mxu1 %v9286_v53 }
 0x635   : > { %7087 = vmatprep.mubr.f32.mxu1 %v9306_v23 }
 0x638   : > { %7088 = vmatmul.mubr.f32.gmra.mrb[76].mxu1 %v9325_v22 }
 0x639   : > { %7094 = vmatprep.mubr.f32.mxu1 %v8987_v52  ;;  %v9865_v52 = vand.u32 4294901760, %v9850_v32 }
 0x63c   : > { %7095 = vmatmul.mubr.f32.vlgmr.msra.gmra.mrb[78].mxu1 %v9005_v29  ;;  %v9866_v29 = vand.u32 4294901760, %v9851_v34 }
 0x63d   : > { %7217 = vmatpush3.bf16.msra.mxu1 %v8817_v12  ;;  %7097 = vmatprep.mubr.f32.mxu1 %v9038_v1  ;;  %v9868_v1 = vand.u32 4294901760, %v9853_v11 }
 0x63e   : > { %7219 = vmatprep.subr.bf16.mxu1 %v8825_v25 }
 0x640   : > { %7098 = vmatmul.mubr.f32.gmra.mrb[80].mxu1 %v9847_v62 }
 0x641   : > { %7100 = vmatprep.mubr.f32.mxu1 %v9848_v4 }
 0x644   : > { %7101 = vmatmul.mubr.f32.gmra.mrb[82].mxu1 %v9849_v50 }
 0x645   : > { %7103 = vmatprep.mubr.f32.mxu1 %v9850_v32  ;;  %v9518_v32 = vld [vmem:[%s7899_s19] ss:$0 sm:$0xff]  ;;  %s5915_s19 = sshll.u32 %s7810_s10, 7 }
 0x646   : > { %s9543_s24 = scalar_lea.vmem [#allocation10], %s5915_s19 }
 0x647   : > { %s5785_s13 = sshll.u32 %s9543_s24, 4  ;;  %s9615_s13 = int_to_ptr.vmem [resolvable:$true] %s5785_s13 }
 0x648   : > { %7104 = vmatmul.mubr.f32.gmra.mrb[84].mxu1 %v9851_v34  ;;  %s7519_s1 = scalar_lea.vmem %s9615_s13, 2048  ;;  %p7526_p1 = scmp.lt.s32.totalorder %s9615_s13, %s7524_s17 }
 0x649   : > { %7106 = vmatprep.mubr.f32.mxu1 %v9852_v46  ;;  %p7520_p12 = scmp.ne.s32.totalorder %s9615_s13, %s7519_s1  ;;  %p7527_p9 = scmp.lt.s32.totalorder %s7525_s12, %s7519_s1 }
 0x64b   : > { %p7521_p6 = pnand %p7520_p12, %p9887_p2  ;;  %p7528_p8 = por %p7527_p9, %p7526_p1 }
 0x64c   : > { %7107 = vmatmul.mubr.f32.gmra.mrb[86].mxu1 %v9853_v11 }
 0x64d   : > { %7109 = vmatprep.mubr.f32.mxu1 %v9854_v59  ;;  %p7522_p0 = pneg %p7521_p6 }
 0x64f   : > { %p7529_p4 = pnand %p7528_p8, %p7522_p0 }
 0x650   : > { %7110 = vmatmul.mubr.f32.gmra.mrb[72].mxu1 %v9855_v20 }
 0x651   : > { %7112 = vmatprep.mubr.f32.mxu1 %v9856_v24  ;;  %v9875_v24 = vld [vmem:[#allocation14_spill] sm:$0xff] }
 0x654   : > { %7113 = vmatmul.mubr.f32.gmra.mrb[74].mxu1 %v9857_v47 }
 0x655   : > { %7115 = vmatprep.mubr.f32.mxu1 %v9858_v49 }
 0x658   : > { %7116 = vmatmul.mubr.f32.gmra.mrb[76].mxu1 %v9335_v58 }
 0x659   : > { %7122 = vmatprep.mubr.f32.mxu1 %v9859_v35  ;;  %v9876_v35 = vld [vmem:[#allocation23_spill] sm:$0xff] }
 0x65c   : > { %7123 = vmatmul.mubr.f32.vlgmr.msra.gmra.mrb[78].mxu1 %v9860_v51 }
 0x65d   : > { %7221 = vmatpush3.bf16.msra.mxu1 %v8825_v25  ;;  %7125 = vmatprep.mubr.f32.mxu1 %v9861_v6  ;;  %v9867_v25 = vand.u32 4294901760, %v9852_v46  ;;  %v9874_v46 = vld [vmem:[#allocation24_spill] sm:$0xff]  ;;  %v9526_v6 = vstv %s5721_s18 }
 0x65e   : > { %7223 = vmatprep.subr.bf16.mxu1 %v8817_v12 }
 0x660   : > { %7126 = vmatmul.mubr.f32.gmra.mrb[80].mxu1 %v9862_v40 }
 0x661   : > { %7128 = vmatprep.mubr.f32.mxu1 %v9863_v8 }
 0x664   : > { %7129 = vmatmul.mubr.f32.gmra.mrb[82].mxu1 %v9864_v15  ;;  %v9877_v15 = vld [vmem:[#allocation28_spill] sm:$0xff] }
 0x665   : > { %7131 = vmatprep.mubr.f32.mxu1 %v9865_v52 }
 0x668   : > { %7132 = vmatmul.mubr.f32.gmra.mrb[84].mxu1 %v9866_v29 }
 0x669   : > { %7134 = vmatprep.mubr.f32.mxu1 %v9867_v25 }
 0x66c   : > { %7135 = vmatmul.mubr.f32.gmra.mrb[86].mxu1 %v9868_v1 }
 0x66d   : > { %7137 = vmatprep.mubr.f32.mxu1 %v9869_v14 }
 0x670   : > { %7138 = vmatmul.mubr.f32.gmra.mrb[72].mxu1 %v9870_v44 }
 0x671   : > { %7140 = vmatprep.mubr.f32.mxu1 %v9871_v5 }
 0x674   : > { %7141 = vmatmul.mubr.f32.gmra.mrb[74].mxu1 %v9872_v41  ;;  %v9878_v41 = vld [vmem:[#allocation29_spill] sm:$0xff] }
 0x675   : > { %7143 = vmatprep.mubr.f32.mxu1 %v9873_v38 }
 0x678   : > { %7144 = vmatmul.mubr.f32.gmra.mrb[76].mxu1 %v4660_v36 }
 0x679   : > { %7150 = vmatprep.mubr.f32.mxu1 %v8981_v33 }
 0x67c   : > { %7151 = vmatmul.mubr.f32.vlgmr.msra.gmra.mrb[78].mxu1 %v8998_v31 }
 0x67d   : > { %7225 = vmatpush3.bf16.msra.mxu1 %v8817_v12  ;;  %7153 = vmatprep.mubr.f32.mxu1 %v9027_v30 }
 0x680   : > { %7154 = vmatmul.mubr.f32.gmra.mrb[80].mxu1 %v9056_v56 }
 0x681   : > { %7156 = vmatprep.mubr.f32.mxu1 %v9074_v63 }
 0x684   : > { %7157 = vmatmul.mubr.f32.gmra.mrb[82].mxu1 %v9093_v42 }
 0x685   : > { %7159 = vmatprep.mubr.f32.mxu1 %v9115_v13 }
 0x688   : > { %7160 = vmatmul.mubr.f32.gmra.mrb[84].mxu1 %v9147_v0 }
 0x689   : > { %7162 = vmatprep.mubr.f32.mxu1 %v9170_v55 }
 0x68c   : > { %7163 = vmatmul.mubr.f32.gmra.mrb[86].mxu1 %v9190_v37 }
 0x68d   : > { %7165 = vmatprep.mubr.f32.mxu1 %v9207_v18 }
 0x690   : > { %7166 = vmatmul.mubr.f32.gmra.mrb[72].mxu1 %v9237_v26 }
 0x691   : > { %7168 = vmatprep.mubr.f32.mxu1 %v9265_v60 }
 0x694   : > { %7169 = vmatmul.mubr.f32.gmra.mrb[74].mxu1 %v9286_v53 }
 0x695   : > { %7171 = vmatprep.mubr.f32.mxu1 %v9306_v23 }
 0x698   : > { %7172 = vmatmul.mubr.f32.gmra.mrb[76].mxu1 %v9325_v22 }
 0x699   : > { %7178 = vmatprep.mubr.f32.mxu1 %v8981_v33 }
 0x69b   : > { %v5589_v25 = vpop.permute.xlu1 %5588 }
 0x69c   : > { %7179 = vmatmul.mubr.f32.vlgmr.msra.gmra.mrb[78].mxu1 %v8998_v31 }
 0x69d   : > { %7181 = vmatprep.mubr.f32.mxu1 %v9027_v30 }
 0x6a0   : > { %7182 = vmatmul.mubr.f32.gmra.mrb[80].mxu1 %v9056_v56 }
 0x6a1   : > { %7184 = vmatprep.mubr.f32.mxu1 %v9074_v63  ;;  %v5564_v63 = vpop.permute.xlu0 %5563 }
 0x6a2   : > { %v5641_v20 = vmul.f32 %v9518_v32, %v5564_v63 }
 0x6a4   : > { %7185 = vmatmul.mubr.f32.gmra.mrb[82].mxu1 %v9093_v42 }
 0x6a5   : > { %7187 = vmatprep.mubr.f32.mxu1 %v9115_v13 }
 0x6a8   : > { %7188 = vmatmul.mubr.f32.gmra.mrb[84].mxu1 %v9147_v0  ;;  %v5569_v0 = vpop.permute.xlu0 %5568 }
 0x6a9   : > { %7190 = vmatprep.mubr.f32.mxu1 %v9170_v55  ;;  %v5642_v34 = vmul.f32 %v9518_v32, %v5569_v0 }
 0x6ac   : > { %7191 = vmatmul.mubr.f32.gmra.mrb[86].mxu1 %v9190_v37 }
 0x6ad   : > { %7193 = vmatprep.mubr.f32.mxu1 %v9207_v18 }
 0x6b0   : > { %7194 = vmatmul.mubr.f32.gmra.mrb[72].mxu1 %v9237_v26 }
 0x6b1   : > { %7196 = vmatprep.mubr.f32.mxu1 %v9265_v60  ;;  %v5574_v60 = vpop.permute.xlu0 %5573 }
 0x6b2   : > { %v5643_v40 = vmul.f32 %v9518_v32, %v5574_v60 }
 0x6b3   : > { %v7040_v12 = vpop.f32.mrb[90].mxu0 }
 0x6b4   : > { %7197 = vmatmul.mubr.f32.gmra.mrb[74].mxu1 %v9286_v53  ;;  %v9479_v33 = vpop.f32.mrb[91].mxu0 }
 0x6b5   : > { %7199 = vmatprep.mubr.f32.mxu1 %v9306_v23  ;;  %v5579_v26 = vpop.permute.xlu0 %5578 }
 0x6b6   : > { %v5644_v49 = vmul.f32 %v9518_v32, %v5579_v26  ;;  %v5646_v26 = vmul.f32 %v9518_v32, %v5589_v25  ;;  %v9882_v25 = vld [vmem:[#allocation36_spill] sm:$0xff] }
 0x6b8   : > { %7200 = vmatmul.mubr.f32.gmra.mrb[76].mxu1 %v9325_v22 }
 0x6b9   : > { %v5584_v53 = vpop.permute.xlu0 %5583 }
 0x6ba   : > { %v5645_v1 = vmul.f32 %v9518_v32, %v5584_v53 }
 0x6bb   : > { %v9483_v31 = vpop.f32.mrb[92].mxu0 }
 0x6bc   : > { %v9485_v55 = vpop.f32.mrb[93].mxu0 }
 0x6bd   : > { %v5594_v23 = vpop.permute.xlu0 %5593 }
 0x6be   : > { %v5647_v53 = vmul.f32 %v9518_v32, %v5594_v23 }
 0x6c1   : > { %v5599_v22 = vpop.permute.xlu0 %5598 }
 0x6c3   : > { %v9487_v30 = vpop.f32.mrb[94].mxu0 }
 0x6c4   : > { %v9489_v56 = vpop.f32.mrb[95].mxu0 }
 0x6c5   : > { %v9499_v58 = vpop.permute.xlu0 %5603 }
 0x6c9   : > { %v9501_v36 = vpop.permute.xlu0 %5608 }
 0x6cb   : > { %v9491_v42 = vpop.f32.mrb[96].mxu0 }
 0x6cc   : > { %v9493_v13 = vpop.f32.mrb[97].mxu0 }
 0x6cd   : > { %v9503_v28 = vpop.permute.xlu0 %5613 }
 0x6d1   : > { %v9505_v57 = vpop.permute.xlu0 %5618 }
 0x6d3   : > { %v9495_v37 = vpop.f32.mrb[98].mxu0 }
 0x6d4   : > { %v9497_v18 = vpop.f32.mrb[99].mxu0 }
 0x6d5   : > { %v9507_v16 = vpop.permute.xlu0 %5623 }
 0x6d9   : > { %v9509_v54 = vpop.permute.xlu0 %5628 }
 0x6dd   : > { %v9511_v9 = vpop.permute.xlu0 %5633 }
 0x6e1   : > { %v9513_v3 = vpop.permute.xlu0 %5638 }
 0x6e5   : > { %v5673_v21 = vpop.trf.xlu0 }
 0x6e6   : > { %v5689_v47 = vadd.f32 %v5673_v21, %v9875_v24  ;;  %v9879_v21 = vld [vmem:[#allocation26_spill] sm:$0xff] }
 0x6e8   : > { %v5705_v8 = vmul.f32 %v5689_v47, %v5641_v20 }
 0x6e9   : > { %v5674_v17 = vpop.trf.xlu0 }
 0x6ea   : > { %v5690_v11 = vadd.f32 %v5674_v17, %v9874_v46  ;;  %v5648_v46 = vmul.f32 %v9518_v32, %v5599_v22 }
 0x6ec   : > { %v5706_v10 = vmul.f32 %v5690_v11, %v5642_v34 }
 0x6ed   : > { %v5675_v7 = vpop.trf.xlu0 }
 0x6ee   : > { %v5691_v52 = vadd.f32 %v5675_v7, %v9877_v15  ;;  %v5724_v44 = vadd.f32 %v9526_v6, %v5706_v10 }
 0x6f0   : > { %v5707_v60 = vmul.f32 %v5691_v52, %v5643_v40  ;;  %v5649_v40 = vmul.f32 %v9518_v32, %v9499_v58 }
 0x6f1   : > { %v5676_v43 = vpop.trf.xlu0 }
 0x6f2   : > { %v5692_v51 = vadd.f32 %v5676_v43, %v9876_v35  ;;  %v5723_v43 = vadd.f32 %v9526_v6, %v5705_v8  ;;  %v5650_v8 = vmul.f32 %v9518_v32, %v9501_v36 }
 0x6f4   : > { %v5708_v5 = vmul.f32 %v5692_v51, %v5644_v49  ;;  %v9881_v49 = vld [vmem:[#allocation31_spill] sm:$0xff] }
 0x6f5   : > { %v5677_v45 = vpop.trf.xlu0 }
 0x6f6   : > { %v5693_v17 = vadd.f32 %v5677_v45, %v9879_v21  ;;  %v5726_v47 = vadd.f32 %v9526_v6, %v5708_v5  ;;  %v9883_v5 = vld [vmem:[#allocation17_spill] sm:$0xff] }
 0x6f8   : > { %v5709_v23 = vmul.f32 %v5693_v17, %v5645_v1 }
 0x6f9   : > { %v5678_v19 = vpop.trf.xlu0 }
 0x6fa   : > { %v5694_v38 = vadd.f32 %v5678_v19, %v9878_v41  ;;  %v9880_v19 = vld [vmem:[#allocation22_spill] sm:$0xff]  ;;  %v5727_v36 = vadd.f32 %v9526_v6, %v5709_v23 }
 0x6fc   : > { %v5710_v45 = vmul.f32 %v5694_v38, %v5646_v26  ;;  %v5651_v26 = vmul.f32 %v9518_v32, %v9503_v28  ;;  %v5654_v28 = vmul.f32 %v9518_v32, %v9509_v54 }
 0x6fd   : > { %v5679_v61 = vpop.trf.xlu0 }
 0x6fe   : > { %v5695_v22 = vadd.f32 %v5679_v61, %v9881_v49 }
 0x701   : > { %v5680_v2 = vpop.trf.xlu0 }
 0x705   : > { %v5681_v62 = vpop.trf.xlu0 }
 0x706   : > { %v5697_v41 = vadd.f32 %v5681_v62, %v9883_v5 }
 0x709   : > { %v5682_v4 = vpop.trf.xlu0 }
 0x70a   : > { %v5698_v1 = vadd.f32 %v5682_v4, %v9882_v25  ;;  %v5652_v4 = vmul.f32 %v9518_v32, %v9505_v57  ;;  %v5713_v57 = vmul.f32 %v5697_v41, %v5649_v40 }
 0x70d   : > { %v9515_v50 = vpop.trf.xlu0 }
 0x711   : > { %v5684_v59 = vpop.trf.xlu0 }
 0x715   : > { %v9530_v29 = vpop.trf.xlu0 }
 0x719   : > { %v5686_v11 = vpop.trf.xlu0 }
 0x71d   : > { %v5687_v38 = vpop.trf.xlu0 }
 0x76f   : > { %v7180_v14 = vpop.f32.mrb[78].mxu1 }
 0x770   : > { %v7228_v63 = vadd.f32 %v7180_v14, %v7040_v12  ;;  %v5451_v0 = vpop.f32.mrb[79].mxu1  ;;  %v5696_v12 = vadd.f32 %v5680_v2, %v9880_v19  ;;  %v5725_v2 = vadd.f32 %v9526_v6, %v5707_v60  ;;  %v9885_v60 = vld [vmem:[#allocation41_spill] sm:$0xff] }
 0x771   : > { %v7229_v7 = vadd.f32 %v5451_v0, %v9479_v33  ;;  %v5699_v21 = vadd.f32 %v9515_v50, %v9885_v60  ;;  %v9886_v19 = vld [vmem:[#allocation37_spill] sm:$0xff] }
 0x772   : > { %v5740_v34 = vsub.f32 %v5724_v44, %v7228_v63  ;;  %v5712_v52 = vmul.f32 %v5696_v12, %v5648_v46  ;;  %v5711_v44 = vmul.f32 %v5695_v22, %v5647_v53  ;;  %v9884_v63 = vld [vmem:[#allocation40_spill] sm:$0xff]  ;;  %v5702_v46 = vadd.f32 %v5686_v11, %v9357_v39 }
 0x773   : > { %v5739_v20 = vsub.f32 %v5723_v43, %v7229_v7  ;;  %v7183_v24 = vpop.f32.mrb[80].mxu1  ;;  %v5700_v0 = vadd.f32 %v5684_v59, %v9884_v63  ;;  %v5714_v7 = vmul.f32 %v5698_v1, %v5650_v8  ;;  %v5701_v12 = vadd.f32 %v9530_v29, %v9886_v19 }
 0x774   : > { %5756 = vst [vmem:[%s9543_s24 + $0x8] sm:$0xff] %v5740_v34  ;;  %v7230_v33 = vadd.f32 %v7183_v24, %v9483_v31  ;;  %v5463_v10 = vpop.f32.mrb[81].mxu1  ;;  %v5730_v43 = vadd.f32 %v9526_v6, %v5712_v52  ;;  %v5729_v53 = vadd.f32 %v9526_v6, %v5711_v44  ;;  %v5715_v24 = vmul.f32 %v5699_v21, %v5651_v26 }
 0x775   : > { %5755 = vst [vmem:[%s9543_s24] sm:$0xff] %v5739_v20  ;;  %v7231_v35 = vadd.f32 %v5463_v10, %v9485_v55  ;;  %v5728_v55 = vadd.f32 %v9526_v6, %v5710_v45  ;;  %v5716_v50 = vmul.f32 %v5700_v0, %v5652_v4  ;;  %v5688_v45 = vpop.trf.xlu0  ;;  %v5732_v54 = vadd.f32 %v9526_v6, %v5714_v7 }
 0x776   : > { %v5742_v51 = vsub.f32 %v5726_v47, %v7230_v33  ;;  %v5655_v39 = vmul.f32 %v9518_v32, %v9511_v9  ;;  %v5731_v11 = vadd.f32 %v9526_v6, %v5713_v57  ;;  %v5718_v23 = vmul.f32 %v5702_v46, %v5654_v28 }
 0x777   : > { %v5741_v31 = vsub.f32 %v5725_v2, %v7231_v35  ;;  %v7186_v15 = vpop.f32.mrb[82].mxu1  ;;  %v5734_v22 = vadd.f32 %v9526_v6, %v5716_v50  ;;  %v5703_v9 = vadd.f32 %v5687_v38, %v9376_v48 }
 0x778   : > { %5758 = vst [vmem:[%s9543_s24 + $0x18] sm:$0xff] %v5742_v51  ;;  %v7232_v61 = vadd.f32 %v7186_v15, %v9487_v30  ;;  %v5475_v14 = vpop.f32.mrb[83].mxu1  ;;  %v5736_v8 = vadd.f32 %v9526_v6, %v5718_v23 }
 0x779   : > { %5757 = vst [vmem:[%s9543_s24 + $0x10] sm:$0xff] %v5741_v31  ;;  %v7233_v58 = vadd.f32 %v5475_v14, %v9489_v56  ;;  %v5719_v31 = vmul.f32 %v5703_v9, %v5655_v39 }
 0x77a   : > { %v5744_v30 = vsub.f32 %v5728_v55, %v7232_v61 }
 0x77b   : > { %v5743_v62 = vsub.f32 %v5727_v36, %v7233_v58  ;;  %v7189_v17 = vpop.f32.mrb[84].mxu1  ;;  %v5737_v14 = vadd.f32 %v9526_v6, %v5719_v31 }
 0x77c   : > { %5760 = vst [vmem:[%s9543_s24 + $0x28] sm:$0xff] %v5744_v30  ;;  %v7234_v56 = vadd.f32 %v7189_v17, %v9491_v42  ;;  %v5487_v34 = vpop.f32.mrb[85].mxu1  ;;  %v5653_v42 = vmul.f32 %v9518_v32, %v9507_v16  ;;  %v5656_v16 = vmul.f32 %v9518_v32, %v9513_v3  ;;  %v5733_v3 = vadd.f32 %v9526_v6, %v5715_v24 }
 0x77d   : > { %5759 = vst [vmem:[%s9543_s24 + $0x20] sm:$0xff] %v5743_v62  ;;  %v7235_v59 = vadd.f32 %v5487_v34, %v9493_v13 }
 0x77e   : > { %v5746_v20 = vsub.f32 %v5730_v43, %v7234_v56  ;;  %v5717_v35 = vmul.f32 %v5701_v12, %v5653_v42 }
 0x77f   : > { %v5745_v33 = vsub.f32 %v5729_v53, %v7235_v59  ;;  %v7192_v13 = vpop.f32.mrb[86].mxu1 }
 0x780   : > { %5762 = vst [vmem:[%s9543_s24 + $0x38] sm:$0xff] %v5746_v20  ;;  %v7236_v47 = vadd.f32 %v7192_v13, %v9495_v37  ;;  %v5499_v10 = vpop.f32.mrb[87].mxu1  ;;  %v5704_v37 = vadd.f32 %v5688_v45, %v9383_v27  ;;  %v5735_v15 = vadd.f32 %v9526_v6, %v5717_v35 }
 0x781   : > { %5761 = vst [vmem:[%s9543_s24 + $0x30] sm:$0xff] %v5745_v33  ;;  %v7237_v29 = vadd.f32 %v5499_v10, %v9497_v18 }
 0x782   : > { %v5748_v49 = vsub.f32 %v5732_v54, %v7236_v47  ;;  %v5720_v40 = vmul.f32 %v5704_v37, %v5656_v16 }
 0x783   : > { %v5747_v2 = vsub.f32 %v5731_v11, %v7237_v29  ;;  %v7195_v51 = vpop.f32.mrb[72].mxu1 }
 0x784   : > { %5764 = vst [vmem:[%s9543_s24 + $0x48] sm:$0xff] %v5748_v49  ;;  %v5750_v18 = vsub.f32 %v5734_v22, %v7195_v51  ;;  %v5511_v32 = vpop.f32.mrb[73].mxu1  ;;  %v5738_v61 = vadd.f32 %v9526_v6, %v5720_v40 }
 0x785   : > { %5763 = vst [vmem:[%s9543_s24 + $0x40] sm:$0xff] %v5747_v2  ;;  %v5749_v27 = vsub.f32 %v5733_v3, %v5511_v32 }
 0x786   : > { %5766 = vst [vmem:[%s9543_s24 + $0x58] sm:$0xff] %v5750_v18 }
 0x787   : > { %5765 = vst [vmem:[%s9543_s24 + $0x50] sm:$0xff] %v5749_v27  ;;  %v7198_v48 = vpop.f32.mrb[74].mxu1 }
 0x788   : > { %v5752_v52 = vsub.f32 %v5736_v8, %v7198_v48  ;;  %v5523_v25 = vpop.f32.mrb[75].mxu1 }
 0x789   : > { %v5751_v1 = vsub.f32 %v5735_v15, %v5523_v25 }
 0x78a   : > { %5768 = vst [vmem:[%s9543_s24 + $0x68] sm:$0xff] %v5752_v52 }
 0x78b   : > { %5767 = vst [vmem:[%s9543_s24 + $0x60] sm:$0xff] %v5751_v1  ;;  %v7201_v55 = vpop.f32.mrb[76].mxu1 }
 0x78c   : > { %v5754_v44 = vsub.f32 %v5738_v61, %v7201_v55  ;;  %v5535_v5 = vpop.f32.mrb[77].mxu1 }
 0x78d   : > { %v5753_v41 = vsub.f32 %v5737_v14, %v5535_v5 }
 0x78e   : > { %5770 = vst [vmem:[%s9543_s24 + $0x78] sm:$0xff] %v5754_v44 }
 0x78f   : > { %5769 = vst [vmem:[%s9543_s24 + $0x70] sm:$0xff] %v5753_v41 }
 0x790   : > { %7532 = shalt.err (!%p7529_p4)
}
 0x791   : > { %s7533_s9 = scalar_lea.hbm %s9613_s21, 2048  ;;  %s7537_s19 = scalar_lea.hbm %s9673_s7, 4096 }
 0x792   : > { %p7534_p10 = scmp.ne.s32.totalorder %s9613_s21, %s7533_s9  ;;  %p7538_p13 = scmp.lt.u32.totalorder %s9613_s21, %s9673_s7 }
 0x793   : > { %p7539_p3 = scmp.lt.u32.totalorder %s7537_s19, %s7533_s9  ;;  %p7541_p12 = scmp.lt.u32.totalorder %s7533_s9, %s9613_s21 }
 0x794   : > { %p7535_p11 = pnand %p7534_p10, %p9887_p2 }
 0x795   : > { %p7540_p7 = por %p7539_p3, %p7538_p13 }
 0x796   : > { %p7536_p5 = pneg %p7535_p11 }
 0x797   : > { %p7542_p6 = por %p7541_p12, %p7540_p7 }
 0x799   : > { %p7543_p0 = pnand %p7542_p6, %p7536_p5 }
 0x79b   : > { %7546 = shalt.err (!%p7543_p0)
}
 0x79c   : > { %s7616_s20 = smov 128   ;;  %s7617_s0 = smov 8  }
 0x79d   : > { %7324 = dma.vmem_to_hbm [thread:$0]  (%p9887_p2), %s9615_s13, 2048, %s9613_s21, %s5772_s29, %s7616_s20, %s7616_s20, %s7617_s0  }
 0x79e PF: > { %s5800_s1 = sand.u32 1, %s7585_s26   ;;  %p9888_p1 = scmp.ne.s32.totalorder %s9742_s15, 0 }
 0x79f   : > { %p9889_p9 = scmp.ge.s32.totalorder %s7605_s8, 2  ;;  %s5801_s16 = scalar_lea.sflag [#allocation7], %s5800_s1 }
 0x7a1   : > { %p7335_p8 = pnand %p9889_p9, %p9888_p1 }
 0x7a3   : > { %7580 = dma.done.wait (!%p7335_p8), %s5801_s16, 2048  }
 0x7a4   : > { %7582 = vsyncadd (!%p7335_p8), %s5801_s16, 4294965248  ;;  %s25_s8 = sadd.s32 1, %s7605_s8   ;;  %s9890_s26 = smov %s7589_s27 }
 0x7a5   : > { %p22_p4 = scmp.ge.s32.totalorder %s25_s8, 4   ;;  %s9891_s27 = smov %s7593_s28 }
 0x7a6   : > { %s9892_s28 = smov %s7771_s23  ;;  %s9893_s29 = smov %s7601_s30 }
 0x7a7   : > { %s9894_s30 = smov %s9896_s22  ;;  %24 = sbr.rel (!%p22_p4) target bundleno = 10 (0xa), region = 120 }
 0x7ae   :  { %5806 = vsyncpa [#allocation6], 1 }
 0x7af   :  { %5808 = vsyncpa [#allocation6 + $0x1], 1 }
 0x7b0   :  { %5809 = vsyncpa [#allocation7], 1 }
 0x7b1   :  { %5811 = vsyncpa [#allocation7 + $0x1], 1 }
 0x7b2   :  { %5812 = vsyncpa [#allocation8], 1 }
 0x7b3   :  { %5814 = vsyncpa [#allocation8 + $0x1], 1 }

</bundles_post_ra>
